<compile_context>
chip_gen: v6e
topology: v6e:2x2x1
jax: 0.10.0
libtpu: 0.0.40
codegen_flags: <defaults>
</compile_context>

<pallas_src>
import math

import jax
import jax.numpy as jnp
from jax.experimental import pallas as pl
from jax.experimental.pallas import tpu as pltpu

_SQRT2 = math.sqrt(2.0)
_TWO_PI = 2.0 * math.pi

# Cephes single-precision sin/cos minimax coefficients on [-pi/4, pi/4],
# with the sqrt(2) output correction folded into every coefficient.
_S0 = _SQRT2 * 1.0
_S1 = _SQRT2 * -1.6666654611e-1
_S2 = _SQRT2 * 8.3321608736e-3
_S3 = _SQRT2 * -1.9515295891e-4
_C0 = _SQRT2 * 1.0
_C1 = _SQRT2 * -0.5
_C2 = _SQRT2 * 4.166664568298827e-2
_C3 = _SQRT2 * -1.388731625493765e-3
_C4 = _SQRT2 * 2.443315711809948e-5


def _rff_kernel(x_ref, bt_ref, o_ref):
    # x_ref: (tN, A)   bt_ref: (A, H) pre-scaled to turns   o_ref: (tN, 2H)
    x = x_ref[...]
    bt = bt_ref[...]
    H = bt.shape[1]

    # Projection in "turns" on the MXU.  K = A is tiny and the MXU rides the
    # vector-extended slot (idle while sin/cos saturate the VALU), so HIGHEST
    # precision is essentially free and avoids bf16 rounding of the angle.
    proj = jnp.dot(
        x, bt,
        preferred_element_type=jnp.float32,
        precision=jax.lax.Precision.HIGHEST,
    )                                           # (tN, H), units of turns

    # ---- fused sincos: one shared range reduction to |t| <= pi/4 ----------
    k = jnp.round(proj * jnp.float32(4.0))      # nearest quarter-turn index
    r = proj - k * jnp.float32(0.25)            # exact (Sterbenz), |r| <= 1/8 turn
    t = r * jnp.float32(_TWO_PI)                # radians, |t| <= pi/4
    t2 = t * t

    # Polynomials share t2; sqrt(2) folded into the coefficients.
    s = t * (jnp.float32(_S0)
             + t2 * (jnp.float32(_S1)
                     + t2 * (jnp.float32(_S2) + t2 * jnp.float32(_S3))))
    c = (jnp.float32(_C0)
         + t2 * (jnp.float32(_C1)
                 + t2 * (jnp.float32(_C2)
                         + t2 * (jnp.float32(_C3) + t2 * jnp.float32(_C4)))))

    # Quadrant selection (two's-complement bit tricks handle negative k).
    q = k.astype(jnp.int32)
    swap = (q & 1) != 0
    sin_neg = (q & 2) != 0
    cos_neg = ((q + 1) & 2) != 0

    sin_v = jnp.where(swap, c, s)
    sin_v = jnp.where(sin_neg, -sin_v, sin_v)
    cos_v = jnp.where(swap, s, c)
    cos_v = jnp.where(cos_neg, -cos_v, cos_v)

    # Lane-dense, 128-multiple half-stores; no concatenated temp.
    o_ref[:, pl.ds(0, H)] = sin_v.astype(o_ref.dtype)
    o_ref[:, pl.ds(H, H)] = cos_v.astype(o_ref.dtype)


def _round_up(v, m):
    return -(-v // m) * m


def _vmem_limits():
    """Generation-aware (limit, tile_budget) in bytes."""
    cap = 64 << 20                       # conservative default (v7x-sized)
    try:
        info = pltpu.get_tpu_info()
        cap = int(getattr(info, "vmem_capacity_bytes", cap))
    except Exception:
        pass
    limit = min(cap // 2, 64 << 20)      # 64 MiB on v5e/v6e, 32 MiB on v7x
    return limit, limit // 2             # leave headroom for Mosaic scratch


def _pick_n_tile(N, H, C, vmem_budget_bytes):
    """Largest tile (multiple of 8) whose per-step footprint fits the budget.
    Counts double-buffered x + out blocks AND the in-kernel f32 intermediates
    (proj, t^2, sin/cos temporaries)."""
    two_h = 2 * H

    def footprint(t):
        x_blk = t * 128 * 4              # x tile: last dim (A) pads to 128 lanes
        out_blk = t * two_h * 4          # output tile (f32 upper bound)
        interm = 4 * t * H * 4           # proj + t2 + sin/cos temporaries
        return 2 * (x_blk + out_blk) + interm

    n_cap = max(8, _round_up(N, 8))
    tile = 8
    for cand in (4096, 2048, 1024, 512, 256, 128, 64, 32, 16, 8):
        if cand <= n_cap and footprint(cand) <= vmem_budget_bytes:
            tile = cand
            break

    # v7x has 2 TensorCores: guarantee >= 2 independent grid steps even for a
    # single-batch input so "parallel" semantics can actually shard the work.
    if C == 1 and N > 8:
        half = _round_up(pl.cdiv(N, 2), 8)
        if half < N:
            tile = min(tile, half)
    return tile


def rff_emb(x, B, out_dtype=None):
    """x: (C, N, A) float32, B: (C, H, A) float32 -> (C, N, 2H).

    out_dtype: optionally bfloat16 to halve HBM writeback (worthwhile on v5e);
    defaults to x.dtype (float32) to match the reference semantics.
    """
    C, N, A = x.shape
    Cb, H, Ab = B.shape
    assert C == Cb and A == Ab
    # Fast path (unmasked lane-dense half-stores) requires 128-aligned halves.
    assert H % 128 == 0, "out_features//2 must be a multiple of 128"
    two_h = 2 * H
    out_dtype = x.dtype if out_dtype is None else out_dtype

    # One-time, trace-time weight prep: transpose to MXU rhs orientation
    # (C, A, H) and pre-scale to "turns" so the in-kernel range reduction is a
    # single round() + subtract instead of a Cody-Waite chain.
    B_t = jnp.swapaxes(B, 1, 2) * jnp.float32(1.0 / _TWO_PI)

    vmem_limit, vmem_budget = _vmem_limits()
    tN = _pick_n_tile(N, H, C, vmem_budget)
    grid = (C, pl.cdiv(N, tN))
    # NOTE: for very small problems (like the demo below) launch/step overhead
    # dominates regardless of tiling; XLA fusion with the consumer is the only
    # lever at that scale.

    cost = pl.CostEstimate(
        flops=2 * C * N * H * A + 30 * C * N * two_h,   # matmul + sincos polys
        transcendentals=0,                               # polys run on the VPU
        bytes_accessed=4 * (C * N * A + C * A * H)
        + jnp.dtype(out_dtype).itemsize * C * N * two_h,
    )

    return pl.pallas_call(
        _rff_kernel,
        out_shape=jax.ShapeDtypeStruct((C, N, two_h), out_dtype),
        grid_spec=pltpu.PrefetchScalarGridSpec(
            num_scalar_prefetch=0,
            grid=grid,
            in_specs=[
                # Leading C dim squeezed out of the kernel view.
                pl.BlockSpec((None, tN, A), lambda c, n: (c, n, 0)),
                pl.BlockSpec((None, A, H), lambda c, n: (c, 0, 0)),
            ],
            out_specs=pl.BlockSpec((None, tN, two_h),
                                   lambda c, n: (c, n, 0)),
        ),
        compiler_params=pltpu.CompilerParams(
            dimension_semantics=("parallel", "parallel"),
            vmem_limit_bytes=vmem_limit,
        ),
        cost_estimate=cost,
    )(x, B_t)


if __name__ == "__main__":
    # Module config (small, consistent with the RFF module's forward):
    in_features = 4
    out_features = 256          # -> half = 128 (lane-aligned)
    sigma = 10.0
    batch_size = 2
    num_points = 256            # number of coordinates per batch element

    key = jax.random.PRNGKey(0)
    kb, kx = jax.random.split(key)

    # Deterministic parameter init, mirroring __init__:
    #   B = randn(batch_size, out_features//2, in_features) * sigma * 2 * pi
    half = out_features // 2
    B = jax.random.normal(kb, (batch_size, half, in_features), dtype=jnp.float32)
    B = B * (sigma * 2.0 * math.pi)

    # Input coordinates x: (batch_size, num_points, in_features)
    x = jax.random.uniform(kx, (batch_size, num_points, in_features),
                           dtype=jnp.float32)

    out = rff_emb(x, B)
    out = jax.block_until_ready(out)

    # Reference check in plain JAX (same math as the PyTorch forward), with
    # matching full matmul precision.
    proj_ref = jnp.einsum("cna,cba->cnb", x, B,
                          precision=jax.lax.Precision.HIGHEST)
    ref = jnp.concatenate([jnp.sin(proj_ref), jnp.cos(proj_ref)], axis=-1)
    ref = ref * math.sqrt(2.0)
    assert out.shape == (batch_size, num_points, out_features)
    assert jnp.allclose(out, ref, atol=5e-4, rtol=1e-4)

    print("KERNEL_OK")
</pallas_src>

<mosaic_0001>
module attributes {stable_mosaic.version = 11 : i64} {
  func.func @_rff_kernel(%arg0: i32, %arg1: i32, %arg2: memref<1x256x4xf32, #tpu.memory_space<vmem>>, %arg3: memref<1x4x128xf32, #tpu.memory_space<vmem>>, %arg4: memref<1x256x256xf32, #tpu.memory_space<vmem>>) attributes {dimension_semantics = [#tpu.dimension_semantics<parallel>, #tpu.dimension_semantics<parallel>], iteration_bounds = array<i64: 2, 1>, scalar_prefetch = 0 : i64, scratch_operands = 0 : i64, tpu.core_type = #tpu.core_type<tc>, window_params = [{transform_indices = @transform_0, window_bounds = array<i64: 1, 256, 4>}, {transform_indices = @transform_1, window_bounds = array<i64: 1, 4, 128>}, {transform_indices = @transform_2, window_bounds = array<i64: 1, 256, 256>}]} {
    %c0 = arith.constant 0 : index
    %c0_0 = arith.constant 0 : index
    %c0_1 = arith.constant 0 : index
    %0 = vector.load %arg2[%c0, %c0_0, %c0_1] : memref<1x256x4xf32, #tpu.memory_space<vmem>>, vector<1x256x4xf32>
    %1 = vector.shape_cast %0 : vector<1x256x4xf32> to vector<256x4xf32>
    %c0_2 = arith.constant 0 : index
    %c0_3 = arith.constant 0 : index
    %c0_4 = arith.constant 0 : index
    %2 = vector.load %arg3[%c0_2, %c0_3, %c0_4] : memref<1x4x128xf32, #tpu.memory_space<vmem>>, vector<1x4x128xf32>
    %3 = vector.shape_cast %2 : vector<1x4x128xf32> to vector<4x128xf32>
    %cst = arith.constant dense<0.000000e+00> : vector<256x128xf32>
    %4 = tpu.matmul %1, %3, %cst {dimension_numbers = #tpu.dot_dimension_numbers<[1], [0], [0], [1], [0, 0, 1, 1], [], []>, precision = #tpu.contract_precision<fp32>} : vector<256x4xf32>, vector<4x128xf32>, vector<256x128xf32> -> vector<256x128xf32>
    %cst_5 = arith.constant 4.000000e+00 : f32
    %5 = vector.broadcast %cst_5 : f32 to vector<256x128xf32>
    %6 = arith.mulf %4, %5 : vector<256x128xf32>
    %7 = math.roundeven %6 : vector<256x128xf32>
    %cst_6 = arith.constant 2.500000e-01 : f32
    %8 = vector.broadcast %cst_6 : f32 to vector<256x128xf32>
    %9 = arith.mulf %7, %8 : vector<256x128xf32>
    %10 = arith.subf %4, %9 : vector<256x128xf32>
    %cst_7 = arith.constant 6.28318548 : f32
    %11 = vector.broadcast %cst_7 : f32 to vector<256x128xf32>
    %12 = arith.mulf %10, %11 : vector<256x128xf32>
    %13 = arith.mulf %12, %12 : vector<256x128xf32>
    %cst_8 = arith.constant -2.75987957E-4 : f32
    %14 = vector.broadcast %cst_8 : f32 to vector<256x128xf32>
    %15 = arith.mulf %13, %14 : vector<256x128xf32>
    %cst_9 = arith.constant 0.0117834546 : f32
    %16 = vector.broadcast %cst_9 : f32 to vector<256x128xf32>
    %17 = arith.addf %16, %15 : vector<256x128xf32>
    %18 = arith.mulf %13, %17 : vector<256x128xf32>
    %cst_10 = arith.constant -0.235702083 : f32
    %19 = vector.broadcast %cst_10 : f32 to vector<256x128xf32>
    %20 = arith.addf %19, %18 : vector<256x128xf32>
    %21 = arith.mulf %13, %20 : vector<256x128xf32>
    %cst_11 = arith.constant 1.41421354 : f32
    %22 = vector.broadcast %cst_11 : f32 to vector<256x128xf32>
    %23 = arith.addf %22, %21 : vector<256x128xf32>
    %24 = arith.mulf %12, %23 : vector<256x128xf32>
    %cst_12 = arith.constant 3.455370e-05 : f32
    %25 = vector.broadcast %cst_12 : f32 to vector<256x128xf32>
    %26 = arith.mulf %13, %25 : vector<256x128xf32>
    %cst_13 = arith.constant -0.00196396303 : f32
    %27 = vector.broadcast %cst_13 : f32 to vector<256x128xf32>
    %28 = arith.addf %27, %26 : vector<256x128xf32>
    %29 = arith.mulf %13, %28 : vector<256x128xf32>
    %cst_14 = arith.constant 0.0589255355 : f32
    %30 = vector.broadcast %cst_14 : f32 to vector<256x128xf32>
    %31 = arith.addf %30, %29 : vector<256x128xf32>
    %32 = arith.mulf %13, %31 : vector<256x128xf32>
    %cst_15 = arith.constant -0.707106769 : f32
    %33 = vector.broadcast %cst_15 : f32 to vector<256x128xf32>
    %34 = arith.addf %33, %32 : vector<256x128xf32>
    %35 = arith.mulf %13, %34 : vector<256x128xf32>
    %cst_16 = arith.constant 1.41421354 : f32
    %36 = vector.broadcast %cst_16 : f32 to vector<256x128xf32>
    %37 = arith.addf %36, %35 : vector<256x128xf32>
    %38 = arith.fptosi %7 : vector<256x128xf32> to vector<256x128xi32>
    %c1_i32 = arith.constant 1 : i32
    %39 = vector.broadcast %c1_i32 : i32 to vector<256x128xi32>
    %40 = arith.andi %38, %39 : vector<256x128xi32>
    %c0_i32 = arith.constant 0 : i32
    %41 = vector.broadcast %c0_i32 : i32 to vector<256x128xi32>
    %42 = arith.cmpi ne, %40, %41 : vector<256x128xi32>
    %c2_i32 = arith.constant 2 : i32
    %43 = vector.broadcast %c2_i32 : i32 to vector<256x128xi32>
    %44 = arith.andi %38, %43 : vector<256x128xi32>
    %c0_i32_17 = arith.constant 0 : i32
    %45 = vector.broadcast %c0_i32_17 : i32 to vector<256x128xi32>
    %46 = arith.cmpi ne, %44, %45 : vector<256x128xi32>
    %c1_i32_18 = arith.constant 1 : i32
    %47 = vector.broadcast %c1_i32_18 : i32 to vector<256x128xi32>
    %48 = arith.addi %38, %47 : vector<256x128xi32>
    %c2_i32_19 = arith.constant 2 : i32
    %49 = vector.broadcast %c2_i32_19 : i32 to vector<256x128xi32>
    %50 = arith.andi %48, %49 : vector<256x128xi32>
    %c0_i32_20 = arith.constant 0 : i32
    %51 = vector.broadcast %c0_i32_20 : i32 to vector<256x128xi32>
    %52 = arith.cmpi ne, %50, %51 : vector<256x128xi32>
    %53 = arith.select %42, %37, %24 : vector<256x128xi1>, vector<256x128xf32>
    %cst_21 = arith.constant 0.000000e+00 : f32
    %54 = vector.broadcast %cst_21 : f32 to vector<256x128xf32>
    %55 = arith.subf %54, %53 : vector<256x128xf32>
    %56 = arith.select %46, %55, %53 : vector<256x128xi1>, vector<256x128xf32>
    %57 = arith.select %42, %24, %37 : vector<256x128xi1>, vector<256x128xf32>
    %cst_22 = arith.constant 0.000000e+00 : f32
    %58 = vector.broadcast %cst_22 : f32 to vector<256x128xf32>
    %59 = arith.subf %58, %57 : vector<256x128xf32>
    %60 = arith.select %52, %59, %57 : vector<256x128xi1>, vector<256x128xf32>
    %c0_23 = arith.constant 0 : index
    %c0_24 = arith.constant 0 : index
    %c0_25 = arith.constant 0 : index
    %61 = vector.load %arg4[%c0_23, %c0_24, %c0_25] : memref<1x256x256xf32, #tpu.memory_space<vmem>>, vector<1x256x128xf32>
    %62 = vector.shape_cast %61 : vector<1x256x128xf32> to vector<256x128xf32>
    %63 = vector.shape_cast %56 : vector<256x128xf32> to vector<1x256x128xf32>
    tpu.vector_store %arg4[%c0_23, %c0_24, %c0_25], %63 {strides = array<i32>} : memref<1x256x256xf32, #tpu.memory_space<vmem>>, vector<1x256x128xf32>,
    %c0_26 = arith.constant 0 : index
    %c0_27 = arith.constant 0 : index
    %c128 = arith.constant 128 : index
    %64 = vector.load %arg4[%c0_26, %c0_27, %c128] : memref<1x256x256xf32, #tpu.memory_space<vmem>>, vector<1x256x128xf32>
    %65 = vector.shape_cast %64 : vector<1x256x128xf32> to vector<256x128xf32>
    %66 = vector.shape_cast %60 : vector<256x128xf32> to vector<1x256x128xf32>
    tpu.vector_store %arg4[%c0_26, %c0_27, %c128], %66 {strides = array<i32>} : memref<1x256x256xf32, #tpu.memory_space<vmem>>, vector<1x256x128xf32>,
    return
  }
  func.func @transform_0(%arg0: i32, %arg1: i32) -> (i32, i32, i32) {
    %c0_i32 = arith.constant 0 : i32
    %c0_i32_0 = arith.constant 0 : i32
    return %arg0, %arg1, %c0_i32 : i32, i32, i32
  }
  func.func @transform_1(%arg0: i32, %arg1: i32) -> (i32, i32, i32) {
    %c0_i32 = arith.constant 0 : i32
    %c0_i32_0 = arith.constant 0 : i32
    %c0_i32_1 = arith.constant 0 : i32
    return %arg0, %c0_i32, %c0_i32_0 : i32, i32, i32
  }
  func.func @transform_2(%arg0: i32, %arg1: i32) -> (i32, i32, i32) {
    %c0_i32 = arith.constant 0 : i32
    %c0_i32_0 = arith.constant 0 : i32
    return %arg0, %arg1, %c0_i32 : i32, i32, i32
  }
}

</mosaic_0001>

<bundles_post_ra>
// kernel: tpu_custom_call.1
= control target key start
LH: loop header
LB: loop body
LE: loop exit
PB: predicated region body
PF: predicated region fallthrough
CT: control target
= control target key end

     0   :  { %7 = vsyncpa [#allocation3], 0  ;;  %s6514_s0 = inlined_call_operand.vmem [shape: f32[2,256,4], index: 0, kind: input, shape index: {}]   ;;  %s6515_s1 = inlined_call_operand.vmem [shape: f32[2,4,128], index: 1, kind: input, shape index: {}]   ;;  %s6516_s2 = inlined_call_operand.hbm [shape: f32[2,256,256], index: 2, kind: output, shape index: {}]  }
   0x1   :  { %9 = vsyncpa [#allocation3 + $0x1], 0  ;;  %s4414_s9 = smov 0   ;;  %s4416_s10 = smov 0  }
   0x2   :  { %s4418_s11 = smov 0   ;;  %s4420_s12 = smov 0  }
   0x3   :  { %s4422_s13 = smov 0   ;;  %s4424_s14 = smov 0  }
   0x4 LB: > { %s3395_s15 = sadd.s32 4294967295, %s4394_s14   ;;  %s3396_s16 = sadd.s32 4294967294, %s4394_s14   ;;  %s4394_s14 = sphi %s4424_s14, %s15_s14   ;;  %s4390_s13 = sphi %s4422_s13, %s6796_s13   ;;  %s4386_s12 = sphi %s4420_s12, %s6795_s12   ;;  %s4382_s11 = sphi %s4418_s11, %s6794_s11   ;;  %s4378_s10 = sphi %s4416_s10, %s6793_s10   ;;  %s4374_s9 = sphi %s4414_s9, %s6792_s9  }
   0x5   : > { %s27_s17 = sadd.s32 1, %s4390_s13  ;;  %s90_s18 = sadd.s32 1, %s4382_s11 }
   0x6   : > { %p29_p0 = scmp.ge.s32.totalorder %s27_s17, 2  ;;  %p100_p1 = scmp.ne.s32.totalorder %s4382_s11, %s4378_s10 }
   0x7   : > { %p101_p2 = scmp.eq.s32.totalorder %s3395_s15, 1  ;;  %p106_p3 = scmp.ne.s32.totalorder %s4378_s10, %s4374_s9 }
   0x8   : > { %s6798_s17 = smov (%p29_p0, %s27_s17), 0  ;;  %p107_p5 = scmp.eq.s32.totalorder %s3396_s16, 1 }
   0x9   : > { %p4454_p4 = por %p101_p2, %p100_p1  ;;  %s85_s20 = ssub.s32 %s4390_s13, %s6798_s17 }
   0xa   : > { %p3399_p6 = scmp.ge.s32.totalorder %s4394_s14, 1  ;;  %p88_p7 = scmp.eq.s32.totalorder %s85_s20, 0 }
   0xb   : > { %p4461_p8 = por %p107_p5, %p106_p3  ;;  %p145_p9 = scmp.lt.s32.totalorder %s4394_s14, 3 }
   0xc   : > { %s4467_s22 = scalar_select %p88_p7, %s4382_s11, %s90_s18  }
   0xd   : > { %p146_p10 = pnand %p3399_p6, %p145_p9 }
   0xf   : > { %149 = sbr.rel (%p146_p10) target bundleno = 738 (0x2e2), region = 28 }
  0x14   : > { %p176_p11 = scmp.lt.s32.totalorder %s4386_s12, 1  ;;  %vm320_vm0 = vcmask 1043456   ;;  %vm223_vm1 = vcmask 31744   ;;  %s172_s4 = sand.u32 1, %s4378_s10  }
  0x15   : > { %s5287_s5 = sshll.u32 %s172_s4, 9  ;;  %s3410_s7 = sshll.u32 %s4386_s12, 13 }
  0x16   : > { %s177_s23 = scalar_select %p176_p11, %s4386_s12, 1 }
  0x17   : > { %s5342_s6 = scalar_lea.vmem [#allocation2], %s5287_s5  ;;  %s6461_s18 = scalar_lea.hbm %s6516_s2, %s3410_s7 }
  0x18   : > { %s3409_s24 = sshll.u32 %s177_s23, 8  ;;  %s3403_s25 = sshll.u32 %s177_s23, 2 }
  0x19   : > { %s4474_s28 = scalar_lea.vmem %s6514_s0, %s3409_s24  ;;  %s188_s3 = scalar_lea.vmem %s6515_s1, %s3403_s25 }
  0x1a   : > { %v222_v0 = vld [vmem:[%s188_s3] sm:$0xf]  ;;  %v191_v2 = vld [vmem:[%s4474_s28 + $0x8] sm:$0xff]  ;;  %v192_v6 = vld [vmem:[%s4474_s28 + $0x10] sm:$0xff]  ;;  %s3304_s8 = sshll.u32 %s5342_s6, 4  ;;  %s6469_s12 = scalar_lea.sflag [#allocation3], %s172_s4  ;;  %s6463_s8 = int_to_ptr.vmem [resolvable:$true] %s3304_s8 }
  0x1b   : > { %v190_v1 = vld [vmem:[%s4474_s28] sm:$0xff]  ;;  %v322_v3 = vsel %vm320_vm0, %v222_v0, 0  ;;  %v228_v5 = vsel %vm223_vm1, %v191_v2, 0  ;;  %v193_v7 = vld [vmem:[%s4474_s28 + $0x18] sm:$0xff]  ;;  %v231_v12 = vsel %vm223_vm1, %v192_v6, 0  ;;  %v195_v13 = vld [vmem:[%s4474_s28 + $0x28] sm:$0xff] }
  0x1c   : > { %v225_v4 = vsel %vm223_vm1, %v190_v1, 0  ;;  %v194_v8 = vld [vmem:[%s4474_s28 + $0x20] sm:$0xff]  ;;  %v4486_v9 = vand.u32 4294901760, %v322_v3  ;;  %v4490_v11 = vand.u32 4294901760, %v228_v5  ;;  %v196_v14 = vld [vmem:[%s4474_s28 + $0x30] sm:$0xff]  ;;  %v4495_v15 = vand.u32 4294901760, %v231_v12 }
  0x1d   : > { %v4488_v10 = vand.u32 4294901760, %v225_v4  ;;  %v234_v16 = vsel %vm223_vm1, %v193_v7, 0  ;;  %v237_v17 = vsel %vm223_vm1, %v194_v8, 0  ;;  %v240_v18 = vsel %vm223_vm1, %v195_v13, 0  ;;  %v197_v43 = vld [vmem:[%s4474_s28 + $0x38] sm:$0xff]  ;;  %v198_v44 = vld [vmem:[%s4474_s28 + $0x40] sm:$0xff] }
  0x1e   : > { %3609 = vmatprep.subr.mxu0 %v4486_v9  ;;  %v742_v20 = vsub.f32 %v322_v3, %v4486_v9  ;;  %v4506_v21 = vsub.f32 %v228_v5, %v4490_v11  ;;  %v4509_v22 = vand.u32 4294901760, %v234_v16  ;;  %v4513_v23 = vsub.f32 %v231_v12, %v4495_v15  ;;  %v199_v45 = vld [vmem:[%s4474_s28 + $0x48] sm:$0xff]  ;;  %v200_v54 = vld [vmem:[%s4474_s28 + $0x50] sm:$0xff]  ;;  %v201_v55 = vld [vmem:[%s4474_s28 + $0x58] sm:$0xff]  ;;  %s4318_s20 = scalar_lea.vmem %s6463_s8, 8192  ;;  %s4396_s23 = smov [#allocation2]  }
  0x1f   : > { %v4502_v19 = vsub.f32 %v225_v4, %v4488_v10  ;;  %3661 = vmatprep.mubr.f32.mxu1 %v4488_v10  ;;  %3610 = vmatpush3.msra.mxu0 %v4486_v9  ;;  %v4515_v24 = vand.u32 4294901760, %v237_v17  ;;  %v4517_v25 = vand.u32 4294901760, %v240_v18  ;;  %v243_v26 = vsel %vm223_vm1, %v196_v14, 0  ;;  %v202_v0 = vld [vmem:[%s4474_s28 + $0x60] sm:$0xff]  ;;  %v203_v1 = vld [vmem:[%s4474_s28 + $0x68] sm:$0xff]  ;;  %v204_v13 = vld [vmem:[%s4474_s28 + $0x70] sm:$0xff]  ;;  %p4319_p12 = scmp.ne.s32.totalorder %s6463_s8, %s4318_s20 }
  0x20   : > { %v4521_v28 = vand.u32 4294901760, %v742_v20  ;;  %3709 = vmatprep.subr.mxu0 %v742_v20  ;;  %v6531_v29 = vand.u32 4294901760, %v4506_v21  ;;  %v4525_v30 = vsub.f32 %v234_v16, %v4509_v22  ;;  %v6530_v31 = vand.u32 4294901760, %v4513_v23  ;;  %s4322_s24 = sshll.u32 %s4396_s23, 4  ;;  %s4323_s24 = int_to_ptr.vmem [resolvable:$false] %s4322_s24 }
  0x21   : > { %v6533_v27 = vand.u32 4294901760, %v4502_v19  ;;  %v4529_v32 = vsub.f32 %v237_v17, %v4515_v24  ;;  %v4532_v33 = vsub.f32 %v240_v18, %v4517_v25  ;;  %v4534_v34 = vand.u32 4294901760, %v243_v26  ;;  %p4320_p13 = pnand %p4319_p12, %p4454_p4  ;;  %s4324_s25 = scalar_lea.vmem %s4323_s24, 16384 }
  0x22   : > { %v744_v36 = vsub.f32 %v742_v20, %v4521_v28  ;;  %v403_v37 = vsub.f32 %v4506_v21, %v6531_v29  ;;  %v6528_v38 = vand.u32 4294901760, %v4525_v30  ;;  %v413_v39 = vsub.f32 %v4513_v23, %v6530_v31  ;;  %p4325_p1 = scmp.lt.s32.totalorder %s6463_s8, %s4323_s24  ;;  %p4326_p2 = scmp.lt.s32.totalorder %s4324_s25, %s4318_s20 }
  0x23   : > { %6568 = vst [vmem:[#allocation5_spill] sm:$0xff] %v4534_v34  ;;  %v393_v35 = vsub.f32 %v4502_v19, %v6533_v27  ;;  %v6527_v40 = vand.u32 4294901760, %v4529_v32  ;;  %v6526_v41 = vand.u32 4294901760, %v4532_v33  ;;  %v4550_v42 = vsub.f32 %v243_v26, %v4534_v34  ;;  %v216_v27 = vld [vmem:[%s4474_s28 + $0xd0] sm:$0xff]  ;;  %p4321_p0 = pneg %p4320_p13 }
  0x24   : > { %v745_v47 = vand.u32 4294901760, %v744_v36  ;;  %v404_v48 = vand.u32 4294901760, %v403_v37  ;;  %v423_v49 = vsub.f32 %v4525_v30, %v6528_v38  ;;  %v414_v50 = vand.u32 4294901760, %v413_v39  ;;  %p4327_p3 = por %p4326_p2, %p4325_p1 }
  0x25   : > { %v394_v46 = vand.u32 4294901760, %v393_v35  ;;  %v433_v51 = vsub.f32 %v4529_v32, %v6527_v40  ;;  %v443_v52 = vsub.f32 %v4532_v33, %v6526_v41  ;;  %v6525_v53 = vand.u32 4294901760, %v4550_v42 }
  0x26   : > { %3659 = vmatprep.subr.mxu1 %v745_v47  ;;  %v424_v56 = vand.u32 4294901760, %v423_v49  ;;  %v246_v57 = vsel %vm223_vm1, %v197_v43, 0  ;;  %v249_v58 = vsel %vm223_vm1, %v198_v44, 0  ;;  %v252_v59 = vsel %vm223_vm1, %v199_v45, 0  ;;  %p4328_p5 = pnand %p4327_p3, %p4321_p0 }
  0x27   : > { %3611 = vmatprep.mubr.f32.mxu0 %v394_v46  ;;  %3660 = vmatpush3.msra.mxu1 %v745_v47  ;;  %v434_v60 = vand.u32 4294901760, %v433_v51  ;;  %v444_v61 = vand.u32 4294901760, %v443_v52  ;;  %v453_v62 = vsub.f32 %v4550_v42, %v6525_v53  ;;  %v4573_v63 = vand.u32 4294901760, %v246_v57  ;;  %v205_v52 = vld [vmem:[%s4474_s28 + $0x78] sm:$0xff] }
  0x28   : > { %3612 = vmatmul.mubr.f32.vlgmr.msra.gmra.mxu0 %v404_v48  ;;  %3662 = vmatmul.mubr.f32.vlgmr.msra.gmra.mxu1 %v4490_v11  ;;  %v4578_v2 = vand.u32 4294901760, %v249_v58  ;;  %v4580_v3 = vand.u32 4294901760, %v252_v59  ;;  %v255_v4 = vsel %vm223_vm1, %v200_v54, 0  ;;  %v258_v5 = vsel %vm223_vm1, %v201_v55, 0  ;;  %v213_v53 = vld [vmem:[%s4474_s28 + $0xb8] sm:$0xff] }
  0x29   : > { %6569 = vst [vmem:[#allocation6_spill] sm:$0xff] %v4573_v63  ;;  %3710 = vmatpush3.msra.mxu0 %v742_v20  ;;  %3759 = vmatprep.subr.mxu1 %v4486_v9  ;;  %v454_v6 = vand.u32 4294901760, %v453_v62  ;;  %v4586_v7 = vsub.f32 %v246_v57, %v4573_v63  ;;  %v4588_v8 = vand.u32 4294901760, %v255_v4  ;;  %v4590_v12 = vand.u32 4294901760, %v258_v5  ;;  %v208_v62 = vld [vmem:[%s4474_s28 + $0x90] sm:$0xff] }
  0x2a   : > { %6570 = vst [vmem:[#allocation7_spill] sm:$0xff] %v4578_v2  ;;  %6571 = vst [vmem:[#allocation8_spill] sm:$0xff] %v4580_v3  ;;  %3614 = vmatprep.mubr.f32.mxu0 %v414_v50  ;;  %3760 = vmatpush3.msra.mxu1 %v4486_v9  ;;  %v4596_v14 = vsub.f32 %v249_v58, %v4578_v2  ;;  %v4599_v16 = vsub.f32 %v252_v59, %v4580_v3  ;;  %v261_v17 = vsel %vm223_vm1, %v202_v0, 0 }
  0x2b   : > { %6572 = vst [vmem:[#allocation9_spill] sm:$0xff] %v4588_v8  ;;  %6573 = vst [vmem:[#allocation10_spill] sm:$0xff] %v4590_v12  ;;  %3664 = vmatprep.mubr.f32.mxu1 %v4495_v15  ;;  %v264_v18 = vsel %vm223_vm1, %v203_v1, 0  ;;  %v6522_v20 = vand.u32 4294901760, %v4586_v7  ;;  %v4605_v26 = vsub.f32 %v255_v4, %v4588_v8  ;;  %v4608_v35 = vsub.f32 %v258_v5, %v4590_v12 }
  0x2c   : > { %3615 = vmatmul.mubr.f32.gmra.mxu0 %v424_v56  ;;  %v4610_v36 = vand.u32 4294901760, %v261_v17  ;;  %3809 = vmatprep.subr.mxu0 %v4521_v28  ;;  %v6521_v37 = vand.u32 4294901760, %v4596_v14  ;;  %v6519_v39 = vand.u32 4294901760, %v4599_v16  ;;  %v4616_v43 = vand.u32 4294901760, %v264_v18  ;;  %v206_v56 = vld [vmem:[%s4474_s28 + $0x80] sm:$0xff] }
  0x2d   : > { %3665 = vmatmul.mubr.f32.gmra.mxu1 %v4509_v22  ;;  %3617 = vmatprep.mubr.f32.mxu0 %v434_v60  ;;  %v267_v44 = vsel %vm223_vm1, %v204_v13, 0  ;;  %v463_v45 = vsub.f32 %v4586_v7, %v6522_v20  ;;  %v6518_v46 = vand.u32 4294901760, %v4605_v26  ;;  %v6517_v47 = vand.u32 4294901760, %v4608_v35 }
  0x2e   : > { %6574 = vst [vmem:[#allocation11_spill] sm:$0xff] %v4610_v36  ;;  %6575 = vst [vmem:[#allocation12_spill] sm:$0xff] %v4616_v43  ;;  %3667 = vmatprep.mubr.f32.mxu1 %v4515_v24  ;;  %v4626_v48 = vsub.f32 %v261_v17, %v4610_v36  ;;  %3859 = vmatprep.subr.mxu1 %v4486_v9  ;;  %v473_v49 = vsub.f32 %v4596_v14, %v6521_v37  ;;  %v4635_v51 = vand.u32 4294901760, %v267_v44  ;;  %v209_v17 = vld [vmem:[%s4474_s28 + $0x98] sm:$0xff]  ;;  %v212_v37 = vld [vmem:[%s4474_s28 + $0xb0] sm:$0xff] }
  0x2f   : > { %v4633_v50 = vsub.f32 %v264_v18, %v4616_v43  ;;  %v464_v54 = vand.u32 4294901760, %v463_v45  ;;  %v483_v55 = vsub.f32 %v4599_v16, %v6519_v39  ;;  %v493_v58 = vsub.f32 %v4605_v26, %v6518_v46  ;;  %v210_v18 = vld [vmem:[%s4474_s28 + $0xa0] sm:$0xff] }
  0x30   : > { %6576 = vst [vmem:[#allocation13_spill] sm:$0xff] %v4635_v51  ;;  %3618 = vmatmul.mubr.f32.gmra.mxu0 %v444_v61  ;;  %v474_v57 = vand.u32 4294901760, %v473_v49  ;;  %v6520_v59 = vand.u32 4294901760, %v4626_v48  ;;  %v4648_v60 = vsub.f32 %v267_v44, %v4635_v51  ;;  %v207_v61 = vld [vmem:[%s4474_s28 + $0x88] sm:$0xff]  ;;  %v503_v0 = vsub.f32 %v4608_v35, %v6517_v47 }
  0x31   : > { %3668 = vmatmul.mubr.f32.gmra.mxu1 %v4517_v25  ;;  %3620 = vmatprep.mubr.f32.mxu0 %v454_v6  ;;  %v270_v1 = vsel %vm223_vm1, %v205_v52, 0  ;;  %v6523_v4 = vand.u32 4294901760, %v4633_v50  ;;  %v273_v13 = vsel %vm223_vm1, %v206_v56, 0  ;;  %v484_v44 = vand.u32 4294901760, %v483_v55  ;;  %v211_v55 = vld [vmem:[%s4474_s28 + $0xa8] sm:$0xff] }
  0x32   : > { %3670 = vmatprep.mubr.f32.mxu1 %v4534_v34  ;;  %v6524_v5 = vand.u32 4294901760, %v4648_v60  ;;  %v4659_v6 = vand.u32 4294901760, %v270_v1  ;;  %v4664_v45 = vand.u32 4294901760, %v273_v13  ;;  %v276_v49 = vsel %vm223_vm1, %v207_v61, 0 }
  0x33   : > { %v279_v47 = vsel %vm223_vm1, %v208_v62, 0  ;;  %v494_v52 = vand.u32 4294901760, %v493_v58  ;;  %v513_v46 = vsub.f32 %v4626_v48, %v6520_v59  ;;  %v285_v58 = vsel %vm223_vm1, %v210_v18, 0 }
  0x34   : > { %6577 = vst [vmem:[#allocation14_spill] sm:$0xff] %v4659_v6  ;;  %3621 = vmatmul.mubr.f32.gmra.mxu0 %v464_v54  ;;  %6578 = vst [vmem:[#allocation15_spill] sm:$0xff] %v4664_v45  ;;  %v4673_v56 = vsub.f32 %v270_v1, %v4659_v6  ;;  %v4675_v54 = vand.u32 4294901760, %v276_v49  ;;  %v4680_v61 = vsub.f32 %v273_v13, %v4664_v45  ;;  %v4682_v62 = vand.u32 4294901760, %v279_v47 }
  0x35   : > { %3671 = vmatmul.mubr.f32.gmra.mxu1 %v4573_v63  ;;  %3623 = vmatprep.mubr.f32.mxu0 %v474_v57  ;;  %v282_v57 = vsel %vm223_vm1, %v209_v17, 0  ;;  %v504_v39 = vand.u32 4294901760, %v503_v0  ;;  %v523_v1 = vsub.f32 %v4633_v50, %v6523_v4  ;;  %v533_v59 = vsub.f32 %v4648_v60, %v6524_v5 }
  0x36   : > { %6579 = vst [vmem:[#allocation16_spill] sm:$0xff] %v4675_v54  ;;  %3673 = vmatprep.mubr.f32.mxu1 %v4578_v2  ;;  %6580 = vst [vmem:[#allocation17_spill] sm:$0xff] %v4682_v62  ;;  %v6529_v13 = vand.u32 4294901760, %v4673_v56  ;;  %v4695_v20 = vsub.f32 %v276_v49, %v4675_v54  ;;  %v4697_v17 = vand.u32 4294901760, %v282_v57  ;;  %v288_v0 = vsel %vm223_vm1, %v211_v55, 0 }
  0x37   : > { %v514_v18 = vand.u32 4294901760, %v513_v46  ;;  %v6532_v4 = vand.u32 4294901760, %v4680_v61  ;;  %v4703_v5 = vsub.f32 %v279_v47, %v4682_v62  ;;  %v291_v49 = vsel %vm223_vm1, %v212_v37, 0  ;;  %v214_v37 = vld [vmem:[%s4474_s28 + $0xc0] sm:$0xff] }
  0x38   : > { %3624 = vmatmul.mubr.f32.gmra.mxu0 %v484_v44  ;;  %v4705_v44 = vand.u32 4294901760, %v285_v58  ;;  %v524_v41 = vand.u32 4294901760, %v523_v1  ;;  %v534_v55 = vand.u32 4294901760, %v533_v59  ;;  %v4710_v40 = vand.u32 4294901760, %v288_v0 }
  0x39   : > { %3674 = vmatmul.mubr.f32.gmra.mxu1 %v4580_v3  ;;  %3626 = vmatprep.mubr.f32.mxu0 %v494_v52  ;;  %v543_v46 = vsub.f32 %v4673_v56, %v6529_v13  ;;  %v6536_v47 = vand.u32 4294901760, %v4695_v20  ;;  %v4717_v52 = vsub.f32 %v282_v57, %v4697_v17  ;;  %v4719_v38 = vand.u32 4294901760, %v291_v49  ;;  %v215_v57 = vld [vmem:[%s4474_s28 + $0xc8] sm:$0xff] }
  0x3a   : > { %6581 = vst [vmem:[#allocation18_spill] sm:$0xff] %v4705_v44  ;;  %3676 = vmatprep.mubr.f32.mxu1 %v4588_v8  ;;  %v4728_v1 = vsub.f32 %v285_v58, %v4705_v44  ;;  %v294_v13 = vsel %vm223_vm1, %v213_v53, 0  ;;  %v4734_v31 = vsub.f32 %v288_v0, %v4710_v40 }
  0x3b   : > { %v4737_v29 = vsub.f32 %v291_v49, %v4719_v38  ;;  %v544_v58 = vand.u32 4294901760, %v543_v46  ;;  %v563_v53 = vsub.f32 %v4695_v20, %v6536_v47  ;;  %v300_v46 = vsel %vm223_vm1, %v215_v57, 0 }
  0x3c   : > { %3627 = vmatmul.mubr.f32.gmra.mxu0 %v504_v39  ;;  %v553_v39 = vsub.f32 %v4680_v61, %v6532_v4  ;;  %v297_v4 = vsel %vm223_vm1, %v214_v37, 0  ;;  %v303_v47 = vsel %vm223_vm1, %v216_v27, 0  ;;  %v4770_v27 = vand.u32 4294901760, %v300_v46 }
  0x3d   : > { %3677 = vmatmul.mubr.f32.gmra.mxu1 %v4590_v12  ;;  %3629 = vmatprep.mubr.f32.mxu0 %v514_v18  ;;  %v4739_v18 = vand.u32 4294901760, %v294_v13  ;;  %v4747_v0 = vand.u32 4294901760, %v297_v4  ;;  %v217_v12 = vld [vmem:[%s4474_s28 + $0xd8] sm:$0xff] }
  0x3e   : > { %3679 = vmatprep.mubr.f32.mxu1 %v4610_v36  ;;  %v554_v49 = vand.u32 4294901760, %v553_v39  ;;  %v6582_v36 = vand.u32 4294901760, %v4703_v5  ;;  %v218_v39 = vld [vmem:[%s4474_s28 + $0xe0] sm:$0xff] }
  0x40   : > { %3630 = vmatmul.mubr.f32.gmra.mxu0 %v524_v41  ;;  %v573_v37 = vsub.f32 %v4703_v5, %v6582_v36  ;;  %v564_v36 = vand.u32 4294901760, %v563_v53  ;;  %v6583_v41 = vand.u32 4294901760, %v4717_v52  ;;  %v306_v53 = vsel %vm223_vm1, %v217_v12, 0 }
  0x41   : > { %3680 = vmatmul.mubr.f32.gmra.mxu1 %v4616_v43  ;;  %3632 = vmatprep.mubr.f32.mxu0 %v534_v55  ;;  %v4761_v55 = vsub.f32 %v294_v13, %v4739_v18  ;;  %v6584_v13 = vand.u32 4294901760, %v4728_v1  ;;  %v6585_v43 = vand.u32 4294901760, %v4734_v31 }
  0x42   : > { %3682 = vmatprep.mubr.f32.mxu1 %v4635_v51  ;;  %v583_v57 = vsub.f32 %v4717_v52, %v6583_v41  ;;  %v4768_v51 = vsub.f32 %v297_v4, %v4747_v0  ;;  %v574_v8 = vand.u32 4294901760, %v573_v37  ;;  %v309_v41 = vsel %vm223_vm1, %v218_v39, 0  ;;  %v219_v4 = vld [vmem:[%s4474_s28 + $0xe8] sm:$0xff] }
  0x43   : > { %v593_v59 = vsub.f32 %v4728_v1, %v6584_v13  ;;  %v603_v3 = vsub.f32 %v4734_v31, %v6585_v43  ;;  %v4794_v39 = vand.u32 4294901760, %v306_v53  ;;  %v312_v13 = vsel %vm223_vm1, %v219_v4, 0 }
  0x44   : > { %3633 = vmatmul.mubr.f32.gmra.mxu0 %v544_v58  ;;  %v4776_v58 = vand.u32 4294901760, %v303_v47  ;;  %v584_v2 = vand.u32 4294901760, %v583_v57  ;;  %v221_v57 = vld [vmem:[%s4474_s28 + $0xf8] sm:$0xff]  ;;  %v6587_v34 = vand.u32 4294901760, %v4761_v55 }
  0x45   : > { %3683 = vmatmul.mubr.f32.gmra.mxu1 %v4659_v6  ;;  %3635 = vmatprep.mubr.f32.mxu0 %v554_v49  ;;  %v6586_v49 = vand.u32 4294901760, %v4737_v29  ;;  %v220_v6 = vld [vmem:[%s4474_s28 + $0xf0] sm:$0xff]  ;;  %v594_v43 = vand.u32 4294901760, %v593_v59  ;;  %v4814_v4 = vsub.f32 %v306_v53, %v4794_v39 }
  0x46   : > { %3685 = vmatprep.mubr.f32.mxu1 %v4664_v45  ;;  %v4792_v45 = vsub.f32 %v300_v46, %v4770_v27  ;;  %v4798_v63 = vsub.f32 %v303_v47, %v4776_v58  ;;  %v604_v46 = vand.u32 4294901760, %v603_v3 }
  0x47   : > { %v613_v37 = vsub.f32 %v4737_v29, %v6586_v49  ;;  %v4800_v49 = vand.u32 4294901760, %v309_v41 }
  0x48   : > { %3636 = vmatmul.mubr.f32.gmra.mxu0 %v564_v36  ;;  %v315_v36 = vsel %vm223_vm1, %v220_v6, 0  ;;  %v6563_v59 = vand.u32 4294901760, %v4792_v45 }
  0x49   : > { %3686 = vmatmul.mubr.f32.gmra.mxu1 %v4675_v54  ;;  %3638 = vmatprep.mubr.f32.mxu0 %v574_v8  ;;  %v614_v12 = vand.u32 4294901760, %v613_v37  ;;  %v623_v54 = vsub.f32 %v4761_v55, %v6587_v34  ;;  %v6588_v8 = vand.u32 4294901760, %v4768_v51  ;;  %v4821_v6 = vsub.f32 %v309_v41, %v4800_v49 }
  0x4a   : > { %3688 = vmatprep.mubr.f32.mxu1 %v4682_v62  ;;  %v4816_v62 = vand.u32 4294901760, %v312_v13  ;;  %v4823_v34 = vand.u32 4294901760, %v315_v36  ;;  %v643_v53 = vsub.f32 %v4792_v45, %v6563_v59 }
  0x4b   : > { %v633_v47 = vsub.f32 %v4768_v51, %v6588_v8  ;;  %v624_v37 = vand.u32 4294901760, %v623_v54  ;;  %v6564_v8 = vand.u32 4294901760, %v4814_v4 }
  0x4c   : > { %3639 = vmatmul.mubr.f32.gmra.mxu0 %v584_v2  ;;  %v318_v2 = vsel %vm223_vm1, %v221_v57, 0  ;;  %v6589_v57 = vand.u32 4294901760, %v4798_v63 }
  0x4d   : > { %3689 = vmatmul.mubr.f32.gmra.mxu1 %v4697_v17  ;;  %3641 = vmatprep.mubr.f32.mxu0 %v594_v43  ;;  %v4832_v43 = vsub.f32 %v312_v13, %v4816_v62  ;;  %v4834_v3 = vand.u32 4294901760, %v318_v2  ;;  %v634_v41 = vand.u32 4294901760, %v633_v47  ;;  %v644_v13 = vand.u32 4294901760, %v643_v53 }
  0x4e   : > { %3691 = vmatprep.mubr.f32.mxu1 %v4705_v44  ;;  %v653_v54 = vsub.f32 %v4798_v63, %v6589_v57  ;;  %v4842_v44 = vsub.f32 %v315_v36, %v4823_v34  ;;  %v663_v59 = vsub.f32 %v4814_v4, %v6564_v8 }
  0x4f   : > { %v4850_v47 = vsub.f32 %v318_v2, %v4834_v3 }
  0x50   : > { %3642 = vmatmul.mubr.f32.gmra.mxu0 %v604_v46  ;;  %v6565_v46 = vand.u32 4294901760, %v4821_v6  ;;  %v654_v57 = vand.u32 4294901760, %v653_v54  ;;  %v664_v53 = vand.u32 4294901760, %v663_v59 }
  0x51   : > { %3692 = vmatmul.mubr.f32.gmra.mxu1 %v4710_v40  ;;  %3644 = vmatprep.mubr.f32.mxu0 %v614_v12  ;;  %v682_v12 = vand.u32 4294901760, %v4832_v43  ;;  %v702_v2 = vand.u32 4294901760, %v4850_v47 }
  0x52   : > { %3694 = vmatprep.mubr.f32.mxu1 %v4719_v38  ;;  %v673_v36 = vsub.f32 %v4821_v6, %v6565_v46 }
  0x53   : > { %v683_v8 = vsub.f32 %v4832_v43, %v682_v12  ;;  %v703_v59 = vsub.f32 %v4850_v47, %v702_v2 }
  0x54   : > { %3645 = vmatmul.mubr.f32.gmra.mxu0 %v624_v37  ;;  %v692_v37 = vand.u32 4294901760, %v4842_v44 }
  0x55   : > { %3695 = vmatmul.mubr.f32.gmra.mxu1 %v4739_v18  ;;  %3647 = vmatprep.mubr.f32.mxu0 %v634_v41  ;;  %v674_v41 = vand.u32 4294901760, %v673_v36  ;;  %v684_v46 = vand.u32 4294901760, %v683_v8  ;;  %v6590_v8 = vand.u32 4294901760, %v4502_v19  ;;  %v6592_v36 = vand.u32 4294901760, %v4513_v23 }
  0x56   : > { %3697 = vmatprep.mubr.f32.mxu1 %v4747_v0  ;;  %v693_v54 = vsub.f32 %v4842_v44, %v692_v37 }
  0x58   : > { %3648 = vmatmul.mubr.f32.gmra.mxu0 %v644_v13  ;;  %v694_v13 = vand.u32 4294901760, %v693_v54 }
  0x59   : > { %3698 = vmatmul.mubr.f32.gmra.mxu1 %v4770_v27  ;;  %3650 = vmatprep.mubr.f32.mxu0 %v654_v57  ;;  %v704_v57 = vand.u32 4294901760, %v703_v59 }
  0x5a   : > { %3700 = vmatprep.mubr.f32.mxu1 %v4776_v58 }
  0x5c   : > { %3651 = vmatmul.mubr.f32.gmra.mxu0 %v664_v53  ;;  %v6593_v53 = vand.u32 4294901760, %v4525_v30 }
  0x5d   : > { %3701 = vmatmul.mubr.f32.gmra.mxu1 %v4794_v39  ;;  %3653 = vmatprep.mubr.f32.mxu0 %v674_v41 }
  0x5e   : > { %3703 = vmatprep.mubr.f32.mxu1 %v4800_v49 }
  0x60   : > { %3654 = vmatmul.mubr.f32.gmra.mxu0 %v684_v46  ;;  %v6591_v46 = vand.u32 4294901760, %v4506_v21 }
  0x61   : > { %3704 = vmatmul.mubr.f32.gmra.mxu1 %v4816_v62  ;;  %3656 = vmatprep.mubr.f32.mxu0 %v694_v13 }
  0x62   : > { %3706 = vmatprep.mubr.f32.mxu1 %v4823_v34 }
  0x64   : > { %3657 = vmatmul.mubr.f32.gmra.mxu0 %v704_v57 }
  0x65   : > { %3707 = vmatmul.mubr.f32.gmra.mxu1 %v4834_v3  ;;  %3711 = vmatprep.mubr.f32.mxu0 %v4502_v19  ;;  %v6594_v19 = vand.u32 4294901760, %v4529_v32 }
  0x66   : > { %3761 = vmatprep.mubr.f32.mxu1 %v6590_v8 }
  0x68   : > { %3712 = vmatmul.mubr.f32.vlgmr.msra.gmra.mxu0 %v4506_v21  ;;  %v6595_v21 = vand.u32 4294901760, %v4532_v33 }
  0x69   : > { %3810 = vmatpush3.msra.mxu0 %v4521_v28  ;;  %3762 = vmatmul.mubr.f32.vlgmr.msra.gmra.mxu1 %v6591_v46  ;;  %v6598_v28 = vand.u32 4294901760, %v4596_v14 }
  0x6a   : > { %3860 = vmatpush3.msra.mxu1 %v4486_v9  ;;  %3714 = vmatprep.mubr.f32.mxu0 %v4513_v23  ;;  %v6596_v9 = vand.u32 4294901760, %v4550_v42  ;;  %v6597_v23 = vand.u32 4294901760, %v4586_v7 }
  0x6b   : > { %3764 = vmatprep.mubr.f32.mxu1 %v6592_v36 }
  0x6c   : > { %3715 = vmatmul.mubr.f32.gmra.mxu0 %v4525_v30  ;;  %v6599_v30 = vand.u32 4294901760, %v4599_v16 }
  0x6d   : > { %3765 = vmatmul.mubr.f32.gmra.mxu1 %v6593_v53  ;;  %3717 = vmatprep.mubr.f32.mxu0 %v4529_v32  ;;  %v6600_v32 = vand.u32 4294901760, %v4605_v26 }
  0x6e   : > { %3767 = vmatprep.mubr.f32.mxu1 %v6594_v19 }
  0x70   : > { %3718 = vmatmul.mubr.f32.gmra.mxu0 %v4532_v33  ;;  %v6601_v33 = vand.u32 4294901760, %v4608_v35 }
  0x71   : > { %3768 = vmatmul.mubr.f32.gmra.mxu1 %v6595_v21  ;;  %3720 = vmatprep.mubr.f32.mxu0 %v4550_v42  ;;  %v6602_v42 = vand.u32 4294901760, %v4626_v48 }
  0x72   : > { %3770 = vmatprep.mubr.f32.mxu1 %v6596_v9 }
  0x74   : > { %3721 = vmatmul.mubr.f32.gmra.mxu0 %v4586_v7  ;;  %v6603_v7 = vand.u32 4294901760, %v4633_v50 }
  0x75   : > { %3771 = vmatmul.mubr.f32.gmra.mxu1 %v6597_v23  ;;  %3723 = vmatprep.mubr.f32.mxu0 %v4596_v14  ;;  %v6604_v14 = vand.u32 4294901760, %v4648_v60 }
  0x76   : > { %3773 = vmatprep.mubr.f32.mxu1 %v6598_v28 }
  0x78   : > { %3724 = vmatmul.mubr.f32.gmra.mxu0 %v4599_v16  ;;  %v6605_v16 = vand.u32 4294901760, %v4673_v56 }
  0x79   : > { %3774 = vmatmul.mubr.f32.gmra.mxu1 %v6599_v30  ;;  %3726 = vmatprep.mubr.f32.mxu0 %v4605_v26  ;;  %v6606_v26 = vand.u32 4294901760, %v4680_v61 }
  0x7a   : > { %3776 = vmatprep.mubr.f32.mxu1 %v6600_v32 }
  0x7c   : > { %3727 = vmatmul.mubr.f32.gmra.mxu0 %v4608_v35  ;;  %v6607_v35 = vand.u32 4294901760, %v4695_v20 }
  0x7d   : > { %3777 = vmatmul.mubr.f32.gmra.mxu1 %v6601_v33  ;;  %3729 = vmatprep.mubr.f32.mxu0 %v4626_v48  ;;  %v6608_v48 = vand.u32 4294901760, %v4703_v5 }
  0x7e   : > { %3779 = vmatprep.mubr.f32.mxu1 %v6602_v42 }
  0x80   : > { %3730 = vmatmul.mubr.f32.gmra.mxu0 %v4633_v50  ;;  %v6609_v50 = vand.u32 4294901760, %v4717_v52 }
  0x81   : > { %3780 = vmatmul.mubr.f32.gmra.mxu1 %v6603_v7  ;;  %3732 = vmatprep.mubr.f32.mxu0 %v4648_v60  ;;  %v6610_v60 = vand.u32 4294901760, %v4728_v1 }
  0x82   : > { %3782 = vmatprep.mubr.f32.mxu1 %v6604_v14 }
  0x84   : > { %3733 = vmatmul.mubr.f32.gmra.mxu0 %v4673_v56  ;;  %v6613_v56 = vand.u32 4294901760, %v4761_v55 }
  0x85   : > { %3783 = vmatmul.mubr.f32.gmra.mxu1 %v6605_v16  ;;  %3735 = vmatprep.mubr.f32.mxu0 %v4680_v61  ;;  %v6614_v61 = vand.u32 4294901760, %v4768_v51 }
  0x86   : > { %3785 = vmatprep.mubr.f32.mxu1 %v6606_v26 }
  0x88   : > { %3736 = vmatmul.mubr.f32.gmra.mxu0 %v4695_v20  ;;  %v6611_v20 = vand.u32 4294901760, %v4734_v31 }
  0x89   : > { %3786 = vmatmul.mubr.f32.gmra.mxu1 %v6607_v35  ;;  %3738 = vmatprep.mubr.f32.mxu0 %v4703_v5  ;;  %v6612_v5 = vand.u32 4294901760, %v4737_v29 }
  0x8a   : > { %3788 = vmatprep.mubr.f32.mxu1 %v6608_v48 }
  0x8c   : > { %3739 = vmatmul.mubr.f32.gmra.mxu0 %v4717_v52  ;;  %v6617_v52 = vand.u32 4294901760, %v4814_v4 }
  0x8d   : > { %3789 = vmatmul.mubr.f32.gmra.mxu1 %v6609_v50  ;;  %3741 = vmatprep.mubr.f32.mxu0 %v4728_v1  ;;  %v6628_v1 = vld [vmem:[#allocation14_spill] sm:$0xff] }
  0x8e   : > { %3791 = vmatprep.mubr.f32.mxu1 %v6610_v60 }
  0x90   : > { %3742 = vmatmul.mubr.f32.gmra.mxu0 %v4734_v31  ;;  %v6615_v31 = vand.u32 4294901760, %v4792_v45 }
  0x91   : > { %3792 = vmatmul.mubr.f32.gmra.mxu1 %v6611_v20  ;;  %3744 = vmatprep.mubr.f32.mxu0 %v4737_v29  ;;  %v6616_v29 = vand.u32 4294901760, %v4798_v63 }
  0x92   : > { %3794 = vmatprep.mubr.f32.mxu1 %v6612_v5 }
  0x94   : > { %3745 = vmatmul.mubr.f32.gmra.mxu0 %v4761_v55  ;;  %v6629_v55 = vld [vmem:[#allocation15_spill] sm:$0xff] }
  0x95   : > { %3795 = vmatmul.mubr.f32.gmra.mxu1 %v6613_v56  ;;  %3747 = vmatprep.mubr.f32.mxu0 %v4768_v51  ;;  %v6618_v51 = vand.u32 4294901760, %v4821_v6 }
  0x96   : > { %3797 = vmatprep.mubr.f32.mxu1 %v6614_v61 }
  0x98   : > { %3748 = vmatmul.mubr.f32.gmra.mxu0 %v4792_v45  ;;  %v6626_v45 = vld [vmem:[#allocation12_spill] sm:$0xff] }
  0x99   : > { %3798 = vmatmul.mubr.f32.gmra.mxu1 %v6615_v31  ;;  %3750 = vmatprep.mubr.f32.mxu0 %v4798_v63  ;;  %v6625_v63 = vld [vmem:[#allocation11_spill] sm:$0xff] }
  0x9a   : > { %3800 = vmatprep.mubr.f32.mxu1 %v6616_v29 }
  0x9c   : > { %3751 = vmatmul.mubr.f32.gmra.mxu0 %v4814_v4  ;;  %v6630_v4 = vld [vmem:[#allocation16_spill] sm:$0xff] }
  0x9d   : > { %3801 = vmatmul.mubr.f32.gmra.mxu1 %v6617_v52  ;;  %3753 = vmatprep.mubr.f32.mxu0 %v4821_v6  ;;  %v6631_v6 = vld [vmem:[#allocation17_spill] sm:$0xff] }
  0x9e   : > { %3803 = vmatprep.mubr.f32.mxu1 %v6618_v51 }
  0xa0   : > { %3754 = vmatmul.mubr.f32.gmra.mxu0 %v4832_v43  ;;  %v6632_v43 = vld [vmem:[#allocation18_spill] sm:$0xff] }
  0xa1   : > { %3804 = vmatmul.mubr.f32.gmra.mxu1 %v682_v12  ;;  %3756 = vmatprep.mubr.f32.mxu0 %v4842_v44  ;;  %v6627_v44 = vld [vmem:[#allocation13_spill] sm:$0xff] }
  0xa2   : > { %3806 = vmatprep.mubr.f32.mxu1 %v692_v37 }
  0xa4   : > { %3757 = vmatmul.mubr.f32.gmra.mxu0 %v4850_v47 }
  0xa5   : > { %3807 = vmatmul.mubr.f32.gmra.mxu1 %v702_v2  ;;  %3811 = vmatprep.mubr.f32.mxu0 %v4488_v10 }
  0xa6   : > { %3861 = vmatprep.mubr.f32.mxu1 %v4488_v10  ;;  %v6619_v10 = vld [vmem:[#allocation5_spill] sm:$0xff] }
  0xa8   : > { %3812 = vmatmul.mubr.f32.vlgmr.msra.gmra.mxu0 %v4490_v11 }
  0xa9   : > { %3862 = vmatmul.mubr.f32.vlgmr.msra.gmra.mxu1 %v4490_v11  ;;  %3814 = vmatprep.mubr.f32.mxu0 %v4495_v15  ;;  %v6620_v11 = vld [vmem:[#allocation6_spill] sm:$0xff] }
  0xaa   : > { %3864 = vmatprep.mubr.f32.mxu1 %v4495_v15  ;;  %v6621_v15 = vld [vmem:[#allocation7_spill] sm:$0xff] }
  0xac   : > { %3815 = vmatmul.mubr.f32.gmra.mxu0 %v4509_v22 }
  0xad   : > { %3865 = vmatmul.mubr.f32.gmra.mxu1 %v4509_v22  ;;  %3817 = vmatprep.mubr.f32.mxu0 %v4515_v24  ;;  %v6622_v22 = vld [vmem:[#allocation8_spill] sm:$0xff] }
  0xae   : > { %3867 = vmatprep.mubr.f32.mxu1 %v4515_v24  ;;  %v6623_v24 = vld [vmem:[#allocation9_spill] sm:$0xff] }
  0xb0   : > { %3818 = vmatmul.mubr.f32.gmra.mxu0 %v4517_v25 }
  0xb1   : > { %3868 = vmatmul.mubr.f32.gmra.mxu1 %v4517_v25  ;;  %3820 = vmatprep.mubr.f32.mxu0 %v6619_v10  ;;  %v6624_v25 = vld [vmem:[#allocation10_spill] sm:$0xff] }
  0xb2   : > { %3870 = vmatprep.mubr.f32.mxu1 %v6619_v10 }
  0xb4   : > { %3821 = vmatmul.mubr.f32.gmra.mxu0 %v6620_v11 }
  0xb5   : > { %3871 = vmatmul.mubr.f32.gmra.mxu1 %v6620_v11  ;;  %3823 = vmatprep.mubr.f32.mxu0 %v6621_v15 }
  0xb6   : > { %3873 = vmatprep.mubr.f32.mxu1 %v6621_v15 }
  0xb8   : > { %3824 = vmatmul.mubr.f32.gmra.mxu0 %v6622_v22 }
  0xb9   : > { %3874 = vmatmul.mubr.f32.gmra.mxu1 %v6622_v22  ;;  %3826 = vmatprep.mubr.f32.mxu0 %v6623_v24 }
  0xba   : > { %3876 = vmatprep.mubr.f32.mxu1 %v6623_v24 }
  0xbc   : > { %3827 = vmatmul.mubr.f32.gmra.mxu0 %v6624_v25 }
  0xbd   : > { %3877 = vmatmul.mubr.f32.gmra.mxu1 %v6624_v25  ;;  %3829 = vmatprep.mubr.f32.mxu0 %v6625_v63 }
  0xbe   : > { %3879 = vmatprep.mubr.f32.mxu1 %v6625_v63 }
  0xc0   : > { %3830 = vmatmul.mubr.f32.gmra.mxu0 %v6626_v45 }
  0xc1   : > { %3880 = vmatmul.mubr.f32.gmra.mxu1 %v6626_v45  ;;  %3832 = vmatprep.mubr.f32.mxu0 %v6627_v44 }
  0xc2   : > { %3882 = vmatprep.mubr.f32.mxu1 %v6627_v44 }
  0xc4   : > { %3833 = vmatmul.mubr.f32.gmra.mxu0 %v6628_v1 }
  0xc5   : > { %3883 = vmatmul.mubr.f32.gmra.mxu1 %v6628_v1  ;;  %3835 = vmatprep.mubr.f32.mxu0 %v6629_v55 }
  0xc6   : > { %3885 = vmatprep.mubr.f32.mxu1 %v6629_v55 }
  0xc8   : > { %3836 = vmatmul.mubr.f32.gmra.mxu0 %v6630_v4 }
  0xc9   : > { %3886 = vmatmul.mubr.f32.gmra.mxu1 %v6630_v4  ;;  %3838 = vmatprep.mubr.f32.mxu0 %v6631_v6 }
  0xca   : > { %3888 = vmatprep.mubr.f32.mxu1 %v6631_v6 }
  0xcc   : > { %3839 = vmatmul.mubr.f32.gmra.mxu0 %v4697_v17 }
  0xcd   : > { %3889 = vmatmul.mubr.f32.gmra.mxu1 %v4697_v17  ;;  %3841 = vmatprep.mubr.f32.mxu0 %v6632_v43 }
  0xce   : > { %3891 = vmatprep.mubr.f32.mxu1 %v6632_v43 }
  0xd0   : > { %3842 = vmatmul.mubr.f32.gmra.mxu0 %v4710_v40 }
  0xd1   : > { %3892 = vmatmul.mubr.f32.gmra.mxu1 %v4710_v40  ;;  %3844 = vmatprep.mubr.f32.mxu0 %v4719_v38 }
  0xd2   : > { %3894 = vmatprep.mubr.f32.mxu1 %v4719_v38 }
  0xd4   : > { %3845 = vmatmul.mubr.f32.gmra.mxu0 %v4739_v18 }
  0xd5   : > { %3895 = vmatmul.mubr.f32.gmra.mxu1 %v4739_v18  ;;  %3847 = vmatprep.mubr.f32.mxu0 %v4747_v0 }
  0xd6   : > { %3897 = vmatprep.mubr.f32.mxu1 %v4747_v0 }
  0xd8   : > { %3848 = vmatmul.mubr.f32.gmra.mxu0 %v4770_v27 }
  0xd9   : > { %3898 = vmatmul.mubr.f32.gmra.mxu1 %v4770_v27  ;;  %3850 = vmatprep.mubr.f32.mxu0 %v4776_v58 }
  0xda   : > { %3900 = vmatprep.mubr.f32.mxu1 %v4776_v58 }
  0xdc   : > { %3851 = vmatmul.mubr.f32.gmra.mxu0 %v4794_v39 }
  0xdd   : > { %3901 = vmatmul.mubr.f32.gmra.mxu1 %v4794_v39  ;;  %3853 = vmatprep.mubr.f32.mxu0 %v4800_v49 }
  0xde   : > { %3903 = vmatprep.mubr.f32.mxu1 %v4800_v49 }
  0xe0   : > { %3854 = vmatmul.mubr.f32.gmra.mxu0 %v4816_v62 }
  0xe1   : > { %3904 = vmatmul.mubr.f32.gmra.mxu1 %v4816_v62  ;;  %3856 = vmatprep.mubr.f32.mxu0 %v4823_v34 }
  0xe2   : > { %3906 = vmatprep.mubr.f32.mxu1 %v4823_v34 }
  0xe4   : > { %3857 = vmatmul.mubr.f32.gmra.mxu0 %v4834_v3 }
  0xe5   : > { %3907 = vmatmul.mubr.f32.gmra.mxu1 %v4834_v3 }
  0xe8   : > { %v3613_v38 = vpop.f32.mrf.mxu0  ;;  %v3663_v40 = vpop.f32.mrf.mxu1 }
  0xe9   : > { %v5037_v17 = vadd.f32 %v3663_v40, %v3613_v38 }
  0xea   : > { %v396_v18 = vpop.f32.mrf.mxu0  ;;  %v782_v0 = vpop.f32.mrf.mxu1 }
  0xeb   : > { %v5039_v27 = vadd.f32 %v782_v0, %v396_v18 }
  0xec   : > { %v3616_v58 = vpop.f32.mrf.mxu0 }
  0xed   : > { %v3666_v39 = vpop.f32.mrf.mxu1 }
  0xee   : > { %v5041_v49 = vadd.f32 %v3666_v39, %v3616_v58  ;;  %v416_v62 = vpop.f32.mrf.mxu0 }
  0xef   : > { %v794_v12 = vpop.f32.mrf.mxu1 }
  0xf0   : > { %v5043_v47 = vadd.f32 %v794_v12, %v416_v62  ;;  %v3619_v34 = vpop.f32.mrf.mxu0 }
  0xf1   : > { %v3669_v37 = vpop.f32.mrf.mxu1 }
  0xf2   : > { %v5045_v2 = vadd.f32 %v3669_v37, %v3619_v34  ;;  %v436_v3 = vpop.f32.mrf.mxu0 }
  0xf3   : > { %v806_v41 = vpop.f32.mrf.mxu1 }
  0xf4   : > { %v5047_v54 = vadd.f32 %v806_v41, %v436_v3  ;;  %v3622_v59 = vpop.f32.mrf.mxu0 }
  0xf5   : > { %v3672_v13 = vpop.f32.mrf.mxu1 }
  0xf6   : > { %v5049_v57 = vadd.f32 %v3672_v13, %v3622_v59  ;;  %v456_v8 = vpop.f32.mrf.mxu0 }
  0xf7   : > { %v818_v46 = vpop.f32.mrf.mxu1 }
  0xf8   : > { %v5051_v36 = vadd.f32 %v818_v46, %v456_v8  ;;  %v3625_v53 = vpop.f32.mrf.mxu0 }
  0xf9   : > { %v3675_v19 = vpop.f32.mrf.mxu1 }
  0xfa   : > { %v5053_v21 = vadd.f32 %v3675_v19, %v3625_v53  ;;  %v476_v9 = vpop.f32.mrf.mxu0 }
  0xfb   : > { %v830_v23 = vpop.f32.mrf.mxu1 }
  0xfc   : > { %v5055_v28 = vadd.f32 %v830_v23, %v476_v9  ;;  %v3628_v30 = vpop.f32.mrf.mxu0 }
  0xfd   : > { %v3678_v32 = vpop.f32.mrf.mxu1 }
  0xfe   : > { %v5057_v33 = vadd.f32 %v3678_v32, %v3628_v30  ;;  %v496_v42 = vpop.f32.mrf.mxu0 }
  0xff   : > { %v842_v7 = vpop.f32.mrf.mxu1 }
 0x100   : > { %v5059_v14 = vadd.f32 %v842_v7, %v496_v42  ;;  %v3631_v16 = vpop.f32.mrf.mxu0 }
 0x101   : > { %v3681_v26 = vpop.f32.mrf.mxu1 }
 0x102   : > { %v5061_v35 = vadd.f32 %v3681_v26, %v3631_v16  ;;  %v516_v48 = vpop.f32.mrf.mxu0 }
 0x103   : > { %v854_v50 = vpop.f32.mrf.mxu1 }
 0x104   : > { %v5063_v60 = vadd.f32 %v854_v50, %v516_v48  ;;  %v3634_v20 = vpop.f32.mrf.mxu0 }
 0x105   : > { %v3684_v5 = vpop.f32.mrf.mxu1 }
 0x106   : > { %v5065_v56 = vadd.f32 %v3684_v5, %v3634_v20  ;;  %v536_v61 = vpop.f32.mrf.mxu0 }
 0x107   : > { %v866_v31 = vpop.f32.mrf.mxu1 }
 0x108   : > { %v5067_v29 = vadd.f32 %v866_v31, %v536_v61  ;;  %v3637_v52 = vpop.f32.mrf.mxu0 }
 0x109   : > { %v3687_v51 = vpop.f32.mrf.mxu1 }
 0x10a   : > { %v5069_v10 = vadd.f32 %v3687_v51, %v3637_v52  ;;  %v556_v11 = vpop.f32.mrf.mxu0 }
 0x10b   : > { %v878_v15 = vpop.f32.mrf.mxu1 }
 0x10c   : > { %v5071_v22 = vadd.f32 %v878_v15, %v556_v11  ;;  %v3640_v24 = vpop.f32.mrf.mxu0 }
 0x10d   : > { %v3690_v25 = vpop.f32.mrf.mxu1 }
 0x10e   : > { %v5073_v63 = vadd.f32 %v3690_v25, %v3640_v24  ;;  %v576_v45 = vpop.f32.mrf.mxu0 }
 0x10f   : > { %v890_v44 = vpop.f32.mrf.mxu1 }
 0x110   : > { %v5075_v1 = vadd.f32 %v890_v44, %v576_v45  ;;  %v3643_v55 = vpop.f32.mrf.mxu0 }
 0x111   : > { %v3693_v4 = vpop.f32.mrf.mxu1 }
 0x112   : > { %v5077_v6 = vadd.f32 %v3693_v4, %v3643_v55  ;;  %v596_v43 = vpop.f32.mrf.mxu0 }
 0x113   : > { %v902_v38 = vpop.f32.mrf.mxu1 }
 0x114   : > { %v5079_v40 = vadd.f32 %v902_v38, %v596_v43  ;;  %v3646_v18 = vpop.f32.mrf.mxu0 }
 0x115   : > { %v3696_v0 = vpop.f32.mrf.mxu1 }
 0x116   : > { %v5081_v58 = vadd.f32 %v3696_v0, %v3646_v18  ;;  %v616_v39 = vpop.f32.mrf.mxu0 }
 0x117   : > { %v914_v62 = vpop.f32.mrf.mxu1 }
 0x118   : > { %v5083_v12 = vadd.f32 %v914_v62, %v616_v39  ;;  %v3649_v34 = vpop.f32.mrf.mxu0 }
 0x119   : > { %v3699_v37 = vpop.f32.mrf.mxu1 }
 0x11a   : > { %v5085_v3 = vadd.f32 %v3699_v37, %v3649_v34  ;;  %v636_v41 = vpop.f32.mrf.mxu0 }
 0x11b   : > { %v926_v59 = vpop.f32.mrf.mxu1 }
 0x11c   : > { %v5087_v13 = vadd.f32 %v926_v59, %v636_v41  ;;  %v3652_v8 = vpop.f32.mrf.mxu0 }
 0x11d   : > { %v3702_v46 = vpop.f32.mrf.mxu1 }
 0x11e   : > { %v5089_v53 = vadd.f32 %v3702_v46, %v3652_v8  ;;  %v656_v19 = vpop.f32.mrf.mxu0 }
 0x11f   : > { %v938_v9 = vpop.f32.mrf.mxu1 }
 0x120   : > { %v5091_v23 = vadd.f32 %v938_v9, %v656_v19  ;;  %v3655_v30 = vpop.f32.mrf.mxu0 }
 0x121   : > { %v3705_v32 = vpop.f32.mrf.mxu1 }
 0x122   : > { %v5093_v42 = vadd.f32 %v3705_v32, %v3655_v30  ;;  %v676_v7 = vpop.f32.mrf.mxu0 }
 0x123   : > { %v950_v16 = vpop.f32.mrf.mxu1 }
 0x124   : > { %v5095_v26 = vadd.f32 %v950_v16, %v676_v7  ;;  %v3658_v48 = vpop.f32.mrf.mxu0 }
 0x125   : > { %v3708_v50 = vpop.f32.mrf.mxu1 }
 0x126   : > { %v5097_v20 = vadd.f32 %v3708_v50, %v3658_v48  ;;  %v696_v5 = vpop.f32.mrf.mxu0 }
 0x127   : > { %v962_v61 = vpop.f32.mrf.mxu1 }
 0x128   : > { %v5099_v31 = vadd.f32 %v962_v61, %v696_v5  ;;  %v5101_v52 = vpop.f32.mrf.mxu0 }
 0x129   : > { %v5103_v51 = vpop.f32.mrf.mxu1 }
 0x12a   : > { %v5105_v11 = vpop.f32.mrf.mxu0 }
 0x12b   : > { %v5107_v15 = vpop.f32.mrf.mxu1 }
 0x12c   : > { %v3716_v24 = vpop.f32.mrf.mxu0 }
 0x12d   : > { %v1064_v25 = vadd.f32 %v3716_v24, %v5041_v49  ;;  %v3766_v45 = vpop.f32.mrf.mxu1 }
 0x12e   : > { %v1056_v44 = vpop.f32.mrf.mxu0 }
 0x12f   : > { %v5110_v55 = vadd.f32 %v3766_v45, %v1064_v25  ;;  %v1057_v4 = vadd.f32 %v1056_v44, %v5043_v47  ;;  %v1349_v43 = vpop.f32.mrf.mxu1 }
 0x130   : > { %v3719_v38 = vpop.f32.mrf.mxu0 }
 0x131   : > { %v5113_v18 = vadd.f32 %v1349_v43, %v1057_v4  ;;  %v1078_v0 = vadd.f32 %v3719_v38, %v5045_v2  ;;  %v3769_v39 = vpop.f32.mrf.mxu1 }
 0x132   : > { %v1070_v62 = vpop.f32.mrf.mxu0 }
 0x133   : > { %v5116_v34 = vadd.f32 %v3769_v39, %v1078_v0  ;;  %v1071_v37 = vadd.f32 %v1070_v62, %v5047_v54  ;;  %v1365_v41 = vpop.f32.mrf.mxu1 }
 0x134   : > { %v3722_v49 = vpop.f32.mrf.mxu0 }
 0x135   : > { %v5119_v59 = vadd.f32 %v1365_v41, %v1071_v37  ;;  %v1092_v8 = vadd.f32 %v3722_v49, %v5049_v57  ;;  %v3772_v46 = vpop.f32.mrf.mxu1 }
 0x136   : > { %v1084_v47 = vpop.f32.mrf.mxu0 }
 0x137   : > { %v5122_v19 = vadd.f32 %v3772_v46, %v1092_v8  ;;  %v1085_v9 = vadd.f32 %v1084_v47, %v5051_v36  ;;  %v1381_v30 = vpop.f32.mrf.mxu1 }
 0x138   : > { %v3725_v2 = vpop.f32.mrf.mxu0 }
 0x139   : > { %v5125_v32 = vadd.f32 %v1381_v30, %v1085_v9  ;;  %v1106_v7 = vadd.f32 %v3725_v2, %v5053_v21  ;;  %v3775_v16 = vpop.f32.mrf.mxu1 }
 0x13a   : > { %v1098_v54 = vpop.f32.mrf.mxu0 }
 0x13b   : > { %v5128_v48 = vadd.f32 %v3775_v16, %v1106_v7  ;;  %v1099_v50 = vadd.f32 %v1098_v54, %v5055_v28  ;;  %v1397_v5 = vpop.f32.mrf.mxu1 }
 0x13c   : > { %v3728_v57 = vpop.f32.mrf.mxu0 }
 0x13d   : > { %v5131_v61 = vadd.f32 %v1397_v5, %v1099_v50  ;;  %v1120_v24 = vadd.f32 %v3728_v57, %v5057_v33  ;;  %v3778_v25 = vpop.f32.mrf.mxu1 }
 0x13e   : > { %v1112_v36 = vpop.f32.mrf.mxu0 }
 0x13f   : > { %v5134_v45 = vadd.f32 %v3778_v25, %v1120_v24  ;;  %v1113_v44 = vadd.f32 %v1112_v36, %v5059_v14  ;;  %v1413_v4 = vpop.f32.mrf.mxu1 }
 0x140   : > { %v3731_v21 = vpop.f32.mrf.mxu0 }
 0x141   : > { %v5137_v43 = vadd.f32 %v1413_v4, %v1113_v44  ;;  %v1134_v38 = vadd.f32 %v3731_v21, %v5061_v35  ;;  %v3781_v0 = vpop.f32.mrf.mxu1 }
 0x142   : > { %v1126_v28 = vpop.f32.mrf.mxu0 }
 0x143   : > { %v5140_v39 = vadd.f32 %v3781_v0, %v1134_v38  ;;  %v1127_v62 = vadd.f32 %v1126_v28, %v5063_v60  ;;  %v1429_v37 = vpop.f32.mrf.mxu1 }
 0x144   : > { %v3734_v33 = vpop.f32.mrf.mxu0 }
 0x145   : > { %v5143_v41 = vadd.f32 %v1429_v37, %v1127_v62  ;;  %v1148_v49 = vadd.f32 %v3734_v33, %v5065_v56  ;;  %v3784_v8 = vpop.f32.mrf.mxu1 }
 0x146   : > { %v1140_v14 = vpop.f32.mrf.mxu0 }
 0x147   : > { %v5146_v46 = vadd.f32 %v3784_v8, %v1148_v49  ;;  %v1141_v47 = vadd.f32 %v1140_v14, %v5067_v29  ;;  %v1445_v9 = vpop.f32.mrf.mxu1 }
 0x148   : > { %v3737_v35 = vpop.f32.mrf.mxu0 }
 0x149   : > { %v5149_v30 = vadd.f32 %v1445_v9, %v1141_v47  ;;  %v1162_v2 = vadd.f32 %v3737_v35, %v5069_v10  ;;  %v3787_v7 = vpop.f32.mrf.mxu1 }
 0x14a   : > { %v1154_v60 = vpop.f32.mrf.mxu0 }
 0x14b   : > { %v5152_v16 = vadd.f32 %v3787_v7, %v1162_v2  ;;  %v1155_v54 = vadd.f32 %v1154_v60, %v5071_v22  ;;  %v1461_v50 = vpop.f32.mrf.mxu1 }
 0x14c   : > { %v3740_v56 = vpop.f32.mrf.mxu0 }
 0x14d   : > { %v5155_v5 = vadd.f32 %v1461_v50, %v1155_v54  ;;  %v1176_v57 = vadd.f32 %v3740_v56, %v5073_v63  ;;  %v3790_v24 = vpop.f32.mrf.mxu1 }
 0x14e   : > { %v1168_v29 = vpop.f32.mrf.mxu0 }
 0x14f   : > { %v5158_v25 = vadd.f32 %v3790_v24, %v1176_v57  ;;  %v1169_v36 = vadd.f32 %v1168_v29, %v5075_v1  ;;  %v1477_v44 = vpop.f32.mrf.mxu1 }
 0x150   : > { %v3743_v10 = vpop.f32.mrf.mxu0 }
 0x151   : > { %v5161_v4 = vadd.f32 %v1477_v44, %v1169_v36  ;;  %v1190_v21 = vadd.f32 %v3743_v10, %v5077_v6  ;;  %v3793_v38 = vpop.f32.mrf.mxu1 }
 0x152   : > { %v1182_v22 = vpop.f32.mrf.mxu0 }
 0x153   : > { %v5164_v0 = vadd.f32 %v3793_v38, %v1190_v21  ;;  %v1183_v28 = vadd.f32 %v1182_v22, %v5079_v40  ;;  %v1493_v62 = vpop.f32.mrf.mxu1  ;;  %v1050_v38 = vadd.f32 %v5101_v52, %v5037_v17 }
 0x154   : > { %v3746_v63 = vpop.f32.mrf.mxu0 }
 0x155   : > { %v5167_v37 = vadd.f32 %v1493_v62, %v1183_v28  ;;  %v1204_v33 = vadd.f32 %v3746_v63, %v5081_v58  ;;  %v3796_v49 = vpop.f32.mrf.mxu1 }
 0x156   : > { %v1196_v1 = vpop.f32.mrf.mxu0 }
 0x157   : > { %v5170_v8 = vadd.f32 %v3796_v49, %v1204_v33  ;;  %v1197_v14 = vadd.f32 %v1196_v1, %v5083_v12  ;;  %v1509_v47 = vpop.f32.mrf.mxu1  ;;  %v1342_v1 = vadd.f32 %v5103_v51, %v1050_v38 }
 0x158   : > { %v3749_v6 = vpop.f32.mrf.mxu0 }
 0x159   : > { %v5173_v9 = vadd.f32 %v1509_v47, %v1197_v14  ;;  %v1218_v35 = vadd.f32 %v3749_v6, %v5085_v3  ;;  %v3799_v2 = vpop.f32.mrf.mxu1 }
 0x15a   : > { %v1210_v40 = vpop.f32.mrf.mxu0 }
 0x15b   : > { %v5176_v7 = vadd.f32 %v3799_v2, %v1218_v35  ;;  %v1211_v60 = vadd.f32 %v1210_v40, %v5087_v13  ;;  %v1525_v54 = vpop.f32.mrf.mxu1 }
 0x15c   : > { %v3752_v58 = vpop.f32.mrf.mxu0 }
 0x15d   : > { %v5179_v50 = vadd.f32 %v1525_v54, %v1211_v60  ;;  %v1232_v56 = vadd.f32 %v3752_v58, %v5089_v53  ;;  %v3802_v57 = vpop.f32.mrf.mxu1 }
 0x15e   : > { %v1224_v12 = vpop.f32.mrf.mxu0 }
 0x15f   : > { %v5182_v24 = vadd.f32 %v3802_v57, %v1232_v56  ;;  %v1225_v29 = vadd.f32 %v1224_v12, %v5091_v23  ;;  %v1541_v36 = vpop.f32.mrf.mxu1  ;;  %v1043_v23 = vadd.f32 %v5105_v11, %v5039_v27 }
 0x160   : > { %v3755_v3 = vpop.f32.mrf.mxu0 }
 0x161   : > { %v5185_v44 = vadd.f32 %v1541_v36, %v1225_v29  ;;  %v1246_v10 = vadd.f32 %v3755_v3, %v5093_v42  ;;  %v3805_v21 = vpop.f32.mrf.mxu1 }
 0x162   : > { %v1238_v13 = vpop.f32.mrf.mxu0 }
 0x163   : > { %v5190_v22 = vadd.f32 %v3805_v21, %v1246_v10  ;;  %v1239_v53 = vadd.f32 %v1238_v13, %v5095_v26  ;;  %v1557_v28 = vpop.f32.mrf.mxu1  ;;  %v1334_v26 = vadd.f32 %v5107_v15, %v1043_v23 }
 0x164   : > { %v3758_v62 = vpop.f32.mrf.mxu0 }
 0x165   : > { %v5195_v63 = vadd.f32 %v1557_v28, %v1239_v53  ;;  %v1260_v33 = vadd.f32 %v3758_v62, %v5097_v20  ;;  %v3808_v49 = vpop.f32.mrf.mxu1 }
 0x166   : > { %v1252_v42 = vpop.f32.mrf.mxu0 }
 0x167   : > { %v5199_v14 = vadd.f32 %v3808_v49, %v1260_v33  ;;  %v1253_v17 = vadd.f32 %v1252_v42, %v5099_v31  ;;  %v1573_v52 = vpop.f32.mrf.mxu1 }
 0x168   : > { %v3813_v47 = vpop.f32.mrf.mxu0 }
 0x169   : > { %v5203_v6 = vadd.f32 %v1573_v52, %v1253_v17  ;;  %v1662_v35 = vadd.f32 %v3813_v47, %v1342_v1  ;;  %v3863_v27 = vpop.f32.mrf.mxu1 }
 0x16a   : > { %v1655_v11 = vpop.f32.mrf.mxu0 }
 0x16b   : > { %v1920_v2 = vadd.f32 %v3863_v27, %v1662_v35  ;;  %v1656_v40 = vadd.f32 %v1655_v11, %v1334_v26  ;;  %v1913_v20 = vpop.f32.mrf.mxu1 }
 0x16c   : > { %v3816_v60 = vpop.f32.mrf.mxu0 }
 0x16d   : > { %v2104_v54 = vmul.f32 4.0, %v1920_v2  ;;  %v1914_v58 = vadd.f32 %v1913_v20, %v1656_v40  ;;  %v1674_v51 = vadd.f32 %v3816_v60, %v5110_v55  ;;  %v3866_v56 = vpop.f32.mrf.mxu1 }
 0x16e   : > { %v1667_v3 = vpop.f32.mrf.mxu0 }
 0x16f   : > { %v5206_v57 = vcvt.f32.s32 %v2104_v54  ;;  %v2103_v31 = vmul.f32 4.0, %v1914_v58  ;;  %v1932_v12 = vadd.f32 %v3866_v56, %v1674_v51  ;;  %v3917_v29 = vand.u32 2147483647, %v2104_v54  ;;  %v1925_v42 = vpop.f32.mrf.mxu1 }
 0x170   : > { %v3922_v21 = vand.u32 2147483648, %v2104_v54  ;;  %v1668_v55 = vadd.f32 %v1667_v3, %v5113_v18 }
 0x171   : > { %v3920_v15 = vcvt.s32.f32 %v5206_v57  ;;  %v5209_v36 = vcvt.f32.s32 %v2103_v31  ;;  %v2106_v13 = vmul.f32 4.0, %v1932_v12  ;;  %v3909_v28 = vand.u32 2147483647, %v2103_v31 }
 0x172   : > { %vm3918_vm2 = vcmp.lt.f32.partialorder %v3917_v29, 8388608.0  ;;  %v3914_v23 = vand.u32 2147483648, %v2103_v31  ;;  %v5217_v47 = vadd.s32 1, %v5206_v57  ;;  %v5219_v40 = vadd.f32 %v1925_v42, %v1668_v55 }
 0x173   : > { %v3921_v10 = vand.u32 2147483647, %v3920_v15  ;;  %v3912_v38 = vcvt.s32.f32 %v5209_v36  ;;  %v5213_v33 = vcvt.f32.s32 %v2106_v13  ;;  %vm3910_vm3 = vcmp.lt.f32.partialorder %v3909_v28, 8388608.0 }
 0x174   : > { %v3933_v26 = vand.u32 2147483647, %v2106_v13  ;;  %v3938_v35 = vand.u32 2147483648, %v2106_v13  ;;  %v2105_v56 = vmul.f32 4.0, %v5219_v40  ;;  %v2808_v15 = vand.u32 1, %v5206_v57 }
 0x175   : > { %v3923_v53 = vor.u32 %v3922_v21, %v3921_v10  ;;  %v3913_v62 = vand.u32 2147483647, %v3912_v38  ;;  %v3936_v52 = vcvt.s32.f32 %v5213_v33  ;;  %v2872_v29 = vand.u32 2, %v5206_v57 }
 0x176   : > { %vm3934_vm4 = vcmp.lt.f32.partialorder %v3933_v26, 8388608.0  ;;  %v5232_v21 = vcvt.f32.s32 %v2105_v56  ;;  %v3925_v42 = vand.u32 2147483647, %v2105_v56  ;;  %vm5254_vm6 = vcmp.ne.s32.totalorder %v2808_v15, 0 }
 0x177   : > { %v3924_v49 = vsel %vm3918_vm2, %v3923_v53, %v2104_v54  ;;  %v3915_v17 = vor.u32 %v3914_v23, %v3913_v62  ;;  %v3937_v18 = vand.u32 2147483647, %v3936_v52  ;;  %v5224_v54 = vadd.s32 1, %v5209_v36 }
 0x178   : > { %v2168_v1 = vmul.f32 0.25, %v3924_v49  ;;  %v2807_v53 = vand.u32 1, %v5209_v36  ;;  %v3928_v57 = vcvt.s32.f32 %v5232_v21  ;;  %vm3926_vm5 = vcmp.lt.f32.partialorder %v3925_v42, 8388608.0 }
 0x179   : > { %v3916_v11 = vsel %vm3910_vm3, %v3915_v17, %v2103_v31  ;;  %v3939_v51 = vor.u32 %v3938_v35, %v3937_v18  ;;  %v2968_v31 = vand.u32 2, %v5217_v47  ;;  %v3819_v17 = vpop.f32.mrf.mxu0  ;;  %vm5268_vm7 = vcmp.ne.s32.totalorder %v2872_v29, 0 }
 0x17a   : > { %v2200_v27 = vsub.f32 %v1920_v2, %v2168_v1  ;;  %v2167_v20 = vmul.f32 0.25, %v3916_v11  ;;  %v3930_v1 = vand.u32 2147483648, %v2105_v56  ;;  %v3929_v26 = vand.u32 2147483647, %v3928_v57 }
 0x17b   : > { %v3940_v10 = vsel %vm3934_vm4, %v3939_v51, %v2106_v13  ;;  %v1686_v51 = vadd.f32 %v3819_v17, %v5116_v34  ;;  %vm5272_vm8 = vcmp.ne.s32.totalorder %v2968_v31, 0  ;;  %vm5276_vm9 = vcmp.ne.s32.totalorder %v2807_v53, 0 }
 0x17c   : > { %v5221_v60 = vmul.f32 6.2831855, %v2200_v27  ;;  %v2199_v3 = vsub.f32 %v1914_v58, %v2167_v20  ;;  %v2170_v55 = vmul.f32 0.25, %v3940_v10  ;;  %v2967_v58 = vand.u32 2, %v5224_v54 }
 0x17d   : > { %v3931_v54 = vor.u32 %v3930_v1, %v3929_v26 }
 0x17e   : > { %v2264_v2 = vmul.f32 %v5221_v60, %v5221_v60  ;;  %v5234_v38 = vmul.f32 6.2831855, %v2199_v3  ;;  %v2202_v13 = vsub.f32 %v1932_v12, %v2170_v55  ;;  %vm5300_vm11 = vcmp.ne.s32.totalorder %v2967_v58, 0 }
 0x17f   : > { %v3932_v57 = vsel %vm3926_vm5, %v3931_v54, %v2105_v56  ;;  %v2937_v58 = vadd.s32 1, %v5232_v21 }
 0x180   : > { %v2296_v62 = vmul.f32 -0.00027598796, %v2264_v2  ;;  %v2520_v23 = vmul.f32 3.45537e-05, %v2264_v2  ;;  %v5242_v49 = vmul.f32 %v5234_v38, %v5234_v38  ;;  %v5246_v11 = vmul.f32 6.2831855, %v2202_v13  ;;  %v3869_v13 = vpop.f32.mrf.mxu1 }
 0x181   : > { %v2169_v56 = vmul.f32 0.25, %v3932_v57 }
 0x182   : > { %v2328_v52 = vadd.f32 0.011783455, %v2296_v62  ;;  %v2552_v47 = vadd.f32 -0.001963963, %v2520_v23  ;;  %v2295_v35 = vmul.f32 -0.00027598796, %v5242_v49  ;;  %v5251_v10 = vmul.f32 %v5246_v11, %v5246_v11 }
 0x183   : > { %v2519_v27 = vmul.f32 3.45537e-05, %v5242_v49  ;;  %v2810_v23 = vand.u32 1, %v5213_v33  ;;  %v2201_v57 = vsub.f32 %v5219_v40, %v2169_v56  ;;  %v6641_v56 = vand.u32 2, %v5209_v36 }
 0x184   : > { %v2360_v18 = vmul.f32 %v2328_v52, %v2264_v2  ;;  %v2584_v20 = vmul.f32 %v2552_v47, %v2264_v2  ;;  %v2327_v3 = vadd.f32 0.011783455, %v2295_v35  ;;  %v2298_v17 = vmul.f32 -0.00027598796, %v5251_v10 }
 0x185   : > { %v2551_v12 = vadd.f32 -0.001963963, %v2519_v27  ;;  %v2522_v47 = vmul.f32 3.45537e-05, %v5251_v10  ;;  %v5264_v35 = vadd.s32 1, %v5213_v33  ;;  %vm5296_vm10 = vcmp.ne.s32.totalorder %v6641_v56, 0 }
 0x186   : > { %v2392_v55 = vadd.f32 -0.23570208, %v2360_v18  ;;  %v2616_v62 = vadd.f32 0.058925536, %v2584_v20  ;;  %v2359_v1 = vmul.f32 %v2327_v3, %v5242_v49  ;;  %v2330_v18 = vadd.f32 0.011783455, %v2298_v17 }
 0x187   : > { %v2583_v34 = vmul.f32 %v2551_v12, %v5242_v49  ;;  %v5266_v20 = vadd.f32 %v3869_v13, %v1686_v51  ;;  %v5291_v17 = vmul.f32 6.2831855, %v2201_v57  ;;  %vm5314_vm12 = vcmp.ne.s32.totalorder %v2810_v23, 0 }
 0x188   : > { %v2424_v42 = vmul.f32 %v2392_v55, %v2264_v2  ;;  %v2648_v26 = vmul.f32 %v2616_v62, %v2264_v2  ;;  %v2391_v15 = vadd.f32 -0.23570208, %v2359_v1  ;;  %v2554_v62 = vadd.f32 -0.001963963, %v2522_v47  ;;  %v1679_v47 = vpop.f32.mrf.mxu0 }
 0x189   : > { %v2615_v27 = vadd.f32 0.058925536, %v2583_v34  ;;  %v2362_v29 = vmul.f32 %v2330_v18, %v5251_v10  ;;  %v2874_v1 = vand.u32 2, %v5213_v33  ;;  %v2970_v34 = vand.u32 2, %v5264_v35 }
 0x18a   : > { %v2456_v54 = vadd.f32 1.4142135, %v2424_v42  ;;  %v2680_v3 = vadd.f32 -0.70710677, %v2648_v26  ;;  %v2423_v51 = vmul.f32 %v2391_v15, %v5242_v49  ;;  %v2586_v53 = vmul.f32 %v2554_v62, %v5251_v10 }
 0x18b   : > { %v2647_v13 = vmul.f32 %v2615_v27, %v5242_v49  ;;  %v1680_v57 = vadd.f32 %v1679_v47, %v5119_v59  ;;  %vm5325_vm13 = vcmp.ne.s32.totalorder %v2874_v1, 0  ;;  %vm3002_vm14 = vcmp.ne.s32.totalorder %v2970_v34, 0 }
 0x18c   : > { %v2712_v31 = vmul.f32 %v2680_v3, %v2264_v2  ;;  %v2488_v40 = vmul.f32 %v2456_v54, %v5221_v60  ;;  %v2455_v42 = vadd.f32 1.4142135, %v2423_v51  ;;  %v2394_v2 = vadd.f32 -0.23570208, %v2362_v29 }
 0x18d   : > { %v2679_v26 = vadd.f32 -0.70710677, %v2647_v13  ;;  %v2618_v18 = vadd.f32 0.058925536, %v2586_v53  ;;  %v5306_v3 = vmul.f32 %v5291_v17, %v5291_v17  ;;  %v5309_v60 = vmul.f32 4.0, %v5266_v20 }
 0x18e   : > { %v2744_v27 = vadd.f32 1.4142135, %v2712_v31  ;;  %v2487_v36 = vmul.f32 %v2455_v42, %v5234_v38  ;;  %v2426_v62 = vmul.f32 %v2394_v2, %v5251_v10  ;;  %v1937_v42 = vpop.f32.mrf.mxu1 }
 0x18f   : > { %v2711_v54 = vmul.f32 %v2679_v26, %v5242_v49  ;;  %v2650_v29 = vmul.f32 %v2618_v18, %v5251_v10  ;;  %v2297_v38 = vmul.f32 -0.00027598796, %v5306_v3  ;;  %v2521_v47 = vmul.f32 3.45537e-05, %v5306_v3 }
 0x190   : > { %v3032_v51 = vsel %vm5254_vm6, %v2744_v27, %v2488_v40  ;;  %v3128_v13 = vsel %vm5254_vm6, %v2488_v40, %v2744_v27  ;;  %v2458_v23 = vadd.f32 1.4142135, %v2426_v62  ;;  %v5331_v52 = vcvt.f32.s32 %v5309_v60  ;;  %v3822_v40 = vpop.f32.mrf.mxu0 }
 0x191   : > { %v3064_v49 = vsub.f32 0.0, %v3032_v51  ;;  %v3160_v31 = vsub.f32 0.0, %v3128_v13  ;;  %v2743_v53 = vadd.f32 1.4142135, %v2711_v54  ;;  %v2682_v26 = vadd.f32 -0.70710677, %v2650_v29 }
 0x192   : > { %v2329_v59 = vadd.f32 0.011783455, %v2297_v38  ;;  %v5347_v28 = vadd.f32 %v1937_v42, %v1680_v57  ;;  %v3952_v55 = vcvt.s32.f32 %v5331_v52  ;;  %v3954_v33 = vand.u32 2147483648, %v5309_v60 }
 0x193   : > { %v3096_v2 = vsel %vm5268_vm7, %v3064_v49, %v3032_v51  ;;  %v3192_v27 = vsel %vm5272_vm8, %v3160_v31, %v3128_v13  ;;  %v3031_v18 = vsel %vm5276_vm9, %v2743_v53, %v2487_v36  ;;  %v3127_v1 = vsel %vm5276_vm9, %v2487_v36, %v2743_v53 }
 0x194   : > { %3224 = vst [vmem:[%s5342_s6 + $0x10] sm:$0xff] %v3096_v2  ;;  %3256 = vst [vmem:[%s5342_s6 + $0x18] sm:$0xff] %v3192_v27  ;;  %v3063_v54 = vsub.f32 0.0, %v3031_v18  ;;  %v3159_v12 = vsub.f32 0.0, %v3127_v1  ;;  %v2714_v62 = vmul.f32 %v2682_v26, %v5251_v10  ;;  %v2361_v51 = vmul.f32 %v2329_v59, %v5306_v3  ;;  %v1691_v2 = vpop.f32.mrf.mxu0 }
 0x195   : > { %v2553_v13 = vadd.f32 -0.001963963, %v2521_v47  ;;  %v1698_v36 = vadd.f32 %v3822_v40, %v5122_v19  ;;  %v2490_v49 = vmul.f32 %v2458_v23, %v5246_v11  ;;  %v3949_v53 = vand.u32 2147483647, %v5309_v60  ;;  %v3872_v40 = vpop.f32.mrf.mxu1 }
 0x196   : > { %v3095_v29 = vsel %vm5296_vm10, %v3063_v54, %v3031_v18  ;;  %v3191_v38 = vsel %vm5300_vm11, %v3159_v12, %v3127_v1  ;;  %v2746_v31 = vadd.f32 1.4142135, %v2714_v62  ;;  %v2393_v10 = vadd.f32 -0.23570208, %v2361_v51 }
 0x197   : > { %3223 = vst [vmem:[%s5342_s6] sm:$0xff] %v3095_v29  ;;  %3255 = vst [vmem:[%s5342_s6 + $0x8] sm:$0xff] %v3191_v38  ;;  %v2585_v57 = vmul.f32 %v2553_v13, %v5306_v3  ;;  %v3953_v42 = vand.u32 2147483647, %v3952_v55  ;;  %v2107_v11 = vmul.f32 4.0, %v5347_v28  ;;  %v2809_v27 = vand.u32 1, %v5232_v21  ;;  %v1949_v38 = vpop.f32.mrf.mxu1 }
 0x198   : > { %v3034_v19 = vsel %vm5314_vm12, %v2746_v31, %v2490_v49  ;;  %v3130_v15 = vsel %vm5314_vm12, %v2490_v49, %v2746_v31  ;;  %v2425_v59 = vmul.f32 %v2393_v10, %v5306_v3  ;;  %vm3950_vm15 = vcmp.lt.f32.partialorder %v3949_v53, 8388608.0 }
 0x199   : > { %v3066_v23 = vsub.f32 0.0, %v3034_v19  ;;  %v3162_v26 = vsub.f32 0.0, %v3130_v15  ;;  %v2617_v47 = vadd.f32 0.058925536, %v2585_v57  ;;  %v3955_v18 = vor.u32 %v3954_v33, %v3953_v42 }
 0x19a   : > { %v5378_v51 = vcvt.f32.s32 %v2107_v11  ;;  %v5380_v35 = vadd.f32 %v3872_v40, %v1698_v36  ;;  %v1692_v34 = vadd.f32 %v1691_v2, %v5125_v32  ;;  %v2457_v13 = vadd.f32 1.4142135, %v2425_v59 }
 0x19b   : > { %v3098_v1 = vsel %vm5325_vm13, %v3066_v23, %v3034_v19  ;;  %v3194_v54 = vsel %vm3002_vm14, %v3162_v26, %v3130_v15  ;;  %v2649_v12 = vmul.f32 %v2617_v47, %v5306_v3  ;;  %v3956_v62 = vsel %vm3950_vm15, %v3955_v18, %v5309_v60 }
 0x19c   : > { %3226 = vst [vmem:[%s5342_s6 + $0x30] sm:$0xff] %v3098_v1  ;;  %3258 = vst [vmem:[%s5342_s6 + $0x38] sm:$0xff] %v3194_v54  ;;  %v2873_v29 = vand.u32 2, %v5232_v21  ;;  %v2172_v56 = vmul.f32 0.25, %v3956_v62  ;;  %v2969_v49 = vand.u32 2, %v2937_v58  ;;  %v3944_v31 = vcvt.s32.f32 %v5378_v51 }
 0x19d   : > { %v2681_v55 = vadd.f32 -0.70710677, %v2649_v12  ;;  %vm5386_vm0 = vcmp.ne.s32.totalorder %v2809_v27, 0  ;;  %v3941_v36 = vand.u32 2147483647, %v2107_v11  ;;  %v3946_v32 = vand.u32 2147483648, %v2107_v11 }
 0x19e   : > { %v2204_v60 = vsub.f32 %v5266_v20, %v2172_v56  ;;  %v3945_v53 = vand.u32 2147483647, %v3944_v31  ;;  %v2110_v42 = vmul.f32 4.0, %v5380_v35  ;;  %v5392_v19 = vadd.f32 %v1949_v38, %v1692_v34 }
 0x19f   : > { %v2713_v10 = vmul.f32 %v2681_v55, %v5306_v3  ;;  %v2489_v21 = vmul.f32 %v2457_v13, %v5291_v17  ;;  %vm5395_vm1 = vcmp.ne.s32.totalorder %v2873_v29, 0  ;;  %vm5401_vm2 = vcmp.ne.s32.totalorder %v2969_v49, 0 }
 0x1a0   : > { %v5399_v3 = vmul.f32 6.2831855, %v2204_v60  ;;  %v2940_v20 = vadd.s32 1, %v5331_v52  ;;  %v3947_v26 = vor.u32 %v3946_v32, %v3945_v53  ;;  %v5406_v59 = vcvt.f32.s32 %v2110_v42 }
 0x1a1   : > { %v2745_v15 = vadd.f32 1.4142135, %v2713_v10  ;;  %vm3942_vm3 = vcmp.lt.f32.partialorder %v3941_v36, 8388608.0  ;;  %v5415_v18 = vmul.f32 4.0, %v5392_v19  ;;  %v3965_v55 = vand.u32 2147483647, %v2110_v42 }
 0x1a2   : > { %v2268_v40 = vmul.f32 %v5399_v3, %v5399_v3  ;;  %v3948_v58 = vsel %vm3942_vm3, %v3947_v26, %v2107_v11  ;;  %v3968_v62 = vcvt.s32.f32 %v5406_v59  ;;  %v3970_v29 = vand.u32 2147483648, %v2110_v42 }
 0x1a3   : > { %v3033_v47 = vsel %vm5386_vm0, %v2745_v15, %v2489_v21  ;;  %v3129_v17 = vsel %vm5386_vm0, %v2489_v21, %v2745_v15  ;;  %v2171_v12 = vmul.f32 0.25, %v3948_v58  ;;  %v2812_v31 = vand.u32 1, %v5331_v52 }
 0x1a4   : > { %v3065_v2 = vsub.f32 0.0, %v3033_v47  ;;  %v3161_v27 = vsub.f32 0.0, %v3129_v17  ;;  %v2300_v1 = vmul.f32 -0.00027598796, %v2268_v40  ;;  %v2524_v54 = vmul.f32 3.45537e-05, %v2268_v40 }
 0x1a5   : > { %v2203_v38 = vsub.f32 %v5347_v28, %v2171_v12  ;;  %v3969_v49 = vand.u32 2147483647, %v3968_v62  ;;  %v2876_v53 = vand.u32 2, %v5331_v52  ;;  %v2972_v32 = vand.u32 2, %v2940_v20 }
 0x1a6   : > { %v3097_v34 = vsel %vm5395_vm1, %v3065_v2, %v3033_v47  ;;  %v3193_v13 = vsel %vm5401_vm2, %v3161_v27, %v3129_v17  ;;  %v2332_v56 = vadd.f32 0.011783455, %v2300_v1  ;;  %v2556_v11 = vadd.f32 -0.001963963, %v2524_v54  ;;  %v3825_v54 = vpop.f32.mrf.mxu0 }
 0x1a7   : > { %3225 = vst [vmem:[%s5342_s6 + $0x20] sm:$0xff] %v3097_v34  ;;  %3257 = vst [vmem:[%s5342_s6 + $0x28] sm:$0xff] %v3193_v13  ;;  %v5426_v60 = vmul.f32 6.2831855, %v2203_v38  ;;  %v3971_v36 = vor.u32 %v3970_v29, %v3969_v49  ;;  %vm3966_vm4 = vcmp.lt.f32.partialorder %v3965_v55, 8388608.0  ;;  %v5430_v21 = vcvt.f32.s32 %v5415_v18 }
 0x1a8   : > { %v2364_v10 = vmul.f32 %v2332_v56, %v2268_v40  ;;  %v2588_v57 = vmul.f32 %v2556_v11, %v2268_v40  ;;  %vm5436_vm5 = vcmp.ne.s32.totalorder %v2812_v31, 0  ;;  %v2811_v47 = vand.u32 1, %v5378_v51 }
 0x1a9   : > { %v5434_v28 = vmul.f32 %v5426_v60, %v5426_v60  ;;  %v3972_v23 = vsel %vm3966_vm4, %v3971_v36, %v2110_v42  ;;  %v3957_v52 = vand.u32 2147483647, %v5415_v18  ;;  %v3960_v20 = vcvt.s32.f32 %v5430_v21 }
 0x1aa   : > { %v2396_v15 = vadd.f32 -0.23570208, %v2364_v10  ;;  %v2620_v33 = vadd.f32 0.058925536, %v2588_v57  ;;  %v2174_v17 = vmul.f32 0.25, %v3972_v23  ;;  %v2939_v42 = vadd.s32 1, %v5378_v51 }
 0x1ab   : > { %v2299_v58 = vmul.f32 -0.00027598796, %v5434_v28  ;;  %v2523_v1 = vmul.f32 3.45537e-05, %v5434_v28  ;;  %v3961_v62 = vand.u32 2147483647, %v3960_v20 }
 0x1ac   : > { %v2428_v2 = vmul.f32 %v2396_v15, %v2268_v40  ;;  %v2652_v27 = vmul.f32 %v2620_v33, %v2268_v40  ;;  %v2206_v12 = vsub.f32 %v5380_v35, %v2174_v17  ;;  %v3962_v34 = vand.u32 2147483648, %v5415_v18 }
 0x1ad   : > { %vm5448_vm6 = vcmp.ne.s32.totalorder %v2876_v53, 0  ;;  %vm5452_vm7 = vcmp.ne.s32.totalorder %v2972_v32, 0  ;;  %v2331_v11 = vadd.f32 0.011783455, %v2299_v58  ;;  %v2555_v38 = vadd.f32 -0.001963963, %v2523_v1  ;;  %v3875_v53 = vpop.f32.mrf.mxu1  ;;  %v1703_v58 = vpop.f32.mrf.mxu0 }
 0x1ae   : > { %v2460_v13 = vadd.f32 1.4142135, %v2428_v2  ;;  %v2684_v55 = vadd.f32 -0.70710677, %v2652_v27  ;;  %v5456_v49 = vmul.f32 6.2831855, %v2206_v12  ;;  %v3963_v31 = vor.u32 %v3962_v34, %v3961_v62 }
 0x1af   : > { %v1710_v35 = vadd.f32 %v3825_v54, %v5128_v48  ;;  %v2363_v57 = vmul.f32 %v2331_v11, %v5434_v28  ;;  %v2875_v36 = vand.u32 2, %v5378_v51  ;;  %vm3958_vm8 = vcmp.lt.f32.partialorder %v3957_v52, 8388608.0 }
 0x1b0   : > { %v2716_v10 = vmul.f32 %v2684_v55, %v2268_v40  ;;  %v2587_v15 = vmul.f32 %v2555_v38, %v5434_v28  ;;  %v2971_v32 = vand.u32 2, %v2939_v42  ;;  %v5464_v33 = vmul.f32 %v5456_v49, %v5456_v49 }
 0x1b1   : > { %v3964_v23 = vsel %vm3958_vm8, %v3963_v31, %v5415_v18  ;;  %v2492_v17 = vmul.f32 %v2460_v13, %v5399_v3  ;;  %v2395_v48 = vadd.f32 -0.23570208, %v2363_v57  ;;  %v5470_v52 = vadd.f32 %v3875_v53, %v1710_v35  ;;  %v1961_v53 = vpop.f32.mrf.mxu1 }
 0x1b2   : > { %v2748_v20 = vadd.f32 1.4142135, %v2716_v10  ;;  %v2173_v40 = vmul.f32 0.25, %v3964_v23  ;;  %v2619_v2 = vadd.f32 0.058925536, %v2587_v15  ;;  %vm5477_vm9 = vcmp.ne.s32.totalorder %v2811_v47, 0 }
 0x1b3   : > { %v2302_v27 = vmul.f32 -0.00027598796, %v5464_v33  ;;  %v2526_v51 = vmul.f32 3.45537e-05, %v5464_v33  ;;  %v2427_v18 = vmul.f32 %v2395_v48, %v5434_v28  ;;  %v1704_v26 = vadd.f32 %v1703_v58, %v5131_v61 }
 0x1b4   : > { %v3036_v1 = vsel %vm5436_vm5, %v2748_v20, %v2492_v17  ;;  %v3132_v54 = vsel %vm5436_vm5, %v2492_v17, %v2748_v20  ;;  %v2205_v42 = vsub.f32 %v5392_v19, %v2173_v40  ;;  %v2651_v34 = vmul.f32 %v2619_v2, %v5434_v28 }
 0x1b5   : > { %v3068_v12 = vsub.f32 0.0, %v3036_v1  ;;  %v3164_v62 = vsub.f32 0.0, %v3132_v54  ;;  %v2334_v13 = vadd.f32 0.011783455, %v2302_v27  ;;  %v2459_v55 = vadd.f32 1.4142135, %v2427_v18 }
 0x1b6   : > { %v2558_v11 = vadd.f32 -0.001963963, %v2526_v51  ;;  %v5483_v38 = vmul.f32 6.2831855, %v2205_v42  ;;  %v2683_v19 = vadd.f32 -0.70710677, %v2651_v34  ;;  %v5513_v2 = vadd.f32 %v1961_v53, %v1704_v26 }
 0x1b7   : > { %v3100_v47 = vsel %vm5448_vm6, %v3068_v12, %v3036_v1  ;;  %v3196_v31 = vsel %vm5452_vm7, %v3164_v62, %v3132_v54  ;;  %vm5490_vm10 = vcmp.ne.s32.totalorder %v2875_v36, 0  ;;  %vm5494_vm11 = vcmp.ne.s32.totalorder %v2971_v32, 0 }
 0x1b8   : > { %v2366_v57 = vmul.f32 %v2334_v13, %v5464_v33  ;;  %3228 = vst [vmem:[%s5342_s6 + $0x50] sm:$0xff] %v3100_v47  ;;  %3260 = vst [vmem:[%s5342_s6 + $0x58] sm:$0xff] %v3196_v31  ;;  %v2590_v61 = vmul.f32 %v2558_v11, %v5464_v33  ;;  %v2814_v29 = vand.u32 1, %v5406_v59  ;;  %v2878_v56 = vand.u32 2, %v5406_v59 }
 0x1b9   : > { %v5506_v36 = vmul.f32 %v5483_v38, %v5483_v38  ;;  %v2715_v15 = vmul.f32 %v2683_v19, %v5434_v28  ;;  %v2942_v23 = vadd.s32 1, %v5406_v59  ;;  %v2112_v17 = vmul.f32 4.0, %v5470_v52 }
 0x1ba   : > { %v2398_v32 = vadd.f32 -0.23570208, %v2366_v57  ;;  %v2622_v20 = vadd.f32 0.058925536, %v2590_v61  ;;  %v2491_v27 = vmul.f32 %v2459_v55, %v5426_v60  ;;  %vm5520_vm12 = vcmp.ne.s32.totalorder %v2814_v29, 0 }
 0x1bb   : > { %v2301_v48 = vmul.f32 -0.00027598796, %v5506_v36  ;;  %v2525_v40 = vmul.f32 3.45537e-05, %v5506_v36  ;;  %v2747_v51 = vadd.f32 1.4142135, %v2715_v15  ;;  %v5517_v1 = vcvt.f32.s32 %v2112_v17 }
 0x1bc   : > { %v2430_v58 = vmul.f32 %v2398_v32, %v5464_v33  ;;  %v2654_v28 = vmul.f32 %v2622_v20, %v5464_v33  ;;  %v2974_v62 = vand.u32 2, %v2942_v23  ;;  %vm5528_vm13 = vcmp.ne.s32.totalorder %v2878_v56, 0  ;;  %v3828_v56 = vpop.f32.mrf.mxu0 }
 0x1bd   : > { %v2333_v54 = vadd.f32 0.011783455, %v2301_v48  ;;  %v2557_v18 = vadd.f32 -0.001963963, %v2525_v40  ;;  %v3035_v42 = vsel %vm5477_vm9, %v2747_v51, %v2491_v27  ;;  %v3131_v12 = vsel %vm5477_vm9, %v2491_v27, %v2747_v51 }
 0x1be   : > { %v2462_v60 = vadd.f32 1.4142135, %v2430_v58  ;;  %v3067_v34 = vsub.f32 0.0, %v3035_v42  ;;  %v3163_v13 = vsub.f32 0.0, %v3131_v12  ;;  %v2686_v55 = vadd.f32 -0.70710677, %v2654_v28 }
 0x1bf   : > { %v2365_v26 = vmul.f32 %v2333_v54, %v5506_v36  ;;  %v2589_v47 = vmul.f32 %v2557_v18, %v5506_v36  ;;  %v3981_v31 = vand.u32 2147483647, %v2112_v17  ;;  %v3984_v19 = vcvt.s32.f32 %v5517_v1 }
 0x1c0   : > { %v5536_v3 = vmul.f32 4.0, %v5513_v2  ;;  %v3099_v57 = vsel %vm5490_vm10, %v3067_v34, %v3035_v42  ;;  %v3195_v53 = vsel %vm5494_vm11, %v3163_v13, %v3131_v12  ;;  %v2718_v61 = vmul.f32 %v2686_v55, %v5464_v33  ;;  %v3878_v55 = vpop.f32.mrf.mxu1 }
 0x1c1   : > { %v2397_v29 = vadd.f32 -0.23570208, %v2365_v26  ;;  %3227 = vst [vmem:[%s5342_s6 + $0x40] sm:$0xff] %v3099_v57  ;;  %3259 = vst [vmem:[%s5342_s6 + $0x48] sm:$0xff] %v3195_v53  ;;  %vm5545_vm14 = vcmp.ne.s32.totalorder %v2974_v62, 0  ;;  %v3986_v20 = vand.u32 2147483648, %v2112_v17  ;;  %v2494_v48 = vmul.f32 %v2462_v60, %v5456_v49 }
 0x1c2   : > { %v2621_v32 = vadd.f32 0.058925536, %v2589_v47  ;;  %v3985_v23 = vand.u32 2147483647, %v3984_v19  ;;  %v2750_v35 = vadd.f32 1.4142135, %v2718_v61  ;;  %v5554_v51 = vcvt.f32.s32 %v5536_v3  ;;  %v1715_v19 = vpop.f32.mrf.mxu0 }
 0x1c3   : > { %v2429_v40 = vmul.f32 %v2397_v29, %v5506_v36  ;;  %v2941_v10 = vadd.s32 1, %v5430_v21  ;;  %v1722_v58 = vadd.f32 %v3828_v56, %v5134_v45  ;;  %vm3982_vm15 = vcmp.lt.f32.partialorder %v3981_v31, 8388608.0 }
 0x1c4   : > { %v2653_v33 = vmul.f32 %v2621_v32, %v5506_v36  ;;  %v3987_v27 = vor.u32 %v3986_v20, %v3985_v23  ;;  %v3038_v28 = vsel %vm5520_vm12, %v2750_v35, %v2494_v48  ;;  %v3134_v54 = vsel %vm5520_vm12, %v2494_v48, %v2750_v35  ;;  %v1973_v32 = vpop.f32.mrf.mxu1 }
 0x1c5   : > { %v2461_v49 = vadd.f32 1.4142135, %v2429_v40  ;;  %v3070_v18 = vsub.f32 0.0, %v3038_v28  ;;  %v3166_v42 = vsub.f32 0.0, %v3134_v54  ;;  %v2813_v62 = vand.u32 1, %v5430_v21 }
 0x1c6   : > { %v2685_v12 = vadd.f32 -0.70710677, %v2653_v33  ;;  %v3988_v60 = vsel %vm3982_vm15, %v3987_v27, %v2112_v17  ;;  %v2877_v34 = vand.u32 2, %v5430_v21  ;;  %v3973_v45 = vand.u32 2147483647, %v5536_v3 }
 0x1c7   : > { %v2176_v13 = vmul.f32 0.25, %v3988_v60  ;;  %v3102_v59 = vsel %vm5528_vm13, %v3070_v18, %v3038_v28  ;;  %v3198_v26 = vsel %vm5545_vm14, %v3166_v42, %v3134_v54  ;;  %v3976_v31 = vcvt.s32.f32 %v5554_v51 }
 0x1c8   : > { %v2717_v47 = vmul.f32 %v2685_v12, %v5506_v36  ;;  %3230 = vst [vmem:[%s5342_s6 + $0x70] sm:$0xff] %v3102_v59  ;;  %3262 = vst [vmem:[%s5342_s6 + $0x78] sm:$0xff] %v3198_v26  ;;  %v2493_v17 = vmul.f32 %v2461_v49, %v5483_v38  ;;  %v2973_v21 = vand.u32 2, %v2941_v10  ;;  %v3978_v11 = vand.u32 2147483648, %v5536_v3 }
 0x1c9   : > { %v2208_v57 = vsub.f32 %v5470_v52, %v2176_v13  ;;  %v3977_v61 = vand.u32 2147483647, %v3976_v31  ;;  %v5575_v29 = vadd.f32 %v3878_v55, %v1722_v58  ;;  %vm2845_vm0 = vcmp.ne.s32.totalorder %v2813_v62, 0  ;;  %v3831_v31 = vpop.f32.mrf.mxu0 }
 0x1ca   : > { %v2749_v53 = vadd.f32 1.4142135, %v2717_v47  ;;  %vm5577_vm1 = vcmp.ne.s32.totalorder %v2877_v34, 0  ;;  %v1716_v15 = vadd.f32 %v1715_v19, %v5137_v43  ;;  %vm5584_vm2 = vcmp.lt.f32.partialorder %v3973_v45, 8388608.0 }
 0x1cb   : > { %v5581_v36 = vmul.f32 6.2831855, %v2208_v57  ;;  %v3979_v20 = vor.u32 %v3978_v11, %v3977_v61  ;;  %v2114_v10 = vmul.f32 4.0, %v5575_v29  ;;  %vm3005_vm3 = vcmp.ne.s32.totalorder %v2973_v21, 0 }
 0x1cc   : > { %v3037_v38 = vsel %vm2845_vm0, %v2749_v53, %v2493_v17  ;;  %v3133_v23 = vsel %vm2845_vm0, %v2493_v17, %v2749_v53  ;;  %v2944_v43 = vadd.s32 1, %v5517_v1  ;;  %v5595_v27 = vadd.f32 %v1973_v32, %v1716_v15 }
 0x1cd   : > { %v3069_v48 = vsub.f32 0.0, %v3037_v38  ;;  %v3165_v35 = vsub.f32 0.0, %v3133_v23  ;;  %v2272_v40 = vmul.f32 %v5581_v36, %v5581_v36  ;;  %v3980_v33 = vsel %vm5584_vm2, %v3979_v20, %v5536_v3 }
 0x1ce   : > { %v2175_v18 = vmul.f32 0.25, %v3980_v33  ;;  %v5601_v42 = vcvt.f32.s32 %v2114_v10  ;;  %v2113_v62 = vmul.f32 4.0, %v5595_v27  ;;  %v2816_v34 = vand.u32 1, %v5517_v1 }
 0x1cf   : > { %v3101_v58 = vsel %vm5577_vm1, %v3069_v48, %v3037_v38  ;;  %v3197_v28 = vsel %vm3005_vm3, %v3165_v35, %v3133_v23  ;;  %v2304_v54 = vmul.f32 -0.00027598796, %v2272_v40  ;;  %v2528_v49 = vmul.f32 3.45537e-05, %v2272_v40  ;;  %v3881_v48 = vpop.f32.mrf.mxu1 }
 0x1d0   : > { %3229 = vst [vmem:[%s5342_s6 + $0x60] sm:$0xff] %v3101_v58  ;;  %3261 = vst [vmem:[%s5342_s6 + $0x68] sm:$0xff] %v3197_v28  ;;  %v2880_v3 = vand.u32 2, %v5517_v1  ;;  %v2207_v13 = vsub.f32 %v5513_v2, %v2175_v18  ;;  %v4000_v45 = vcvt.s32.f32 %v5601_v42  ;;  %v2976_v26 = vand.u32 2, %v2944_v43 }
 0x1d1   : > { %v2336_v12 = vadd.f32 0.011783455, %v2304_v54  ;;  %v2560_v60 = vadd.f32 -0.001963963, %v2528_v49  ;;  %v3997_v47 = vand.u32 2147483647, %v2114_v10  ;;  %v5610_v57 = vcvt.f32.s32 %v2113_v62 }
 0x1d2   : > { %v5608_v19 = vmul.f32 6.2831855, %v2207_v13  ;;  %v4001_v17 = vand.u32 2147483647, %v4000_v45  ;;  %v4002_v21 = vand.u32 2147483648, %v2114_v10  ;;  %v2815_v11 = vand.u32 1, %v5554_v51 }
 0x1d3   : > { %v2368_v55 = vmul.f32 %v2336_v12, %v2272_v40  ;;  %v2592_v59 = vmul.f32 %v2560_v60, %v2272_v40  ;;  %v2879_v1 = vand.u32 2, %v5554_v51  ;;  %vm5614_vm4 = vcmp.ne.s32.totalorder %v2816_v34, 0 }
 0x1d4   : > { %v5620_v56 = vmul.f32 %v5608_v19, %v5608_v19  ;;  %v4003_v15 = vor.u32 %v4002_v21, %v4001_v17  ;;  %v3992_v32 = vcvt.s32.f32 %v5610_v57  ;;  %v1734_v38 = vadd.f32 %v3831_v31, %v5140_v39 }
 0x1d5   : > { %v2400_v53 = vadd.f32 -0.23570208, %v2368_v55  ;;  %v2624_v61 = vadd.f32 0.058925536, %v2592_v59  ;;  %v2943_v20 = vadd.s32 1, %v5554_v51  ;;  %vm3998_vm5 = vcmp.lt.f32.partialorder %v3997_v47, 8388608.0 }
 0x1d6   : > { %v2303_v35 = vmul.f32 -0.00027598796, %v5620_v56  ;;  %v2527_v43 = vmul.f32 3.45537e-05, %v5620_v56  ;;  %v4004_v33 = vsel %vm3998_vm5, %v4003_v15, %v2114_v10  ;;  %v3989_v58 = vand.u32 2147483647, %v2113_v62 }
 0x1d7   : > { %v2432_v23 = vmul.f32 %v2400_v53, %v2272_v40  ;;  %v2656_v52 = vmul.f32 %v2624_v61, %v2272_v40  ;;  %vm5627_vm6 = vcmp.ne.s32.totalorder %v2880_v3, 0  ;;  %vm5631_vm7 = vcmp.ne.s32.totalorder %v2976_v26, 0 }
 0x1d8   : > { %v2178_v18 = vmul.f32 0.25, %v4004_v33  ;;  %v3994_v51 = vand.u32 2147483648, %v2113_v62  ;;  %v2335_v12 = vadd.f32 0.011783455, %v2303_v35  ;;  %v2559_v60 = vadd.f32 -0.001963963, %v2527_v43 }
 0x1d9   : > { %v2464_v28 = vadd.f32 1.4142135, %v2432_v23  ;;  %v2688_v54 = vadd.f32 -0.70710677, %v2656_v52  ;;  %v3993_v34 = vand.u32 2147483647, %v3992_v32  ;;  %v5635_v13 = vadd.f32 %v3881_v48, %v1734_v38 }
 0x1da   : > { %v2975_v10 = vand.u32 2, %v2943_v20  ;;  %v2210_v55 = vsub.f32 %v5575_v29, %v2178_v18  ;;  %v2818_v3 = vand.u32 1, %v5601_v42  ;;  %v2367_v59 = vmul.f32 %v2335_v12, %v5620_v56 }
 0x1db   : > { %v2720_v45 = vmul.f32 %v2688_v54, %v2272_v40  ;;  %v2591_v26 = vmul.f32 %v2559_v60, %v5620_v56  ;;  %v5642_v47 = vadd.s32 1, %v5601_v42  ;;  %v3995_v31 = vor.u32 %v3994_v51, %v3993_v34 }
 0x1dc   : > { %v2496_v17 = vmul.f32 %v2464_v28, %v5581_v36  ;;  %v5645_v53 = vmul.f32 6.2831855, %v2210_v55  ;;  %vm3990_vm8 = vcmp.lt.f32.partialorder %v3989_v58, 8388608.0  ;;  %v2399_v40 = vadd.f32 -0.23570208, %v2367_v59  ;;  %v1727_v58 = vpop.f32.mrf.mxu0 }
 0x1dd   : > { %v2752_v21 = vadd.f32 1.4142135, %v2720_v45  ;;  %v2623_v61 = vadd.f32 0.058925536, %v2591_v26  ;;  %v3996_v15 = vsel %vm3990_vm8, %v3995_v31, %v2113_v62  ;;  %v5648_v29 = vmul.f32 4.0, %v5635_v13 }
 0x1de   : > { %vm5654_vm9 = vcmp.ne.s32.totalorder %v2815_v11, 0  ;;  %v2274_v36 = vmul.f32 %v5645_v53, %v5645_v53  ;;  %v2177_v52 = vmul.f32 0.25, %v3996_v15  ;;  %v2431_v48 = vmul.f32 %v2399_v40, %v5620_v56 }
 0x1df   : > { %v3040_v32 = vsel %vm5614_vm4, %v2752_v21, %v2496_v17  ;;  %v3136_v38 = vsel %vm5614_vm4, %v2496_v17, %v2752_v21  ;;  %v2655_v35 = vmul.f32 %v2623_v61, %v5620_v56  ;;  %v2882_v2 = vand.u32 2, %v5601_v42 }
 0x1e0   : > { %v3072_v20 = vsub.f32 0.0, %v3040_v32  ;;  %v3168_v62 = vsub.f32 0.0, %v3136_v38  ;;  %v2306_v43 = vmul.f32 -0.00027598796, %v2274_v36  ;;  %v2530_v33 = vmul.f32 3.45537e-05, %v2274_v36 }
 0x1e1   : > { %v2209_v11 = vsub.f32 %v5595_v27, %v2177_v52  ;;  %v2463_v18 = vadd.f32 1.4142135, %v2431_v48  ;;  %v2687_v51 = vadd.f32 -0.70710677, %v2655_v35  ;;  %vm5668_vm10 = vcmp.ne.s32.totalorder %v2879_v1, 0 }
 0x1e2   : > { %v3104_v28 = vsel %vm5627_vm6, %v3072_v20, %v3040_v32  ;;  %v3200_v54 = vsel %vm5631_vm7, %v3168_v62, %v3136_v38  ;;  %vm5672_vm11 = vcmp.ne.s32.totalorder %v2975_v10, 0  ;;  %v2338_v27 = vadd.f32 0.011783455, %v2306_v43  ;;  %v1985_v32 = vpop.f32.mrf.mxu1 }
 0x1e3   : > { %3232 = vst [vmem:[%s5342_s6 + $0x90] sm:$0xff] %v3104_v28  ;;  %3264 = vst [vmem:[%s5342_s6 + $0x98] sm:$0xff] %v3200_v54  ;;  %v2562_v34 = vadd.f32 -0.001963963, %v2530_v33  ;;  %v5678_v45 = vmul.f32 6.2831855, %v2209_v11  ;;  %v5681_v49 = vcvt.f32.s32 %v5648_v29  ;;  %v2719_v39 = vmul.f32 %v2687_v51, %v5620_v56 }
 0x1e4   : > { %v2978_v1 = vand.u32 2, %v5642_v47  ;;  %v4013_v55 = vand.u32 2147483647, %v5648_v29  ;;  %v1728_v10 = vadd.f32 %v1727_v58, %v5143_v41  ;;  %v2370_v59 = vmul.f32 %v2338_v27, %v2274_v36 }
 0x1e5   : > { %v2594_v26 = vmul.f32 %v2562_v34, %v2274_v36  ;;  %v5689_v31 = vmul.f32 %v5678_v45, %v5678_v45  ;;  %v4016_v17 = vcvt.s32.f32 %v5681_v49  ;;  %v2495_v21 = vmul.f32 %v2463_v18, %v5608_v19 }
 0x1e6   : > { %v2751_v40 = vadd.f32 1.4142135, %v2719_v39  ;;  %vm5693_vm12 = vcmp.lt.f32.partialorder %v4013_v55, 8388608.0  ;;  %v4018_v56 = vand.u32 2147483648, %v5648_v29  ;;  %v2402_v47 = vadd.f32 -0.23570208, %v2370_v59 }
 0x1e7   : > { %v2626_v15 = vadd.f32 0.058925536, %v2594_v26  ;;  %v2305_v41 = vmul.f32 -0.00027598796, %v5689_v31  ;;  %v2529_v19 = vmul.f32 3.45537e-05, %v5689_v31  ;;  %v5704_v28 = vadd.f32 %v1985_v32, %v1728_v10 }
 0x1e8   : > { %v3039_v38 = vsel %vm5654_vm9, %v2751_v40, %v2495_v21  ;;  %v3135_v52 = vsel %vm5654_vm9, %v2495_v21, %v2751_v40  ;;  %v4017_v20 = vand.u32 2147483647, %v4016_v17  ;;  %v2434_v35 = vmul.f32 %v2402_v47, %v2274_v36 }
 0x1e9   : > { %v3071_v62 = vsub.f32 0.0, %v3039_v38  ;;  %v3167_v48 = vsub.f32 0.0, %v3135_v52  ;;  %v2658_v43 = vmul.f32 %v2626_v15, %v2274_v36  ;;  %v2337_v33 = vadd.f32 0.011783455, %v2305_v41 }
 0x1ea   : > { %v2561_v11 = vadd.f32 -0.001963963, %v2529_v19  ;;  %v4019_v58 = vor.u32 %v4018_v56, %v4017_v20  ;;  %v2466_v18 = vadd.f32 1.4142135, %v2434_v35  ;;  %vm5719_vm13 = vcmp.ne.s32.totalorder %v2818_v3, 0  ;;  %v3884_v19 = vpop.f32.mrf.mxu1 }
 0x1eb   : > { %v3103_v54 = vsel %vm5668_vm10, %v3071_v62, %v3039_v38  ;;  %v3199_v23 = vsel %vm5672_vm11, %v3167_v48, %v3135_v52  ;;  %v2690_v51 = vadd.f32 -0.70710677, %v2658_v43  ;;  %v2369_v27 = vmul.f32 %v2337_v33, %v5689_v31 }
 0x1ec   : > { %3231 = vst [vmem:[%s5342_s6 + $0x80] sm:$0xff] %v3103_v54  ;;  %3263 = vst [vmem:[%s5342_s6 + $0x88] sm:$0xff] %v3199_v23  ;;  %v2593_v34 = vmul.f32 %v2561_v11, %v5689_v31  ;;  %v4020_v39 = vsel %vm5693_vm12, %v4019_v58, %v5648_v29  ;;  %vm5723_vm14 = vcmp.ne.s32.totalorder %v2882_v2, 0  ;;  %vm5727_vm15 = vcmp.ne.s32.totalorder %v2978_v1, 0 }
 0x1ed   : > { %v2722_v55 = vmul.f32 %v2690_v51, %v2274_v36  ;;  %v2180_v10 = vmul.f32 0.25, %v4020_v39  ;;  %v2401_v26 = vadd.f32 -0.23570208, %v2369_v27  ;;  %v2115_v29 = vmul.f32 4.0, %v5704_v28  ;;  %v3834_v36 = vpop.f32.mrf.mxu0 }
 0x1ee   : > { %v2625_v17 = vadd.f32 0.058925536, %v2593_v34  ;;  %v2498_v42 = vmul.f32 %v2466_v18, %v5645_v53  ;;  %v2817_v21 = vand.u32 1, %v5610_v57  ;;  %v2945_v1 = vadd.s32 1, %v5610_v57 }
 0x1ef   : > { %v2754_v3 = vadd.f32 1.4142135, %v2722_v55  ;;  %v2212_v2 = vsub.f32 %v5635_v13, %v2180_v10  ;;  %v2433_v40 = vmul.f32 %v2401_v26, %v5689_v31  ;;  %v5738_v56 = vcvt.f32.s32 %v2115_v29 }
 0x1f0   : > { %v2657_v61 = vmul.f32 %v2625_v17, %v5689_v31  ;;  %v1746_v13 = vadd.f32 %v3834_v36, %v5146_v46  ;;  %vm5747_vm0 = vcmp.ne.s32.totalorder %v2817_v21, 0  ;;  %v4005_v48 = vand.u32 2147483647, %v2115_v29  ;;  %v1739_v21 = vpop.f32.mrf.mxu0 }
 0x1f1   : > { %v3042_v47 = vsel %vm5719_vm13, %v2754_v3, %v2498_v42  ;;  %v3138_v15 = vsel %vm5719_vm13, %v2498_v42, %v2754_v3  ;;  %v5744_v53 = vmul.f32 6.2831855, %v2212_v2  ;;  %v2465_v38 = vadd.f32 1.4142135, %v2433_v40 }
 0x1f2   : > { %v3074_v41 = vsub.f32 0.0, %v3042_v47  ;;  %v3170_v32 = vsub.f32 0.0, %v3138_v15  ;;  %v2689_v52 = vadd.f32 -0.70710677, %v2657_v61  ;;  %v4008_v35 = vcvt.s32.f32 %v5738_v56 }
 0x1f3   : > { %v2276_v62 = vmul.f32 %v5744_v53, %v5744_v53  ;;  %v4010_v11 = vand.u32 2147483648, %v2115_v29  ;;  %v5761_v18 = vadd.f32 %v3884_v19, %v1746_v13  ;;  %v2497_v51 = vmul.f32 %v2465_v38, %v5678_v45 }
 0x1f4   : > { %v3106_v43 = vsel %vm5723_vm14, %v3074_v41, %v3042_v47  ;;  %v3202_v46 = vsel %vm5727_vm15, %v3170_v32, %v3138_v15  ;;  %v2721_v33 = vmul.f32 %v2689_v52, %v5689_v31  ;;  %v4009_v23 = vand.u32 2147483647, %v4008_v35  ;;  %v1997_v35 = vpop.f32.mrf.mxu1 }
 0x1f5   : > { %3234 = vst [vmem:[%s5342_s6 + $0xb0] sm:$0xff] %v3106_v43  ;;  %3266 = vst [vmem:[%s5342_s6 + $0xb8] sm:$0xff] %v3202_v46  ;;  %v2308_v58 = vmul.f32 -0.00027598796, %v2276_v62  ;;  %v2532_v54 = vmul.f32 3.45537e-05, %v2276_v62  ;;  %v3837_v43 = vpop.f32.mrf.mxu0 }
 0x1f6   : > { %v2753_v27 = vadd.f32 1.4142135, %v2721_v33  ;;  %v2881_v34 = vand.u32 2, %v5610_v57  ;;  %v2977_v39 = vand.u32 2, %v2945_v1  ;;  %v4011_v60 = vor.u32 %v4010_v11, %v4009_v23 }
 0x1f7   : > { %v2340_v55 = vadd.f32 0.011783455, %v2308_v58  ;;  %v2564_v12 = vadd.f32 -0.001963963, %v2532_v54  ;;  %v2118_v10 = vmul.f32 4.0, %v5761_v18  ;;  %vm5770_vm1 = vcmp.lt.f32.partialorder %v4005_v48, 8388608.0 }
 0x1f8   : > { %v3041_v31 = vsel %vm5747_vm0, %v2753_v27, %v2497_v51  ;;  %v3137_v59 = vsel %vm5747_vm0, %v2497_v51, %v2753_v27  ;;  %vm2913_vm2 = vcmp.ne.s32.totalorder %v2881_v34, 0  ;;  %vm3009_vm3 = vcmp.ne.s32.totalorder %v2977_v39, 0 }
 0x1f9   : > { %v3073_v45 = vsub.f32 0.0, %v3041_v31  ;;  %v3169_v57 = vsub.f32 0.0, %v3137_v59  ;;  %v2372_v17 = vmul.f32 %v2340_v55, %v2276_v62  ;;  %v2596_v36 = vmul.f32 %v2564_v12, %v2276_v62 }
 0x1fa   : > { %v4012_v42 = vsel %vm5770_vm1, %v4011_v60, %v2115_v29  ;;  %v5776_v3 = vcvt.f32.s32 %v2118_v10  ;;  %v2948_v47 = vadd.s32 1, %v5681_v49  ;;  %v2820_v38 = vand.u32 1, %v5681_v49 }
 0x1fb   : > { %v3105_v2 = vsel %vm2913_vm2, %v3073_v45, %v3041_v31  ;;  %v3201_v40 = vsel %vm3009_vm3, %v3169_v57, %v3137_v59  ;;  %v2404_v61 = vadd.f32 -0.23570208, %v2372_v17  ;;  %v2628_v1 = vadd.f32 0.058925536, %v2596_v36 }
 0x1fc   : > { %3233 = vst [vmem:[%s5342_s6 + $0xa0] sm:$0xff] %v3105_v2  ;;  %3265 = vst [vmem:[%s5342_s6 + $0xa8] sm:$0xff] %v3201_v40  ;;  %v2179_v15 = vmul.f32 0.25, %v4012_v42  ;;  %v4032_v13 = vcvt.s32.f32 %v5776_v3  ;;  %v4029_v52 = vand.u32 2147483647, %v2118_v10  ;;  %v2884_v29 = vand.u32 2, %v5681_v49 }
 0x1fd   : > { %v2436_v41 = vmul.f32 %v2404_v61, %v2276_v62  ;;  %v2660_v32 = vmul.f32 %v2628_v1, %v2276_v62  ;;  %v4034_v48 = vand.u32 2147483648, %v2118_v10  ;;  %v1740_v11 = vadd.f32 %v1739_v21, %v5149_v30  ;;  %v3887_v30 = vpop.f32.mrf.mxu1 }
 0x1fe   : > { %v2211_v19 = vsub.f32 %v5704_v28, %v2179_v15  ;;  %v4033_v20 = vand.u32 2147483647, %v4032_v13  ;;  %v2980_v58 = vand.u32 2, %v2948_v47  ;;  %vm4030_vm4 = vcmp.lt.f32.partialorder %v4029_v52, 8388608.0 }
 0x1ff   : > { %v2468_v46 = vadd.f32 1.4142135, %v2436_v41  ;;  %v2692_v33 = vadd.f32 -0.70710677, %v2660_v32  ;;  %v5788_v27 = vadd.f32 %v1997_v35, %v1740_v11  ;;  %v1758_v49 = vadd.f32 %v3837_v43, %v5152_v16  ;;  %v2009_v31 = vpop.f32.mrf.mxu1 }
 0x200   : > { %v5786_v54 = vmul.f32 6.2831855, %v2211_v19  ;;  %v4035_v23 = vor.u32 %v4034_v48, %v4033_v20  ;;  %vm2852_vm5 = vcmp.ne.s32.totalorder %v2820_v38, 0  ;;  %vm5791_vm6 = vcmp.ne.s32.totalorder %v2884_v29, 0  ;;  %v1751_v48 = vpop.f32.mrf.mxu0 }
 0x201   : > { %v2724_v51 = vmul.f32 %v2692_v33, %v2276_v62  ;;  %v2500_v55 = vmul.f32 %v2468_v46, %v5744_v53  ;;  %v2117_v62 = vmul.f32 4.0, %v5788_v27  ;;  %vm5799_vm7 = vcmp.ne.s32.totalorder %v2980_v58, 0 }
 0x202   : > { %v2275_v34 = vmul.f32 %v5786_v54, %v5786_v54  ;;  %v4036_v39 = vsel %vm4030_vm4, %v4035_v23, %v2118_v10  ;;  %v2947_v26 = vadd.s32 1, %v5738_v56  ;;  %v5805_v17 = vadd.f32 %v3887_v30, %v1758_v49 }
 0x203   : > { %v2756_v12 = vadd.f32 1.4142135, %v2724_v51  ;;  %v2182_v60 = vmul.f32 0.25, %v4036_v39  ;;  %v2819_v2 = vand.u32 1, %v5738_v56  ;;  %v2883_v40 = vand.u32 2, %v5738_v56 }
 0x204   : > { %v2307_v16 = vmul.f32 -0.00027598796, %v2275_v34  ;;  %v2531_v59 = vmul.f32 3.45537e-05, %v2275_v34  ;;  %v5811_v1 = vcvt.f32.s32 %v2117_v62  ;;  %v2979_v41 = vand.u32 2, %v2947_v26 }
 0x205   : > { %v3044_v45 = vsel %vm2852_vm5, %v2756_v12, %v2500_v55  ;;  %v3140_v57 = vsel %vm2852_vm5, %v2500_v55, %v2756_v12  ;;  %v2214_v10 = vsub.f32 %v5761_v18, %v2182_v60  ;;  %v4021_v56 = vand.u32 2147483647, %v2117_v62 }
 0x206   : > { %v3076_v53 = vsub.f32 0.0, %v3044_v45  ;;  %v3172_v36 = vsub.f32 0.0, %v3140_v57  ;;  %v2339_v42 = vadd.f32 0.011783455, %v2307_v16  ;;  %v2563_v21 = vadd.f32 -0.001963963, %v2531_v59 }
 0x207   : > { %v5809_v61 = vmul.f32 6.2831855, %v2214_v10  ;;  %v4024_v38 = vcvt.s32.f32 %v5811_v1  ;;  %v4026_v19 = vand.u32 2147483648, %v2117_v62  ;;  %v5825_v20 = vmul.f32 4.0, %v5805_v17 }
 0x208   : > { %v3108_v47 = vsel %vm5791_vm6, %v3076_v53, %v3044_v45  ;;  %v3204_v18 = vsel %vm5799_vm7, %v3172_v36, %v3140_v57  ;;  %v2371_v15 = vmul.f32 %v2339_v42, %v2275_v34  ;;  %v2595_v13 = vmul.f32 %v2563_v21, %v2275_v34  ;;  %v3840_v45 = vpop.f32.mrf.mxu0 }
 0x209   : > { %3236 = vst [vmem:[%s5342_s6 + $0xd0] sm:$0xff] %v3108_v47  ;;  %3268 = vst [vmem:[%s5342_s6 + $0xd8] sm:$0xff] %v3204_v18  ;;  %v5821_v32 = vmul.f32 %v5809_v61, %v5809_v61  ;;  %v4025_v46 = vand.u32 2147483647, %v4024_v38  ;;  %vm5829_vm8 = vcmp.ne.s32.totalorder %v2819_v2, 0  ;;  %v2822_v23 = vand.u32 1, %v5776_v3 }
 0x20a   : > { %v2403_v52 = vadd.f32 -0.23570208, %v2371_v15  ;;  %v2627_v29 = vadd.f32 0.058925536, %v2595_v13  ;;  %v1752_v39 = vadd.f32 %v1751_v48, %v5155_v5  ;;  %vm5835_vm9 = vcmp.ne.s32.totalorder %v2883_v40, 0 }
 0x20b   : > { %v2310_v35 = vmul.f32 -0.00027598796, %v5821_v32  ;;  %v2534_v43 = vmul.f32 3.45537e-05, %v5821_v32  ;;  %v4027_v28 = vor.u32 %v4026_v19, %v4025_v46  ;;  %vm4022_vm10 = vcmp.lt.f32.partialorder %v4021_v56, 8388608.0 }
 0x20c   : > { %v2435_v33 = vmul.f32 %v2403_v52, %v2275_v34  ;;  %v2659_v11 = vmul.f32 %v2627_v29, %v2275_v34  ;;  %v5840_v60 = vcvt.f32.s32 %v5825_v20  ;;  %vm5842_vm11 = vcmp.ne.s32.totalorder %v2979_v41, 0 }
 0x20d   : > { %v2342_v51 = vadd.f32 0.011783455, %v2310_v35  ;;  %v2566_v49 = vadd.f32 -0.001963963, %v2534_v43  ;;  %v4028_v5 = vsel %vm4022_vm10, %v4027_v28, %v2117_v62  ;;  %v2886_v10 = vand.u32 2, %v5776_v3  ;;  %v3890_v35 = vpop.f32.mrf.mxu1 }
 0x20e   : > { %v2467_v30 = vadd.f32 1.4142135, %v2435_v33  ;;  %v2691_v55 = vadd.f32 -0.70710677, %v2659_v11  ;;  %v2950_v53 = vadd.s32 1, %v5776_v3  ;;  %v2181_v36 = vmul.f32 0.25, %v4028_v5 }
 0x20f   : > { %v2374_v59 = vmul.f32 %v2342_v51, %v5821_v32  ;;  %v2598_v26 = vmul.f32 %v2566_v49, %v5821_v32  ;;  %v4048_v2 = vcvt.s32.f32 %v5840_v60  ;;  %v5851_v40 = vadd.f32 %v2009_v31, %v1752_v39 }
 0x210   : > { %v2723_v57 = vmul.f32 %v2691_v55, %v2275_v34  ;;  %v2499_v47 = vmul.f32 %v2467_v30, %v5786_v54  ;;  %vm5854_vm12 = vcmp.ne.s32.totalorder %v2822_v23, 0  ;;  %v2213_v34 = vsub.f32 %v5788_v27, %v2181_v36 }
 0x211   : > { %v2406_v42 = vadd.f32 -0.23570208, %v2374_v59  ;;  %v2630_v21 = vadd.f32 0.058925536, %v2598_v26  ;;  %v1770_v62 = vadd.f32 %v3840_v45, %v5158_v25  ;;  %v4045_v41 = vand.u32 2147483647, %v5825_v20 }
 0x212   : > { %v2755_v18 = vadd.f32 1.4142135, %v2723_v57  ;;  %v4049_v56 = vand.u32 2147483647, %v4048_v2  ;;  %v5867_v52 = vmul.f32 6.2831855, %v2213_v34 }
 0x213   : > { %v2438_v3 = vmul.f32 %v2406_v42, %v5821_v32  ;;  %v2662_v13 = vmul.f32 %v2630_v21, %v5821_v32  ;;  %v4050_v27 = vand.u32 2147483648, %v5825_v20  ;;  %vm5870_vm13 = vcmp.ne.s32.totalorder %v2886_v10, 0 }
 0x214   : > { %v3043_v38 = vsel %vm5829_vm8, %v2755_v18, %v2499_v47  ;;  %v3139_v54 = vsel %vm5829_vm8, %v2499_v47, %v2755_v18  ;;  %v2982_v46 = vand.u32 2, %v2950_v53  ;;  %v2277_v33 = vmul.f32 %v5867_v52, %v5867_v52 }
 0x215   : > { %v3075_v25 = vsub.f32 0.0, %v3043_v38  ;;  %v3171_v29 = vsub.f32 0.0, %v3139_v54  ;;  %v2470_v19 = vadd.f32 1.4142135, %v2438_v3  ;;  %v2694_v48 = vadd.f32 -0.70710677, %v2662_v13 }
 0x216   : > { %v4051_v11 = vor.u32 %v4050_v27, %v4049_v56  ;;  %vm4046_vm14 = vcmp.lt.f32.partialorder %v4045_v41, 8388608.0  ;;  %v2309_v49 = vmul.f32 -0.00027598796, %v2277_v33  ;;  %v2533_v28 = vmul.f32 3.45537e-05, %v2277_v33 }
 0x217   : > { %v3107_v58 = vsel %vm5835_vm9, %v3075_v25, %v3043_v38  ;;  %v3203_v23 = vsel %vm5842_vm11, %v3171_v29, %v3139_v54  ;;  %v2726_v51 = vmul.f32 %v2694_v48, %v5821_v32  ;;  %v5884_v30 = vadd.f32 %v3890_v35, %v1770_v62 }
 0x218   : > { %3235 = vst [vmem:[%s5342_s6 + $0xc0] sm:$0xff] %v3107_v58  ;;  %3267 = vst [vmem:[%s5342_s6 + $0xc8] sm:$0xff] %v3203_v23  ;;  %v4052_v39 = vsel %vm4046_vm14, %v4051_v11, %v5825_v20  ;;  %v2502_v55 = vmul.f32 %v2470_v19, %v5809_v61  ;;  %v2119_v12 = vmul.f32 4.0, %v5851_v40  ;;  %vm5888_vm15 = vcmp.ne.s32.totalorder %v2982_v46, 0 }
 0x219   : > { %v2758_v31 = vadd.f32 1.4142135, %v2726_v51  ;;  %v2184_v59 = vmul.f32 0.25, %v4052_v39  ;;  %v2341_v32 = vadd.f32 0.011783455, %v2309_v49  ;;  %v2821_v5 = vand.u32 1, %v5811_v1 }
 0x21a   : > { %v2565_v26 = vadd.f32 -0.001963963, %v2533_v28  ;;  %v5898_v61 = vadd.s32 1, %v5811_v1  ;;  %v2885_v21 = vand.u32 2, %v5811_v1  ;;  %v5904_v47 = vcvt.f32.s32 %v2119_v12 }
 0x21b   : > { %v3046_v45 = vsel %vm5854_vm12, %v2758_v31, %v2502_v55  ;;  %v3142_v20 = vsel %vm5854_vm12, %v2502_v55, %v2758_v31  ;;  %v2216_v57 = vsub.f32 %v5805_v17, %v2184_v59  ;;  %v2373_v36 = vmul.f32 %v2341_v32, %v2277_v33  ;;  %v1763_v55 = vpop.f32.mrf.mxu0 }
 0x21c   : > { %v3078_v10 = vsub.f32 0.0, %v3046_v45  ;;  %v3174_v53 = vsub.f32 0.0, %v3142_v20  ;;  %v2597_v42 = vmul.f32 %v2565_v26, %v2277_v33  ;;  %v5907_v18 = vmul.f32 4.0, %v5884_v30 }
 0x21d   : > { %v5902_v2 = vmul.f32 6.2831855, %v2216_v57  ;;  %v2405_v17 = vadd.f32 -0.23570208, %v2373_v36  ;;  %vm5915_vm0 = vcmp.ne.s32.totalorder %v2821_v5, 0  ;;  %v2981_v1 = vand.u32 2, %v5898_v61 }
 0x21e   : > { %v3110_v15 = vsel %vm5870_vm13, %v3078_v10, %v3046_v45  ;;  %v3206_v34 = vsel %vm5888_vm15, %v3174_v53, %v3142_v20  ;;  %v2629_v62 = vadd.f32 0.058925536, %v2597_v42  ;;  %v5923_v41 = vadd.s32 1, %v5840_v60  ;;  %v3843_v42 = vpop.f32.mrf.mxu0 }
 0x21f   : > { %3238 = vst [vmem:[%s5342_s6 + $0xf0] sm:$0xff] %v3110_v15  ;;  %3270 = vst [vmem:[%s5342_s6 + $0xf8] sm:$0xff] %v3206_v34  ;;  %v2280_v13 = vmul.f32 %v5902_v2, %v5902_v2  ;;  %v4040_v56 = vcvt.s32.f32 %v5904_v47  ;;  %v2437_v38 = vmul.f32 %v2405_v17, %v2277_v33  ;;  %v4037_v27 = vand.u32 2147483647, %v2119_v12  ;;  %v2021_v34 = vpop.f32.mrf.mxu1 }
 0x220   : > { %v2661_v54 = vmul.f32 %v2629_v62, %v2277_v33  ;;  %v4042_v25 = vand.u32 2147483648, %v2119_v12  ;;  %v5927_v35 = vcvt.f32.s32 %v5907_v18  ;;  %vm5929_vm1 = vcmp.ne.s32.totalorder %v2885_v21, 0 }
 0x221   : > { %v2312_v29 = vmul.f32 -0.00027598796, %v2280_v13  ;;  %v2536_v19 = vmul.f32 3.45537e-05, %v2280_v13  ;;  %v4041_v48 = vand.u32 2147483647, %v4040_v56  ;;  %v1782_v3 = vadd.f32 %v3843_v42, %v5164_v0 }
 0x222   : > { %v2469_v43 = vadd.f32 1.4142135, %v2437_v38  ;;  %v2693_v46 = vadd.f32 -0.70710677, %v2661_v54  ;;  %v2824_v58 = vand.u32 1, %v5840_v60  ;;  %v2888_v23 = vand.u32 2, %v5840_v60 }
 0x223   : > { %v2344_v51 = vadd.f32 0.011783455, %v2312_v29  ;;  %v2568_v49 = vadd.f32 -0.001963963, %v2536_v19  ;;  %v4043_v28 = vor.u32 %v4042_v25, %v4041_v48  ;;  %v4061_v39 = vand.u32 2147483647, %v5907_v18  ;;  %v3893_v48 = vpop.f32.mrf.mxu1 }
 0x224   : > { %v2725_v31 = vmul.f32 %v2693_v46, %v2277_v33  ;;  %v2984_v59 = vand.u32 2, %v5923_v41  ;;  %vm4038_vm2 = vcmp.lt.f32.partialorder %v4037_v27, 8388608.0  ;;  %v4064_v16 = vcvt.s32.f32 %v5927_v35 }
 0x225   : > { %v2501_v32 = vmul.f32 %v2469_v43, %v5867_v52  ;;  %v2376_v26 = vmul.f32 %v2344_v51, %v2280_v13  ;;  %v2600_v5 = vmul.f32 %v2568_v49, %v2280_v13  ;;  %v4044_v45 = vsel %vm4038_vm2, %v4043_v28, %v2119_v12 }
 0x226   : > { %v2757_v20 = vadd.f32 1.4142135, %v2725_v31  ;;  %v2183_v61 = vmul.f32 0.25, %v4044_v45  ;;  %v4065_v60 = vand.u32 2147483647, %v4064_v16  ;;  %v4066_v57 = vand.u32 2147483648, %v5907_v18 }
 0x227   : > { %v2408_v10 = vadd.f32 -0.23570208, %v2376_v26  ;;  %v2632_v53 = vadd.f32 0.058925536, %v2600_v5  ;;  %vm5940_vm3 = vcmp.lt.f32.partialorder %v4061_v39, 8388608.0  ;;  %v1764_v33 = vadd.f32 %v1763_v55, %v5161_v4 }
 0x228   : > { %v3045_v52 = vsel %vm5915_vm0, %v2757_v20, %v2501_v32  ;;  %v3141_v12 = vsel %vm5915_vm0, %v2501_v32, %v2757_v20  ;;  %v2215_v21 = vsub.f32 %v5851_v40, %v2183_v61  ;;  %v4067_v15 = vor.u32 %v4066_v57, %v4065_v60 }
 0x229   : > { %v3077_v17 = vsub.f32 0.0, %v3045_v52  ;;  %v3173_v62 = vsub.f32 0.0, %v3141_v12  ;;  %v2440_v41 = vmul.f32 %v2408_v10, %v2280_v13  ;;  %v2664_v56 = vmul.f32 %v2632_v53, %v2280_v13 }
 0x22a   : > { %vm3013_vm4 = vcmp.ne.s32.totalorder %v2981_v1, 0  ;;  %v5950_v38 = vmul.f32 6.2831855, %v2215_v21  ;;  %v4068_v4 = vsel %vm5940_vm3, %v4067_v15, %v5907_v18  ;;  %v5962_v19 = vadd.f32 %v2021_v34, %v1764_v33 }
 0x22b   : > { %v3109_v54 = vsel %vm5929_vm1, %v3077_v17, %v3045_v52  ;;  %v3205_v40 = vsel %vm3013_vm4, %v3173_v62, %v3141_v12  ;;  %v2472_v27 = vadd.f32 1.4142135, %v2440_v41  ;;  %v2696_v25 = vadd.f32 -0.70710677, %v2664_v56  ;;  %v1775_v62 = vpop.f32.mrf.mxu0 }
 0x22c   : > { %3237 = vst [vmem:[%s5342_s6 + $0xe0] sm:$0xff] %v3109_v54  ;;  %3269 = vst [vmem:[%s5342_s6 + $0xe8] sm:$0xff] %v3205_v40  ;;  %v2279_v29 = vmul.f32 %v5950_v38, %v5950_v38  ;;  %v2186_v1 = vmul.f32 0.25, %v4068_v4  ;;  %vm2856_vm5 = vcmp.ne.s32.totalorder %v2824_v58, 0  ;;  %vm5964_vm6 = vcmp.ne.s32.totalorder %v2888_v23, 0 }
 0x22d   : > { %v2728_v43 = vmul.f32 %v2696_v25, %v2280_v13  ;;  %vm5968_vm7 = vcmp.ne.s32.totalorder %v2984_v59, 0  ;;  %v2951_v51 = vadd.s32 1, %v5904_v47  ;;  %v2504_v28 = vmul.f32 %v2472_v27, %v5902_v2  ;;  %v3846_v33 = vpop.f32.mrf.mxu0 }
 0x22e   : > { %v2311_v46 = vmul.f32 -0.00027598796, %v2279_v29  ;;  %v2535_v11 = vmul.f32 3.45537e-05, %v2279_v29  ;;  %v2218_v49 = vsub.f32 %v5884_v30, %v2186_v1  ;;  %v2121_v13 = vmul.f32 4.0, %v5962_v19 }
 0x22f   : > { %v2760_v39 = vadd.f32 1.4142135, %v2728_v43  ;;  %v5976_v58 = vadd.f32 %v3893_v48, %v1782_v3  ;;  %v2823_v32 = vand.u32 1, %v5904_v47  ;;  %v2887_v26 = vand.u32 2, %v5904_v47 }
 0x230   : > { %v2343_v23 = vadd.f32 0.011783455, %v2311_v46  ;;  %v2567_v55 = vadd.f32 -0.001963963, %v2535_v11  ;;  %v5978_v31 = vmul.f32 6.2831855, %v2218_v49  ;;  %v5986_v60 = vcvt.f32.s32 %v2121_v13  ;;  %v2033_v49 = vpop.f32.mrf.mxu1 }
 0x231   : > { %v3048_v59 = vsel %vm2856_vm5, %v2760_v39, %v2504_v28  ;;  %v3144_v16 = vsel %vm2856_vm5, %v2504_v28, %v2760_v39  ;;  %v2983_v20 = vand.u32 2, %v2951_v51  ;;  %v5989_v57 = vmul.f32 4.0, %v5976_v58 }
 0x232   : > { %v3080_v30 = vsub.f32 0.0, %v3048_v59  ;;  %v3176_v5 = vsub.f32 0.0, %v3144_v16  ;;  %v2375_v2 = vmul.f32 %v2343_v23, %v2279_v29  ;;  %v2599_v45 = vmul.f32 %v2567_v55, %v2279_v29 }
 0x233   : > { %v5984_v61 = vmul.f32 %v5978_v31, %v5978_v31  ;;  %vm5997_vm8 = vcmp.ne.s32.totalorder %v2823_v32, 0  ;;  %v4056_v12 = vcvt.s32.f32 %v5986_v60  ;;  %v4053_v34 = vand.u32 2147483647, %v2121_v13 }
 0x234   : > { %v3112_v10 = vsel %vm5964_vm6, %v3080_v30, %v3048_v59  ;;  %v3208_v47 = vsel %vm5968_vm7, %v3176_v5, %v3144_v16  ;;  %v2407_v53 = vadd.f32 -0.23570208, %v2375_v2  ;;  %v2631_v36 = vadd.f32 0.058925536, %v2599_v45 }
 0x235   : > { %3240 = vst [vmem:[%s5342_s6 + $0x110] sm:$0xff] %v3112_v10  ;;  %3272 = vst [vmem:[%s5342_s6 + $0x118] sm:$0xff] %v3208_v47  ;;  %v2314_v42 = vmul.f32 -0.00027598796, %v5984_v61  ;;  %v2538_v52 = vmul.f32 3.45537e-05, %v5984_v61  ;;  %v6005_v3 = vcvt.f32.s32 %v5989_v57  ;;  %v1776_v0 = vadd.f32 %v1775_v62, %v5167_v37 }
 0x236   : > { %v2439_v21 = vmul.f32 %v2407_v53, %v2279_v29  ;;  %v2663_v15 = vmul.f32 %v2631_v36, %v2279_v29  ;;  %v4058_v17 = vand.u32 2147483648, %v2121_v13  ;;  %v4057_v4 = vand.u32 2147483647, %v4056_v12 }
 0x237   : > { %v2346_v41 = vadd.f32 0.011783455, %v2314_v42  ;;  %v2570_v56 = vadd.f32 -0.001963963, %v2538_v52  ;;  %vm6007_vm9 = vcmp.ne.s32.totalorder %v2887_v26, 0  ;;  %vm6011_vm10 = vcmp.ne.s32.totalorder %v2983_v20, 0 }
 0x238   : > { %v2471_v54 = vadd.f32 1.4142135, %v2439_v21  ;;  %v2695_v40 = vadd.f32 -0.70710677, %v2663_v15  ;;  %v2826_v1 = vand.u32 1, %v5927_v35  ;;  %v4059_v18 = vor.u32 %v4058_v17, %v4057_v4  ;;  %v1787_v15 = vpop.f32.mrf.mxu0 }
 0x239   : > { %v2378_v48 = vmul.f32 %v2346_v41, %v5984_v61  ;;  %v2602_v43 = vmul.f32 %v2570_v56, %v5984_v61  ;;  %v2890_v11 = vand.u32 2, %v5927_v35  ;;  %vm4054_vm11 = vcmp.lt.f32.partialorder %v4053_v34, 8388608.0 }
 0x23a   : > { %v2727_v46 = vmul.f32 %v2695_v40, %v2279_v29  ;;  %v4080_v51 = vcvt.s32.f32 %v6005_v3  ;;  %v2954_v23 = vadd.s32 1, %v5927_v35  ;;  %v4060_v55 = vsel %vm4054_vm11, %v4059_v18, %v2121_v13 }
 0x23b   : > { %v2410_v28 = vadd.f32 -0.23570208, %v2378_v48  ;;  %v2634_v39 = vadd.f32 0.058925536, %v2602_v43  ;;  %v2503_v59 = vmul.f32 %v2471_v54, %v5950_v38  ;;  %v2185_v32 = vmul.f32 0.25, %v4060_v55 }
 0x23c   : > { %v2759_v16 = vadd.f32 1.4142135, %v2727_v46  ;;  %v4081_v26 = vand.u32 2147483647, %v4080_v51  ;;  %v4077_v29 = vand.u32 2147483647, %v5989_v57  ;;  %v6026_v5 = vadd.f32 %v2033_v49, %v1776_v0  ;;  %v3896_v46 = vpop.f32.mrf.mxu1 }
 0x23d   : > { %v2442_v30 = vmul.f32 %v2410_v28, %v5984_v61  ;;  %v2666_v37 = vmul.f32 %v2634_v39, %v5984_v61  ;;  %v2217_v38 = vsub.f32 %v5962_v19, %v2185_v32  ;;  %v4082_v13 = vand.u32 2147483648, %v5989_v57 }
 0x23e   : > { %v3047_v2 = vsel %vm5997_vm8, %v2759_v16, %v2503_v59  ;;  %v3143_v35 = vsel %vm5997_vm8, %v2503_v59, %v2759_v16  ;;  %vm6034_vm12 = vcmp.ne.s32.totalorder %v2826_v1, 0  ;;  %v2986_v36 = vand.u32 2, %v2954_v23 }
 0x23f   : > { %v3079_v45 = vsub.f32 0.0, %v3047_v2  ;;  %v3175_v20 = vsub.f32 0.0, %v3143_v35  ;;  %v2474_v10 = vadd.f32 1.4142135, %v2442_v30  ;;  %v2698_v47 = vadd.f32 -0.70710677, %v2666_v37 }
 0x240   : > { %v6038_v42 = vmul.f32 6.2831855, %v2217_v38  ;;  %v4083_v52 = vor.u32 %v4082_v13, %v4081_v26  ;;  %vm4078_vm13 = vcmp.lt.f32.partialorder %v4077_v29, 8388608.0  ;;  %vm6047_vm14 = vcmp.ne.s32.totalorder %v2890_v11, 0 }
 0x241   : > { %v3111_v12 = vsel %vm6007_vm9, %v3079_v45, %v3047_v2  ;;  %v3207_v19 = vsel %vm6011_vm10, %v3175_v20, %v3143_v35  ;;  %v2730_v21 = vmul.f32 %v2698_v47, %v5984_v61  ;;  %v2123_v62 = vmul.f32 4.0, %v6026_v5 }
 0x242   : > { %3239 = vst [vmem:[%s5342_s6 + $0x100] sm:$0xff] %v3111_v12  ;;  %3271 = vst [vmem:[%s5342_s6 + $0x108] sm:$0xff] %v3207_v19  ;;  %v2281_v34 = vmul.f32 %v6038_v42, %v6038_v42  ;;  %v4084_v17 = vsel %vm4078_vm13, %v4083_v52, %v5989_v57  ;;  %v2506_v41 = vmul.f32 %v2474_v10, %v5978_v31  ;;  %vm6057_vm15 = vcmp.ne.s32.totalorder %v2986_v36, 0 }
 0x243   : > { %v2762_v56 = vadd.f32 1.4142135, %v2730_v21  ;;  %v2188_v4 = vmul.f32 0.25, %v4084_v17  ;;  %v1794_v61 = vadd.f32 %v3846_v33, %v5170_v8  ;;  %v6061_v25 = vcvt.f32.s32 %v2123_v62 }
 0x244   : > { %v2313_v40 = vmul.f32 -0.00027598796, %v2281_v34  ;;  %v2537_v27 = vmul.f32 3.45537e-05, %v2281_v34  ;;  %v2825_v31 = vand.u32 1, %v5986_v60  ;;  %v2953_v11 = vadd.s32 1, %v5986_v60 }
 0x245   : > { %v3050_v1 = vsel %vm6034_vm12, %v2762_v56, %v2506_v41  ;;  %v3146_v57 = vsel %vm6034_vm12, %v2506_v41, %v2762_v56  ;;  %v2220_v8 = vsub.f32 %v5976_v58, %v2188_v4  ;;  %v4069_v49 = vand.u32 2147483647, %v2123_v62 }
 0x246   : > { %v3082_v48 = vsub.f32 0.0, %v3050_v1  ;;  %v3178_v43 = vsub.f32 0.0, %v3146_v57  ;;  %v2345_v18 = vadd.f32 0.011783455, %v2313_v40  ;;  %v2569_v0 = vadd.f32 -0.001963963, %v2537_v27 }
 0x247   : > { %v6070_v51 = vmul.f32 6.2831855, %v2220_v8  ;;  %v4072_v28 = vcvt.s32.f32 %v6061_v25  ;;  %v4074_v32 = vand.u32 2147483648, %v2123_v62  ;;  %v6083_v26 = vadd.f32 %v3896_v46, %v1794_v61 }
 0x248   : > { %v3114_v39 = vsel %vm6047_vm14, %v3082_v48, %v3050_v1  ;;  %v3210_v23 = vsel %vm6057_vm15, %v3178_v43, %v3146_v57  ;;  %v2377_v55 = vmul.f32 %v2345_v18, %v2281_v34  ;;  %v2601_v58 = vmul.f32 %v2569_v0, %v2281_v34 }
 0x249   : > { %3242 = vst [vmem:[%s5342_s6 + $0x130] sm:$0xff] %v3114_v39  ;;  %3274 = vst [vmem:[%s5342_s6 + $0x138] sm:$0xff] %v3210_v23  ;;  %v6081_v59 = vmul.f32 %v6070_v51, %v6070_v51  ;;  %v4073_v16 = vand.u32 2147483647, %v4072_v28  ;;  %v2889_v29 = vand.u32 2, %v5986_v60  ;;  %vm6086_vm0 = vcmp.ne.s32.totalorder %v2825_v31, 0 }
 0x24a   : > { %v2409_v30 = vadd.f32 -0.23570208, %v2377_v55  ;;  %v2633_v37 = vadd.f32 0.058925536, %v2601_v58  ;;  %v2985_v35 = vand.u32 2, %v2953_v11  ;;  %v2828_v47 = vand.u32 1, %v6005_v3 }
 0x24b   : > { %v2316_v38 = vmul.f32 -0.00027598796, %v6081_v59  ;;  %v2540_v13 = vmul.f32 3.45537e-05, %v6081_v59  ;;  %v4075_v45 = vor.u32 %v4074_v32, %v4073_v16  ;;  %vm4070_vm1 = vcmp.lt.f32.partialorder %v4069_v49, 8388608.0 }
 0x24c   : > { %v2441_v20 = vmul.f32 %v2409_v30, %v2281_v34  ;;  %v2665_v10 = vmul.f32 %v2633_v37, %v2281_v34  ;;  %v2126_v60 = vmul.f32 4.0, %v6083_v26  ;;  %v2956_v19 = vadd.s32 1, %v6005_v3 }
 0x24d   : > { %v2348_v53 = vadd.f32 0.011783455, %v2316_v38  ;;  %v2572_v36 = vadd.f32 -0.001963963, %v2540_v13  ;;  %v4076_v52 = vsel %vm4070_vm1, %v4075_v45, %v2123_v62  ;;  %vm6095_vm2 = vcmp.ne.s32.totalorder %v2889_v29, 0  ;;  %v2045_v29 = vpop.f32.mrf.mxu1 }
 0x24e   : > { %v2473_v33 = vadd.f32 1.4142135, %v2441_v20  ;;  %v2697_v12 = vadd.f32 -0.70710677, %v2665_v10  ;;  %v2187_v21 = vmul.f32 0.25, %v4076_v52  ;;  %v6101_v4 = vcvt.f32.s32 %v2126_v60 }
 0x24f   : > { %v2380_v41 = vmul.f32 %v2348_v53, %v6081_v59  ;;  %v2604_v56 = vmul.f32 %v2572_v36, %v6081_v59  ;;  %vm6103_vm3 = vcmp.ne.s32.totalorder %v2985_v35, 0  ;;  %v2892_v54 = vand.u32 2, %v6005_v3 }
 0x250   : > { %v2729_v61 = vmul.f32 %v2697_v12, %v2281_v34  ;;  %v2219_v40 = vsub.f32 %v6026_v5, %v2187_v21  ;;  %v4096_v57 = vcvt.s32.f32 %v6101_v4  ;;  %v1788_v31 = vadd.f32 %v1787_v15, %v5173_v9  ;;  %v3849_v21 = vpop.f32.mrf.mxu0 }
 0x251   : > { %v2412_v27 = vadd.f32 -0.23570208, %v2380_v41  ;;  %v2636_v1 = vadd.f32 0.058925536, %v2604_v56  ;;  %v2505_v8 = vmul.f32 %v2473_v33, %v6038_v42  ;;  %vm6112_vm4 = vcmp.ne.s32.totalorder %v2828_v47, 0 }
 0x252   : > { %v2761_v48 = vadd.f32 1.4142135, %v2729_v61  ;;  %v2988_v34 = vand.u32 2, %v2956_v19  ;;  %v6116_v18 = vmul.f32 6.2831855, %v2219_v40  ;;  %v4098_v49 = vand.u32 2147483648, %v2126_v60 }
 0x253   : > { %v2444_v3 = vmul.f32 %v2412_v27, %v6081_v59  ;;  %v2668_v5 = vmul.f32 %v2636_v1, %v6081_v59  ;;  %v4093_v0 = vand.u32 2147483647, %v2126_v60  ;;  %v4097_v46 = vand.u32 2147483647, %v4096_v57 }
 0x254   : > { %v3049_v11 = vsel %vm6086_vm0, %v2761_v48, %v2505_v8  ;;  %v3145_v9 = vsel %vm6086_vm0, %v2505_v8, %v2761_v48  ;;  %v2283_v42 = vmul.f32 %v6116_v18, %v6116_v18  ;;  %vm6126_vm5 = vcmp.ne.s32.totalorder %v2892_v54, 0  ;;  %v3899_v8 = vpop.f32.mrf.mxu1 }
 0x255   : > { %v3081_v28 = vsub.f32 0.0, %v3049_v11  ;;  %v3177_v39 = vsub.f32 0.0, %v3145_v9  ;;  %v2476_v23 = vadd.f32 1.4142135, %v2444_v3  ;;  %v2700_v55 = vadd.f32 -0.70710677, %v2668_v5  ;;  %v1799_v3 = vpop.f32.mrf.mxu0 }
 0x256   : > { %vm6130_vm6 = vcmp.ne.s32.totalorder %v2988_v34, 0  ;;  %v2315_v32 = vmul.f32 -0.00027598796, %v2283_v42  ;;  %v2539_v30 = vmul.f32 3.45537e-05, %v2283_v42  ;;  %v4099_v37 = vor.u32 %v4098_v49, %v4097_v46 }
 0x257   : > { %v3113_v2 = vsel %vm6095_vm2, %v3081_v28, %v3049_v11  ;;  %v3209_v35 = vsel %vm6103_vm3, %v3177_v39, %v3145_v9  ;;  %v2732_v38 = vmul.f32 %v2700_v55, %v6081_v59  ;;  %vm4094_vm7 = vcmp.lt.f32.partialorder %v4093_v0, 8388608.0 }
 0x258   : > { %3241 = vst [vmem:[%s5342_s6 + $0x120] sm:$0xff] %v3113_v2  ;;  %3273 = vst [vmem:[%s5342_s6 + $0x128] sm:$0xff] %v3209_v35  ;;  %v2347_v13 = vadd.f32 0.011783455, %v2315_v32  ;;  %v2571_v45 = vadd.f32 -0.001963963, %v2539_v30  ;;  %v4100_v10 = vsel %vm4094_vm7, %v4099_v37, %v2126_v60  ;;  %v2508_v47 = vmul.f32 %v2476_v23, %v6070_v51 }
 0x259   : > { %v2955_v20 = vadd.s32 1, %v6061_v25  ;;  %v2764_v53 = vadd.f32 1.4142135, %v2732_v38  ;;  %v2190_v36 = vmul.f32 0.25, %v4100_v10  ;;  %v6143_v52 = vadd.f32 %v2045_v29, %v1788_v31  ;;  %v2057_v29 = vpop.f32.mrf.mxu1 }
 0x25a   : > { %v2379_v33 = vmul.f32 %v2347_v13, %v2283_v42  ;;  %v2603_v12 = vmul.f32 %v2571_v45, %v2283_v42  ;;  %v2827_v19 = vand.u32 1, %v6061_v25  ;;  %v2891_v59 = vand.u32 2, %v6061_v25 }
 0x25b   : > { %v3052_v15 = vsel %vm6112_vm4, %v2764_v53, %v2508_v47  ;;  %v3148_v17 = vsel %vm6112_vm4, %v2508_v47, %v2764_v53  ;;  %v2222_v51 = vsub.f32 %v6083_v26, %v2190_v36  ;;  %v2125_v60 = vmul.f32 4.0, %v6143_v52 }
 0x25c   : > { %v3084_v41 = vsub.f32 0.0, %v3052_v15  ;;  %v3180_v56 = vsub.f32 0.0, %v3148_v17  ;;  %v2411_v61 = vadd.f32 -0.23570208, %v2379_v33  ;;  %v2635_v62 = vadd.f32 0.058925536, %v2603_v12 }
 0x25d   : > { %v2987_v54 = vand.u32 2, %v2955_v20  ;;  %v6153_v40 = vmul.f32 6.2831855, %v2222_v51  ;;  %v6155_v25 = vcvt.f32.s32 %v2125_v60  ;;  %v1806_v27 = vadd.f32 %v3849_v21, %v5176_v7 }
 0x25e   : > { %v3116_v1 = vsel %vm6126_vm5, %v3084_v41, %v3052_v15  ;;  %v3212_v26 = vsel %vm6130_vm6, %v3180_v56, %v3148_v17  ;;  %v2443_v57 = vmul.f32 %v2411_v61, %v2283_v42  ;;  %v2667_v31 = vmul.f32 %v2635_v62, %v2283_v42 }
 0x25f   : > { %3244 = vst [vmem:[%s5342_s6 + $0x150] sm:$0xff] %v3116_v1  ;;  %3276 = vst [vmem:[%s5342_s6 + $0x158] sm:$0xff] %v3212_v26  ;;  %v2286_v48 = vmul.f32 %v6153_v40, %v6153_v40  ;;  %v4085_v43 = vand.u32 2147483647, %v2125_v60  ;;  %v4088_v34 = vcvt.s32.f32 %v6155_v25  ;;  %vm6167_vm8 = vcmp.ne.s32.totalorder %v2827_v19, 0 }
 0x260   : > { %v2475_v5 = vadd.f32 1.4142135, %v2443_v57  ;;  %v2699_v7 = vadd.f32 -0.70710677, %v2667_v31  ;;  %v4090_v46 = vand.u32 2147483648, %v2125_v60  ;;  %v6171_v28 = vadd.f32 %v3899_v8, %v1806_v27  ;;  %v3852_v8 = vpop.f32.mrf.mxu0 }
 0x261   : > { %v2318_v11 = vmul.f32 -0.00027598796, %v2286_v48  ;;  %v2542_v9 = vmul.f32 3.45537e-05, %v2286_v48  ;;  %v4089_v49 = vand.u32 2147483647, %v4088_v34  ;;  %v1800_v58 = vadd.f32 %v1799_v3, %v5179_v50 }
 0x262   : > { %v2731_v39 = vmul.f32 %v2699_v7, %v2283_v42  ;;  %vm6173_vm9 = vcmp.ne.s32.totalorder %v2891_v59, 0  ;;  %vm6177_vm10 = vcmp.ne.s32.totalorder %v2987_v54, 0  ;;  %v2958_v30 = vadd.s32 1, %v6101_v4 }
 0x263   : > { %v2350_v16 = vadd.f32 0.011783455, %v2318_v11  ;;  %v2574_v32 = vadd.f32 -0.001963963, %v2542_v9  ;;  %v4091_v37 = vor.u32 %v4090_v46, %v4089_v49  ;;  %v2507_v2 = vmul.f32 %v2475_v5, %v6116_v18 }
 0x264   : > { %v2763_v35 = vadd.f32 1.4142135, %v2731_v39  ;;  %vm4086_vm11 = vcmp.lt.f32.partialorder %v4085_v43, 8388608.0  ;;  %v2128_v42 = vmul.f32 4.0, %v6171_v28  ;;  %v2830_v45 = vand.u32 1, %v6101_v4 }
 0x265   : > { %v2382_v38 = vmul.f32 %v2350_v16, %v2286_v48  ;;  %v2606_v13 = vmul.f32 %v2574_v32, %v2286_v48  ;;  %v4092_v20 = vsel %vm4086_vm11, %v4091_v37, %v2125_v60  ;;  %v6190_v53 = vadd.f32 %v2057_v29, %v1800_v58 }
 0x266   : > { %v3051_v50 = vsel %vm6167_vm8, %v2763_v35, %v2507_v2  ;;  %v3147_v10 = vsel %vm6167_vm8, %v2507_v2, %v2763_v35  ;;  %v2189_v47 = vmul.f32 0.25, %v4092_v20  ;;  %v2894_v19 = vand.u32 2, %v6101_v4  ;;  %v1811_v20 = vpop.f32.mrf.mxu0 }
 0x267   : > { %v3083_v18 = vsub.f32 0.0, %v3051_v50  ;;  %v3179_v36 = vsub.f32 0.0, %v3147_v10  ;;  %v2414_v33 = vadd.f32 -0.23570208, %v2382_v38  ;;  %v2638_v12 = vadd.f32 0.058925536, %v2606_v13 }
 0x268   : > { %v2990_v59 = vand.u32 2, %v2958_v30  ;;  %v2221_v21 = vsub.f32 %v6143_v52, %v2189_v47  ;;  %v6194_v15 = vcvt.f32.s32 %v2128_v42  ;;  %v4109_v61 = vand.u32 2147483647, %v2128_v42 }
 0x269   : > { %v3115_v17 = vsel %vm6173_vm9, %v3083_v18, %v3051_v50  ;;  %v3211_v51 = vsel %vm6177_vm10, %v3179_v36, %v3147_v10  ;;  %v2446_v60 = vmul.f32 %v2414_v33, %v2286_v48  ;;  %v2670_v41 = vmul.f32 %v2638_v12, %v2286_v48 }
 0x26a   : > { %3243 = vst [vmem:[%s5342_s6 + $0x140] sm:$0xff] %v3115_v17  ;;  %3275 = vst [vmem:[%s5342_s6 + $0x148] sm:$0xff] %v3211_v51  ;;  %v6202_v56 = vmul.f32 6.2831855, %v2221_v21  ;;  %v4112_v4 = vcvt.s32.f32 %v6194_v15  ;;  %vm6205_vm12 = vcmp.ne.s32.totalorder %v2830_v45, 0  ;;  %v2127_v27 = vmul.f32 4.0, %v6190_v53  ;;  %v3902_v45 = vpop.f32.mrf.mxu1 }
 0x26b   : > { %v2478_v62 = vadd.f32 1.4142135, %v2446_v60  ;;  %v2702_v54 = vadd.f32 -0.70710677, %v2670_v41  ;;  %vm6210_vm13 = vcmp.ne.s32.totalorder %v2894_v19, 0  ;;  %v4114_v31 = vand.u32 2147483648, %v2128_v42 }
 0x26c   : > { %v2285_v26 = vmul.f32 %v6202_v56, %v6202_v56  ;;  %v4113_v57 = vand.u32 2147483647, %v4112_v4  ;;  %vm6216_vm14 = vcmp.ne.s32.totalorder %v2990_v59, 0  ;;  %v2829_v3 = vand.u32 1, %v6155_v25  ;;  %v2069_v41 = vpop.f32.mrf.mxu1 }
 0x26d   : > { %v2734_v43 = vmul.f32 %v2702_v54, %v2286_v48  ;;  %v2957_v5 = vadd.s32 1, %v6155_v25  ;;  %v6222_v11 = vcvt.f32.s32 %v2127_v27  ;;  %v2510_v9 = vmul.f32 %v2478_v62, %v6153_v40 }
 0x26e   : > { %v2317_v7 = vmul.f32 -0.00027598796, %v2285_v26  ;;  %v2541_v0 = vmul.f32 3.45537e-05, %v2285_v26  ;;  %v4115_v46 = vor.u32 %v4114_v31, %v4113_v57  ;;  %vm4110_vm15 = vcmp.lt.f32.partialorder %v4109_v61, 8388608.0 }
 0x26f   : > { %v2766_v49 = vadd.f32 1.4142135, %v2734_v43  ;;  %v1818_v39 = vadd.f32 %v3852_v8, %v5182_v24  ;;  %v4104_v58 = vcvt.s32.f32 %v6222_v11  ;;  %v4101_v37 = vand.u32 2147483647, %v2127_v27 }
 0x270   : > { %v2349_v48 = vadd.f32 0.011783455, %v2317_v7  ;;  %v2573_v23 = vadd.f32 -0.001963963, %v2541_v0  ;;  %v4116_v55 = vsel %vm4110_vm15, %v4115_v46, %v2128_v42  ;;  %v2893_v24 = vand.u32 2, %v6155_v25 }
 0x271   : > { %v3054_v16 = vsel %vm6205_vm12, %v2766_v49, %v2510_v9  ;;  %v3150_v32 = vsel %vm6205_vm12, %v2510_v9, %v2766_v49  ;;  %v2192_v30 = vmul.f32 0.25, %v4116_v55  ;;  %v4105_v38 = vand.u32 2147483647, %v4104_v58 }
 0x272   : > { %v3086_v40 = vsub.f32 0.0, %v3054_v16  ;;  %v3182_v29 = vsub.f32 0.0, %v3150_v32  ;;  %v2381_v2 = vmul.f32 %v2349_v48, %v2285_v26  ;;  %v2605_v35 = vmul.f32 %v2573_v23, %v2285_v26 }
 0x273   : > { %v2224_v42 = vsub.f32 %v6171_v28, %v2192_v30  ;;  %v4106_v13 = vand.u32 2147483648, %v2127_v27  ;;  %v2989_v36 = vand.u32 2, %v2957_v5  ;;  %vm4102_vm0 = vcmp.lt.f32.partialorder %v4101_v37, 8388608.0 }
 0x274   : > { %v3118_v50 = vsel %vm6210_vm13, %v3086_v40, %v3054_v16  ;;  %v3214_v10 = vsel %vm6216_vm14, %v3182_v29, %v3150_v32  ;;  %v2413_v47 = vadd.f32 -0.23570208, %v2381_v2  ;;  %v2637_v18 = vadd.f32 0.058925536, %v2605_v35 }
 0x275   : > { %3246 = vst [vmem:[%s5342_s6 + $0x170] sm:$0xff] %v3118_v50  ;;  %3278 = vst [vmem:[%s5342_s6 + $0x178] sm:$0xff] %v3214_v10  ;;  %v6239_v33 = vmul.f32 6.2831855, %v2224_v42  ;;  %v4107_v25 = vor.u32 %v4106_v13, %v4105_v38  ;;  %v6241_v19 = vadd.f32 %v3902_v45, %v1818_v39  ;;  %v1812_v59 = vadd.f32 %v1811_v20, %v5185_v44 }
 0x276   : > { %v2445_v28 = vmul.f32 %v2413_v47, %v2285_v26  ;;  %v2669_v12 = vmul.f32 %v2637_v18, %v2285_v26  ;;  %vm6244_vm1 = vcmp.ne.s32.totalorder %v2829_v3, 0  ;;  %v2960_v51 = vadd.s32 1, %v6194_v15 }
 0x277   : > { %v2288_v17 = vmul.f32 %v6239_v33, %v6239_v33  ;;  %v4108_v60 = vsel %vm4102_vm0, %v4107_v25, %v2127_v27  ;;  %vm6251_vm2 = vcmp.ne.s32.totalorder %v2893_v24, 0  ;;  %v2130_v44 = vmul.f32 4.0, %v6241_v19 }
 0x278   : > { %v2477_v61 = vadd.f32 1.4142135, %v2445_v28  ;;  %v2701_v4 = vadd.f32 -0.70710677, %v2669_v12  ;;  %v2191_v54 = vmul.f32 0.25, %v4108_v60  ;;  %vm6256_vm3 = vcmp.ne.s32.totalorder %v2989_v36, 0 }
 0x279   : > { %v2320_v1 = vmul.f32 -0.00027598796, %v2288_v17  ;;  %v2544_v57 = vmul.f32 3.45537e-05, %v2288_v17  ;;  %v2832_v31 = vand.u32 1, %v6194_v15  ;;  %v2896_v27 = vand.u32 2, %v6194_v15 }
 0x27a   : > { %v2733_v8 = vmul.f32 %v2701_v4, %v2285_v26  ;;  %v2223_v43 = vsub.f32 %v6190_v53, %v2191_v54  ;;  %v6263_v34 = vadd.f32 %v2069_v41, %v1812_v59  ;;  %v2992_v7 = vand.u32 2, %v2960_v51  ;;  %v3855_v59 = vpop.f32.mrf.mxu0 }
 0x27b   : > { %v2352_v3 = vadd.f32 0.011783455, %v2320_v1  ;;  %v2576_v5 = vadd.f32 -0.001963963, %v2544_v57  ;;  %v6265_v0 = vcvt.f32.s32 %v2130_v44  ;;  %v2509_v46 = vmul.f32 %v2477_v61, %v6202_v56 }
 0x27c   : > { %v2765_v9 = vadd.f32 1.4142135, %v2733_v8  ;;  %v6268_v49 = vmul.f32 6.2831855, %v2223_v43  ;;  %v4125_v39 = vand.u32 2147483647, %v2130_v44 }
 0x27d   : > { %v2384_v48 = vmul.f32 %v2352_v3, %v2288_v17  ;;  %v2608_v23 = vmul.f32 %v2576_v5, %v2288_v17  ;;  %v4128_v26 = vcvt.s32.f32 %v6265_v0  ;;  %v4130_v15 = vand.u32 2147483648, %v2130_v44 }
 0x27e   : > { %v3053_v53 = vsel %vm6244_vm1, %v2765_v9, %v2509_v46  ;;  %v3149_v55 = vsel %vm6244_vm1, %v2509_v46, %v2765_v9  ;;  %v2287_v56 = vmul.f32 %v6268_v49, %v6268_v49  ;;  %v6278_v58 = vmul.f32 4.0, %v6263_v34 }
 0x27f   : > { %v3085_v16 = vsub.f32 0.0, %v3053_v53  ;;  %v3181_v32 = vsub.f32 0.0, %v3149_v55  ;;  %v2416_v30 = vadd.f32 -0.23570208, %v2384_v48  ;;  %v2640_v37 = vadd.f32 0.058925536, %v2608_v23 }
 0x280   : > { %v2319_v40 = vmul.f32 -0.00027598796, %v2287_v56  ;;  %v2543_v29 = vmul.f32 3.45537e-05, %v2287_v56  ;;  %v4129_v2 = vand.u32 2147483647, %v4128_v26  ;;  %v6287_v50 = vcvt.f32.s32 %v6278_v58  ;;  %v3905_v26 = vpop.f32.mrf.mxu1 }
 0x281   : > { %v3117_v35 = vsel %vm6251_vm2, %v3085_v16, %v3053_v53  ;;  %v3213_v24 = vsel %vm6256_vm3, %v3181_v32, %v3149_v55  ;;  %v2448_v42 = vmul.f32 %v2416_v30, %v2288_v17  ;;  %v2672_v38 = vmul.f32 %v2640_v37, %v2288_v17 }
 0x282   : > { %3245 = vst [vmem:[%s5342_s6 + $0x160] sm:$0xff] %v3117_v35  ;;  %3277 = vst [vmem:[%s5342_s6 + $0x168] sm:$0xff] %v3213_v24  ;;  %v2351_v13 = vadd.f32 0.011783455, %v2319_v40  ;;  %v2575_v45 = vadd.f32 -0.001963963, %v2543_v29  ;;  %v4131_v20 = vor.u32 %v4130_v15, %v4129_v2  ;;  %v4120_v54 = vcvt.s32.f32 %v6287_v50  ;;  %v2081_v51 = vpop.f32.mrf.mxu1 }
 0x283   : > { %v2480_v10 = vadd.f32 1.4142135, %v2448_v42  ;;  %v2704_v47 = vadd.f32 -0.70710677, %v2672_v38  ;;  %vm6289_vm4 = vcmp.ne.s32.totalorder %v2832_v31, 0  ;;  %vm4126_vm5 = vcmp.lt.f32.partialorder %v4125_v39, 8388608.0  ;;  %v1823_v42 = vpop.f32.mrf.mxu0 }
 0x284   : > { %vm6293_vm6 = vcmp.ne.s32.totalorder %v2896_v27, 0  ;;  %v2383_v25 = vmul.f32 %v2351_v13, %v2287_v56  ;;  %v2607_v28 = vmul.f32 %v2575_v45, %v2287_v56  ;;  %v4132_v12 = vsel %vm4126_vm5, %v4131_v20, %v2130_v44 }
 0x285   : > { %v2736_v21 = vmul.f32 %v2704_v47, %v2288_v17  ;;  %vm6297_vm7 = vcmp.ne.s32.totalorder %v2992_v7, 0  ;;  %v2831_v60 = vand.u32 1, %v6222_v11  ;;  %v2194_v41 = vmul.f32 0.25, %v4132_v12 }
 0x286   : > { %v2415_v61 = vadd.f32 -0.23570208, %v2383_v25  ;;  %v2639_v4 = vadd.f32 0.058925536, %v2607_v28  ;;  %v2959_v62 = vadd.s32 1, %v6222_v11  ;;  %v2512_v52 = vmul.f32 %v2480_v10, %v6239_v33 }
 0x287   : > { %v2768_v1 = vadd.f32 1.4142135, %v2736_v21  ;;  %v2226_v44 = vsub.f32 %v6241_v19, %v2194_v41  ;;  %v1830_v17 = vadd.f32 %v3855_v59, %v5190_v22  ;;  %v4117_v8 = vand.u32 2147483647, %v6278_v58 }
 0x288   : > { %v2447_v57 = vmul.f32 %v2415_v61, %v2287_v56  ;;  %v2671_v31 = vmul.f32 %v2639_v4, %v2287_v56  ;;  %v4121_v27 = vand.u32 2147483647, %v4120_v54  ;;  %v4122_v33 = vand.u32 2147483648, %v6278_v58 }
 0x289   : > { %v3056_v43 = vsel %vm6289_vm4, %v2768_v1, %v2512_v52  ;;  %v3152_v3 = vsel %vm6289_vm4, %v2512_v52, %v2768_v1  ;;  %v6312_v5 = vmul.f32 6.2831855, %v2226_v44  ;;  %v2895_v9 = vand.u32 2, %v6222_v11 }
 0x28a   : > { %v3088_v19 = vsub.f32 0.0, %v3056_v43  ;;  %v3184_v7 = vsub.f32 0.0, %v3152_v3  ;;  %v2479_v22 = vadd.f32 1.4142135, %v2447_v57  ;;  %v2703_v46 = vadd.f32 -0.70710677, %v2671_v31  ;;  %v3858_v31 = vpop.f32.mrf.mxu0 }
 0x28b   : > { %v2991_v39 = vand.u32 2, %v2959_v62  ;;  %v2290_v48 = vmul.f32 %v6312_v5, %v6312_v5  ;;  %v4123_v23 = vor.u32 %v4122_v33, %v4121_v27  ;;  %vm4118_vm8 = vcmp.lt.f32.partialorder %v4117_v8, 8388608.0 }
 0x28c   : > { %v3120_v15 = vsel %vm6293_vm6, %v3088_v19, %v3056_v43  ;;  %v3216_v53 = vsel %vm6297_vm7, %v3184_v7, %v3152_v3  ;;  %v2735_v55 = vmul.f32 %v2703_v46, %v2287_v56  ;;  %vm2863_vm9 = vcmp.ne.s32.totalorder %v2831_v60, 0 }
 0x28d   : > { %3248 = vst [vmem:[%s5342_s6 + $0x190] sm:$0xff] %v3120_v15  ;;  %3280 = vst [vmem:[%s5342_s6 + $0x198] sm:$0xff] %v3216_v53  ;;  %v2322_v16 = vmul.f32 -0.00027598796, %v2290_v48  ;;  %v2546_v32 = vmul.f32 3.45537e-05, %v2290_v48  ;;  %v4124_v11 = vsel %vm4118_vm8, %v4123_v23, %v6278_v58  ;;  %v2511_v30 = vmul.f32 %v2479_v22, %v6268_v49  ;;  %v3908_v15 = vpop.f32.mrf.mxu1 }
 0x28e   : > { %v2767_v37 = vadd.f32 1.4142135, %v2735_v55  ;;  %v2193_v40 = vmul.f32 0.25, %v4124_v11  ;;  %v6326_v29 = vadd.f32 %v3905_v26, %v1830_v17  ;;  %vm6328_vm10 = vcmp.ne.s32.totalorder %v2895_v9, 0 }
 0x28f   : > { %vm6332_vm11 = vcmp.ne.s32.totalorder %v2991_v39, 0  ;;  %v2354_v35 = vadd.f32 0.011783455, %v2322_v16  ;;  %v2578_v24 = vadd.f32 -0.001963963, %v2546_v32  ;;  %v2834_v18 = vand.u32 1, %v6265_v0 }
 0x290   : > { %v3055_v38 = vsel %vm2863_vm9, %v2767_v37, %v2511_v30  ;;  %v3151_v13 = vsel %vm2863_vm9, %v2511_v30, %v2767_v37  ;;  %v2225_v49 = vsub.f32 %v6263_v34, %v2193_v40  ;;  %v2132_v58 = vmul.f32 4.0, %v6326_v29 }
 0x291   : > { %v3087_v45 = vsub.f32 0.0, %v3055_v38  ;;  %v3183_v20 = vsub.f32 0.0, %v3151_v13  ;;  %v2386_v10 = vmul.f32 %v2354_v35, %v2290_v48  ;;  %v2610_v47 = vmul.f32 %v2578_v24, %v2290_v48 }
 0x292   : > { %v6339_v36 = vmul.f32 6.2831855, %v2225_v49  ;;  %v6341_v25 = vcvt.f32.s32 %v2132_v58  ;;  %v1824_v28 = vadd.f32 %v1823_v42, %v5195_v63  ;;  %v2898_v60 = vand.u32 2, %v6265_v0 }
 0x293   : > { %v3119_v12 = vsel %vm6328_vm10, %v3087_v45, %v3055_v38  ;;  %v3215_v34 = vsel %vm6332_vm11, %v3183_v20, %v3151_v13  ;;  %v2418_v59 = vadd.f32 -0.23570208, %v2386_v10  ;;  %v2642_v21 = vadd.f32 0.058925536, %v2610_v47 }
 0x294   : > { %3247 = vst [vmem:[%s5342_s6 + $0x180] sm:$0xff] %v3119_v12  ;;  %3279 = vst [vmem:[%s5342_s6 + $0x188] sm:$0xff] %v3215_v34  ;;  %v2962_v41 = vadd.s32 1, %v6265_v0  ;;  %v2289_v61 = vmul.f32 %v6339_v36, %v6339_v36  ;;  %v4144_v63 = vcvt.s32.f32 %v6341_v25  ;;  %v4141_v54 = vand.u32 2147483647, %v2132_v58 }
 0x295   : > { %v2450_v4 = vmul.f32 %v2418_v59, %v2290_v48  ;;  %v2674_v62 = vmul.f32 %v2642_v21, %v2290_v48  ;;  %v4146_v52 = vand.u32 2147483648, %v2132_v58  ;;  %v6355_v57 = vadd.f32 %v2081_v51, %v1824_v28 }
 0x296   : > { %v2321_v1 = vmul.f32 -0.00027598796, %v2289_v61  ;;  %v2545_v44 = vmul.f32 3.45537e-05, %v2289_v61  ;;  %v4145_v17 = vand.u32 2147483647, %v4144_v63  ;;  %v1842_v46 = vadd.f32 %v3858_v31, %v5199_v14 }
 0x297   : > { %v2482_v8 = vadd.f32 1.4142135, %v2450_v4  ;;  %v2706_v27 = vadd.f32 -0.70710677, %v2674_v62  ;;  %vm6357_vm12 = vcmp.ne.s32.totalorder %v2834_v18, 0  ;;  %v2994_v0 = vand.u32 2, %v2962_v41  ;;  %v1835_v4 = vpop.f32.mrf.mxu0 }
 0x298   : > { %v2353_v3 = vadd.f32 0.011783455, %v2321_v1  ;;  %v2577_v33 = vadd.f32 -0.001963963, %v2545_v44  ;;  %v4147_v19 = vor.u32 %v4146_v52, %v4145_v17  ;;  %vm4142_vm13 = vcmp.lt.f32.partialorder %v4141_v54, 8388608.0 }
 0x299   : > { %v2738_v7 = vmul.f32 %v2706_v27, %v2290_v48  ;;  %v2131_v22 = vmul.f32 4.0, %v6355_v57  ;;  %vm6363_vm14 = vcmp.ne.s32.totalorder %v2898_v60, 0  ;;  %v2514_v53 = vmul.f32 %v2482_v8, %v6312_v5 }
 0x29a   : > { %v2385_v39 = vmul.f32 %v2353_v3, %v2289_v61  ;;  %v2609_v23 = vmul.f32 %v2577_v33, %v2289_v61  ;;  %v4148_v26 = vsel %vm4142_vm13, %v4147_v19, %v2132_v58  ;;  %vm6370_vm15 = vcmp.ne.s32.totalorder %v2994_v0, 0 }
 0x29b   : > { %v2770_v55 = vadd.f32 1.4142135, %v2738_v7  ;;  %v2196_v16 = vmul.f32 0.25, %v4148_v26  ;;  %v6368_v32 = vcvt.f32.s32 %v2131_v22  ;;  %v2833_v30 = vand.u32 1, %v6287_v50 }
 0x29c   : > { %v2417_v11 = vadd.f32 -0.23570208, %v2385_v39  ;;  %v2641_v14 = vadd.f32 0.058925536, %v2609_v23  ;;  %v6380_v2 = vadd.f32 %v3908_v15, %v1842_v46  ;;  %v2961_v38 = vadd.s32 1, %v6287_v50 }
 0x29d   : > { %v3058_v37 = vsel %vm6357_vm12, %v2770_v55, %v2514_v53  ;;  %v3154_v40 = vsel %vm6357_vm12, %v2514_v53, %v2770_v55  ;;  %v2228_v5 = vsub.f32 %v6326_v29, %v2196_v16  ;;  %v4133_v49 = vand.u32 2147483647, %v2131_v22 }
 0x29e   : > { %v3090_v56 = vsub.f32 0.0, %v3058_v37  ;;  %v3186_v35 = vsub.f32 0.0, %v3154_v40  ;;  %v2449_v24 = vmul.f32 %v2417_v11, %v2289_v61  ;;  %v2673_v42 = vmul.f32 %v2641_v14, %v2289_v61 }
 0x29f   : > { %v6383_v13 = vmul.f32 6.2831855, %v2228_v5  ;;  %v4136_v58 = vcvt.s32.f32 %v6368_v32  ;;  %v2897_v47 = vand.u32 2, %v6287_v50  ;;  %v4138_v12 = vand.u32 2147483648, %v2131_v22 }
 0x2a0   : > { %v3122_v45 = vsel %vm6363_vm14, %v3090_v56, %v3058_v37  ;;  %v3218_v20 = vsel %vm6370_vm15, %v3186_v35, %v3154_v40  ;;  %v2481_v29 = vadd.f32 1.4142135, %v2449_v24  ;;  %v2705_v10 = vadd.f32 -0.70710677, %v2673_v42 }
 0x2a1   : > { %3250 = vst [vmem:[%s5342_s6 + $0x1b0] sm:$0xff] %v3122_v45  ;;  %3282 = vst [vmem:[%s5342_s6 + $0x1b8] sm:$0xff] %v3218_v20  ;;  %v2292_v18 = vmul.f32 %v6383_v13, %v6383_v13  ;;  %v4137_v28 = vand.u32 2147483647, %v4136_v58  ;;  %vm6395_vm0 = vcmp.ne.s32.totalorder %v2833_v30, 0  ;;  %v2134_v21 = vmul.f32 4.0, %v6380_v2 }
 0x2a2   : > { %v2737_v34 = vmul.f32 %v2705_v10, %v2289_v61  ;;  %v2993_v51 = vand.u32 2, %v2961_v38  ;;  %v2513_v62 = vmul.f32 %v2481_v29, %v6339_v36  ;;  %vm4134_vm1 = vcmp.lt.f32.partialorder %v4133_v49, 8388608.0 }
 0x2a3   : > { %v2324_v60 = vmul.f32 -0.00027598796, %v2292_v18  ;;  %v2548_v41 = vmul.f32 3.45537e-05, %v2292_v18  ;;  %v4139_v63 = vor.u32 %v4138_v12, %v4137_v28  ;;  %v6401_v54 = vcvt.f32.s32 %v2134_v21 }
 0x2a4   : > { %v2769_v50 = vadd.f32 1.4142135, %v2737_v34  ;;  %vm6403_vm2 = vcmp.ne.s32.totalorder %v2897_v47, 0  ;;  %v1836_v36 = vadd.f32 %v1835_v4, %v5203_v6  ;;  %vm3025_vm3 = vcmp.ne.s32.totalorder %v2993_v51, 0 }
 0x2a5   : > { %v2356_v61 = vadd.f32 0.011783455, %v2324_v60  ;;  %v2580_v1 = vadd.f32 -0.001963963, %v2548_v41  ;;  %v4140_v44 = vsel %vm4134_vm1, %v4139_v63, %v2131_v22  ;;  %v4157_v19 = vand.u32 2147483647, %v2134_v21  ;;  %v2093_v22 = vpop.f32.mrf.mxu1 }
 0x2a6   : > { %v3057_v17 = vsel %vm6395_vm0, %v2769_v50, %v2513_v62  ;;  %v3153_v31 = vsel %vm6395_vm0, %v2513_v62, %v2769_v50  ;;  %v2195_v8 = vmul.f32 0.25, %v4140_v44  ;;  %v4160_v7 = vcvt.s32.f32 %v6401_v54 }
 0x2a7   : > { %v3089_v27 = vsub.f32 0.0, %v3057_v17  ;;  %v3185_v43 = vsub.f32 0.0, %v3153_v31  ;;  %v2388_v0 = vmul.f32 %v2356_v61, %v2292_v18  ;;  %v2612_v3 = vmul.f32 %v2580_v1, %v2292_v18 }
 0x2a8   : > { %v2227_v33 = vsub.f32 %v6355_v57, %v2195_v8  ;;  %v4161_v26 = vand.u32 2147483647, %v4160_v7  ;;  %v4162_v15 = vand.u32 2147483648, %v2134_v21  ;;  %v6420_v16 = vadd.f32 %v2093_v22, %v1836_v36 }
 0x2a9   : > { %v3121_v46 = vsel %vm6403_vm2, %v3089_v27, %v3057_v17  ;;  %v3217_v9 = vsel %vm3025_vm3, %v3185_v43, %v3153_v31  ;;  %v2420_v39 = vadd.f32 -0.23570208, %v2388_v0  ;;  %v2644_v23 = vadd.f32 0.058925536, %v2612_v3 }
 0x2aa   : > { %3249 = vst [vmem:[%s5342_s6 + $0x1a0] sm:$0xff] %v3121_v46  ;;  %3281 = vst [vmem:[%s5342_s6 + $0x1a8] sm:$0xff] %v3217_v9  ;;  %v6418_v6 = vmul.f32 6.2831855, %v2227_v33  ;;  %v2836_v57 = vand.u32 1, %v6341_v25  ;;  %v2964_v48 = vadd.s32 1, %v6341_v25  ;;  %v4163_v14 = vor.u32 %v4162_v15, %v4161_v26 }
 0x2ab   : > { %v2452_v53 = vmul.f32 %v2420_v39, %v2292_v18  ;;  %v2676_v55 = vmul.f32 %v2644_v23, %v2292_v18  ;;  %vm4158_vm4 = vcmp.lt.f32.partialorder %v4157_v19, 8388608.0  ;;  %v2133_v40 = vmul.f32 4.0, %v6420_v16 }
 0x2ac   : > { %v2291_v11 = vmul.f32 %v6418_v6, %v6418_v6  ;;  %v2900_v5 = vand.u32 2, %v6341_v25  ;;  %v4164_v24 = vsel %vm4158_vm4, %v4163_v14, %v2134_v21  ;;  %vm2868_vm5 = vcmp.ne.s32.totalorder %v2836_v57, 0 }
 0x2ad   : > { %v2484_v30 = vadd.f32 1.4142135, %v2452_v53  ;;  %v2708_v37 = vadd.f32 -0.70710677, %v2676_v55  ;;  %v2198_v38 = vmul.f32 0.25, %v4164_v24  ;;  %v6428_v45 = vcvt.f32.s32 %v2133_v40 }
 0x2ae   : > { %v2323_v56 = vmul.f32 -0.00027598796, %v2291_v11  ;;  %v2547_v35 = vmul.f32 3.45537e-05, %v2291_v11  ;;  %v2996_v10 = vand.u32 2, %v2964_v48  ;;  %vm6432_vm6 = vcmp.ne.s32.totalorder %v2900_v5, 0 }
 0x2af   : > { %v2740_v42 = vmul.f32 %v2708_v37, %v2292_v18  ;;  %v2516_v20 = vmul.f32 %v2484_v30, %v6383_v13  ;;  %v2230_v47 = vsub.f32 %v6380_v2, %v2198_v38  ;;  %v4152_v18 = vcvt.s32.f32 %v6428_v45 }
 0x2b0   : > { %v2355_v49 = vadd.f32 0.011783455, %v2323_v56  ;;  %v2579_v58 = vadd.f32 -0.001963963, %v2547_v35  ;;  %v4149_v51 = vand.u32 2147483647, %v2133_v40 }
 0x2b1   : > { %v2772_v29 = vadd.f32 1.4142135, %v2740_v42  ;;  %v2262_v21 = vmul.f32 6.2831855, %v2230_v47  ;;  %vm3028_vm7 = vcmp.ne.s32.totalorder %v2996_v10, 0  ;;  %v4154_v62 = vand.u32 2147483648, %v2133_v40 }
 0x2b2   : > { %v2387_v25 = vmul.f32 %v2355_v49, %v2291_v11  ;;  %v2611_v12 = vmul.f32 %v2579_v58, %v2291_v11  ;;  %v4153_v4 = vand.u32 2147483647, %v4152_v18  ;;  %v2963_v27 = vadd.s32 1, %v6368_v32 }
 0x2b3   : > { %v3060_v34 = vsel %vm2868_vm5, %v2772_v29, %v2516_v20  ;;  %v3156_v59 = vsel %vm2868_vm5, %v2516_v20, %v2772_v29  ;;  %v2294_v2 = vmul.f32 %v2262_v21, %v2262_v21  ;;  %vm4150_vm8 = vcmp.lt.f32.partialorder %v4149_v51, 8388608.0 }
 0x2b4   : > { %v3092_v60 = vsub.f32 0.0, %v3060_v34  ;;  %v3188_v13 = vsub.f32 0.0, %v3156_v59  ;;  %v2419_v41 = vadd.f32 -0.23570208, %v2387_v25  ;;  %v2643_v63 = vadd.f32 0.058925536, %v2611_v12 }
 0x2b5   : > { %v2326_v44 = vmul.f32 -0.00027598796, %v2294_v2  ;;  %v2550_v17 = vmul.f32 3.45537e-05, %v2294_v2  ;;  %v4155_v31 = vor.u32 %v4154_v62, %v4153_v4  ;;  %v2835_v43 = vand.u32 1, %v6368_v32 }
 0x2b6   : > { %v3124_v50 = vsel %vm6432_vm6, %v3092_v60, %v3060_v34  ;;  %v3220_v52 = vsel %vm3028_vm7, %v3188_v13, %v3156_v59  ;;  %v2451_v61 = vmul.f32 %v2419_v41, %v2291_v11  ;;  %v2675_v1 = vmul.f32 %v2643_v63, %v2291_v11 }
 0x2b7   : > { %3252 = vst [vmem:[%s5342_s6 + $0x1d0] sm:$0xff] %v3124_v50  ;;  %3284 = vst [vmem:[%s5342_s6 + $0x1d8] sm:$0xff] %v3220_v52  ;;  %v2358_v0 = vadd.f32 0.011783455, %v2326_v44  ;;  %v2582_v3 = vadd.f32 -0.001963963, %v2550_v17  ;;  %v4156_v33 = vsel %vm4150_vm8, %v4155_v31, %v2133_v40 }
 0x2b8   : > { %v2483_v8 = vadd.f32 1.4142135, %v2451_v61  ;;  %v2707_v36 = vadd.f32 -0.70710677, %v2675_v1  ;;  %v2197_v7 = vmul.f32 0.25, %v4156_v33  ;;  %v2899_v22 = vand.u32 2, %v6368_v32 }
 0x2b9   : > { %v2390_v46 = vmul.f32 %v2358_v0, %v2294_v2  ;;  %v2614_v9 = vmul.f32 %v2582_v3, %v2294_v2  ;;  %v2995_v26 = vand.u32 2, %v2963_v27  ;;  %vm2867_vm9 = vcmp.ne.s32.totalorder %v2835_v43, 0 }
 0x2ba   : > { %v2739_v19 = vmul.f32 %v2707_v36, %v2291_v11  ;;  %v2515_v39 = vmul.f32 %v2483_v8, %v6418_v6  ;;  %v2229_v15 = vsub.f32 %v6420_v16, %v2197_v7  ;;  %vm2931_vm10 = vcmp.ne.s32.totalorder %v2899_v22, 0 }
 0x2bb   : > { %v2422_v53 = vadd.f32 -0.23570208, %v2390_v46  ;;  %v2646_v55 = vadd.f32 0.058925536, %v2614_v9  ;;  %vm3027_vm11 = vcmp.ne.s32.totalorder %v2995_v26, 0  ;;  %v2966_v6 = vadd.s32 1, %v6401_v54 }
 0x2bc   : > { %v2771_v23 = vadd.f32 1.4142135, %v2739_v19  ;;  %v2261_v14 = vmul.f32 6.2831855, %v2229_v15  ;;  %v2838_v24 = vand.u32 1, %v6401_v54  ;;  %v2902_v47 = vand.u32 2, %v6401_v54 }
 0x2bd   : > { %v2454_v37 = vmul.f32 %v2422_v53, %v2294_v2  ;;  %v2678_v32 = vmul.f32 %v2646_v55, %v2294_v2  ;;  %v2998_v28 = vand.u32 2, %v2966_v6  ;;  %v2965_v62 = vadd.s32 1, %v6428_v45 }
 0x2be   : > { %v3059_v57 = vsel %vm2867_vm9, %v2771_v23, %v2515_v39  ;;  %v3155_v48 = vsel %vm2867_vm9, %v2515_v39, %v2771_v23  ;;  %v2293_v40 = vmul.f32 %v2261_v14, %v2261_v14  ;;  %vm2870_vm12 = vcmp.ne.s32.totalorder %v2838_v24, 0 }
 0x2bf   : > { %v3091_v11 = vsub.f32 0.0, %v3059_v57  ;;  %v3187_v30 = vsub.f32 0.0, %v3155_v48  ;;  %v2486_v16 = vadd.f32 1.4142135, %v2454_v37  ;;  %v2710_v35 = vadd.f32 -0.70710677, %v2678_v32 }
 0x2c0   : > { %v2325_v42 = vmul.f32 -0.00027598796, %v2293_v40  ;;  %v2549_v38 = vmul.f32 3.45537e-05, %v2293_v40  ;;  %vm2934_vm13 = vcmp.ne.s32.totalorder %v2902_v47, 0  ;;  %vm3030_vm14 = vcmp.ne.s32.totalorder %v2998_v28, 0 }
 0x2c1   : > { %v3123_v5 = vsel %vm2931_vm10, %v3091_v11, %v3059_v57  ;;  %v3219_v56 = vsel %vm3027_vm11, %v3187_v30, %v3155_v48  ;;  %v2742_v49 = vmul.f32 %v2710_v35, %v2294_v2  ;;  %v2518_v29 = vmul.f32 %v2486_v16, %v2262_v21 }
 0x2c2   : > { %3251 = vst [vmem:[%s5342_s6 + $0x1c0] sm:$0xff] %v3123_v5  ;;  %3283 = vst [vmem:[%s5342_s6 + $0x1c8] sm:$0xff] %v3219_v56  ;;  %v2357_v58 = vadd.f32 0.011783455, %v2325_v42  ;;  %v2581_v20 = vadd.f32 -0.001963963, %v2549_v38 }
 0x2c3   : > { %v2774_v10 = vadd.f32 1.4142135, %v2742_v49  ;;  %v2837_v50 = vand.u32 1, %v6428_v45  ;;  %v2901_v44 = vand.u32 2, %v6428_v45  ;;  %v2997_v17 = vand.u32 2, %v2965_v62 }
 0x2c4   : > { %v2389_v25 = vmul.f32 %v2357_v58, %v2293_v40  ;;  %v2613_v12 = vmul.f32 %v2581_v20, %v2293_v40 }
 0x2c5   : > { %v3062_v18 = vsel %vm2870_vm12, %v2774_v10, %v2518_v29  ;;  %v3158_v34 = vsel %vm2870_vm12, %v2518_v29, %v2774_v10  ;;  %vm2869_vm15 = vcmp.ne.s32.totalorder %v2837_v50, 0  ;;  %vm2933_vm0 = vcmp.ne.s32.totalorder %v2901_v44, 0 }
 0x2c6   : > { %v3094_v59 = vsub.f32 0.0, %v3062_v18  ;;  %v3190_v51 = vsub.f32 0.0, %v3158_v34  ;;  %v2421_v60 = vadd.f32 -0.23570208, %v2389_v25  ;;  %v2645_v13 = vadd.f32 0.058925536, %v2613_v12 }
 0x2c7   : > { %vm3029_vm1 = vcmp.ne.s32.totalorder %v2997_v17, 0 }
 0x2c8   : > { %v3126_v41 = vsel %vm2934_vm13, %v3094_v59, %v3062_v18  ;;  %v3222_v21 = vsel %vm3030_vm14, %v3190_v51, %v3158_v34  ;;  %v2453_v63 = vmul.f32 %v2421_v60, %v2293_v40  ;;  %v2677_v54 = vmul.f32 %v2645_v13, %v2293_v40 }
 0x2c9   : > { %3254 = vst [vmem:[%s5342_s6 + $0x1f0] sm:$0xff] %v3126_v41  ;;  %3286 = vst [vmem:[%s5342_s6 + $0x1f8] sm:$0xff] %v3222_v21 }
 0x2ca   : > { %v2485_v2 = vadd.f32 1.4142135, %v2453_v63  ;;  %v2709_v4 = vadd.f32 -0.70710677, %v2677_v54 }
 0x2cc   : > { %v2741_v52 = vmul.f32 %v2709_v4, %v2293_v40  ;;  %v2517_v61 = vmul.f32 %v2485_v2, %v2261_v14 }
 0x2ce   : > { %v2773_v1 = vadd.f32 1.4142135, %v2741_v52 }
 0x2d0   : > { %v3061_v31 = vsel %vm2869_vm15, %v2773_v1, %v2517_v61  ;;  %v3157_v8 = vsel %vm2869_vm15, %v2517_v61, %v2773_v1 }
 0x2d1   : > { %v3093_v36 = vsub.f32 0.0, %v3061_v31  ;;  %v3189_v27 = vsub.f32 0.0, %v3157_v8 }
 0x2d3   : > { %v3125_v45 = vsel %vm2933_vm0, %v3093_v36, %v3061_v31  ;;  %v3221_v43 = vsel %vm3029_vm1, %v3189_v27, %v3157_v8 }
 0x2d4   : > { %3253 = vst [vmem:[%s5342_s6 + $0x1e0] sm:$0xff] %v3125_v45  ;;  %3285 = vst [vmem:[%s5342_s6 + $0x1e8] sm:$0xff] %v3221_v43 }
 0x2d5   : > { %4331 = shalt.err (!%p4328_p5)
}
 0x2d6   : > { %s4332_s26 = scalar_lea.hbm %s6461_s18, 8192  ;;  %s4336_s29 = scalar_lea.hbm %s6516_s2, 16384 }
 0x2d7   : > { %p4333_p6 = scmp.ne.s32.totalorder %s6461_s18, %s4332_s26  ;;  %p4337_p10 = scmp.lt.s32.totalorder %s6461_s18, %s6516_s2 }
 0x2d8   : > { %p4338_p11 = scmp.lt.s32.totalorder %s4336_s29, %s4332_s26 }
 0x2d9   : > { %p4334_p7 = pnand %p4333_p6, %p4454_p4 }
 0x2da   : > { %p4339_p12 = por %p4338_p11, %p4337_p10 }
 0x2db   : > { %p4335_p9 = pneg %p4334_p7 }
 0x2dd   : > { %p4340_p13 = pnand %p4339_p12, %p4335_p9 }
 0x2df   : > { %4343 = shalt.err (!%p4340_p13)
}
 0x2e0   : > { %s4397_s4 = smov 256   ;;  %s4398_s5 = smov 16  }
 0x2e1   : > { %4261 = dma.vmem_to_hbm [thread:$0]  (%p4454_p4), %s6463_s8, 8192, %s6461_s18, %s6469_s12, %s4397_s4, %s4397_s4, %s4398_s5  }
 0x2e2 PF: > { %p4267_p0 = scmp.ge.s32.totalorder %s4394_s14, 2  ;;  %s3319_s6 = sand.u32 1, %s4374_s9  }
 0x2e3   : > { %s3320_s7 = scalar_lea.sflag [#allocation3], %s3319_s6 }
 0x2e4   : > { %p4264_p1 = pnand %p4267_p0, %p4461_p8 }
 0x2e6   : > { %p4265_p2 = pneg %p4264_p1 }
 0x2e8   : > { %4369 = dma.done.wait (%p4265_p2), %s3320_s7, 8192  }
 0x2e9   : > { %4371 = vsyncadd (%p4265_p2), %s3320_s7, 4294959104  ;;  %s15_s14 = sadd.s32 1, %s4394_s14   ;;  %s6792_s9 = smov %s4378_s10 }
 0x2ea   : > { %p12_p3 = scmp.ge.s32.totalorder %s15_s14, 4   ;;  %s6793_s10 = smov %s4382_s11 }
 0x2eb   : > { %s6794_s11 = smov %s4467_s22  ;;  %s6795_s12 = smov %s4390_s13 }
 0x2ec   : > { %s6796_s13 = smov %s6798_s17  ;;  %14 = sbr.rel (!%p12_p3) target bundleno = 4 (0x4), region = 66 }
 0x2f1   :  { %3325 = vsyncpa [#allocation3], 1 }
 0x2f2   :  { %3327 = vsyncpa [#allocation3 + $0x1], 1 }

</bundles_post_ra>
